<compile_context>
chip_gen: v5e
topology: v5e:2x2
jax: 0.10.0
libtpu: 0.0.40
codegen_flags: <defaults>
</compile_context>

<pallas_src>
import numpy as np

import jax
import jax.numpy as jnp
from jax import lax
from jax.experimental import pallas as pl
from jax.experimental.pallas import tpu as pltpu


BATCH = 2
HW0 = 8          # input spatial size (see Resize note above)
CIN_PAD = 8      # layer-1 input channels zero-padded to a full sublane group

# 3x3 taps in (kh, kw) order; offsets dh = kh - 1, dw = kw - 1.
_TAPS = tuple((kh - 1, kw - 1) for kh in range(3) for kw in range(3))


# ----------------------------------------------------------------------------
# In-kernel helpers.  Activations are flattened 2-D (B*H*W, C) values so every
# op is a plain 2-D matmul / elementwise op.  Shifts are static slices +
# concat with zeros (no MXU); boundary masks kill rows that cross an image
# row / batch boundary.
# ----------------------------------------------------------------------------
def _shift_rows_zero(y, off):
    """result[r] = y[r + off] if 0 <= r + off < M else 0 (off is a Python int)."""
    M, C = y.shape
    if off == 0:
        return y
    z = jnp.zeros((abs(off), C), y.dtype)
    if off > 0:
        return jnp.concatenate([y[off:], z], axis=0)
    return jnp.concatenate([z, y[:off]], axis=0)


def _conv3x3(x, w_ref, bias, bn_shift, mask, *, W):
    """3x3 conv (stride 1, pad 1) on flattened (M, Cin) f32 activation with
    BN-scale-folded bf16 weights, + bias, ReLU, + BN shift."""
    acc = jnp.dot(x.astype(jnp.bfloat16), w_ref[0, 4],
                  preferred_element_type=jnp.float32)           # centre tap
    for tap, (dh, dw) in enumerate(_TAPS):
        if tap == 4:
            continue
        xs = _shift_rows_zero(x, dh * W + dw) * mask[:, tap:tap + 1]
        acc = acc + jnp.dot(xs.astype(jnp.bfloat16), w_ref[0, tap],
                            preferred_element_type=jnp.float32)
    y = acc + bias
    return jnp.maximum(y, 0.0) + bn_shift


def _maxpool2x2(y, pool_onehot, *, W):
    """2x2/stride-2 max-pool: window max from shifted copies (VPU), then one
    one-hot bf16 matmul compacts the anchor rows."""
    y1 = jnp.maximum(y, _shift_rows_zero(y, 1))
    ymax = jnp.maximum(y1, _shift_rows_zero(y1, W))
    return jnp.dot(pool_onehot, ymax.astype(jnp.bfloat16),
                   preferred_element_type=jnp.float32)


# ----------------------------------------------------------------------------
# Branch kernel: one grid step = one full CNN branch (visual or audio).
# ----------------------------------------------------------------------------
def _branch_kernel(x_ref, m1_ref, m2_ref, m3_ref, p1_ref, p2_ref, p3_ref,
                   w1_ref, b1_ref, t1_ref, w2_ref, b2_ref, t2_ref,
                   w3_ref, b3_ref, t3_ref, w4_ref, b4_ref, feat_ref):
    h = _conv3x3(x_ref[0], w1_ref, b1_ref[0], t1_ref[0], m1_ref[...], W=8)
    h = _maxpool2x2(h, p1_ref[...], W=8)
    h = _conv3x3(h, w2_ref, b2_ref[0], t2_ref[0], m2_ref[...], W=4)
    h = _maxpool2x2(h, p2_ref[...], W=4)
    h = _conv3x3(h, w3_ref, b3_ref[0], t3_ref[0], m3_ref[...], W=2)
    h = _maxpool2x2(h, p3_ref[...], W=2)
    # final 3x3 conv on 1x1 spatial: only the centre tap touches real data
    feat = jnp.dot(h.astype(jnp.bfloat16), w4_ref[0],
                   preferred_element_type=jnp.float32) + b4_ref[0]
    feat_ref[0] = feat


# ----------------------------------------------------------------------------
# Head kernel: fusion Linear (split weight, no concat) + fc1 + fc2 + softmax.
# ----------------------------------------------------------------------------
def _head_kernel(f_ref, wfv_ref, wfa_ref, bf_ref, w1_ref, b1_ref,
                 w2_ref, b2_ref, out_ref):
    vf = f_ref[0].astype(jnp.bfloat16)     # (B, 128) visual features
    af = f_ref[1].astype(jnp.bfloat16)     # (B, 128) audio features
    y = (jnp.dot(vf, wfv_ref[...], preferred_element_type=jnp.float32)
         + jnp.dot(af, wfa_ref[...], preferred_element_type=jnp.float32)
         + bf_ref[...])
    y = jnp.maximum(y, 0.0)
    y = jnp.dot(y.astype(jnp.bfloat16), w1_ref[...],
                preferred_element_type=jnp.float32) + b1_ref[...]
    y = jnp.maximum(y, 0.0)
    y = jnp.dot(y.astype(jnp.bfloat16), w2_ref[...],
                preferred_element_type=jnp.float32) + b2_ref[...]
    y = jnp.maximum(y, 0.0)                 # reference: ReLU then Softmax
    m = jnp.max(y, axis=-1, keepdims=True)
    e = jnp.exp(y - m)
    out_ref[...] = e / jnp.sum(e, axis=-1, keepdims=True)


# ----------------------------------------------------------------------------
# Host-side wrapper.
# ----------------------------------------------------------------------------
@jax.jit
def forward(kp, x_visual_nchw, x_audio_nchw):
    B = x_visual_nchw.shape[0]
    assert x_visual_nchw.shape[2] == HW0 and x_visual_nchw.shape[3] == HW0
    assert x_audio_nchw.shape[2] == HW0 and x_audio_nchw.shape[3] == HW0
    M1, M2, M3, M4 = B * 64, B * 16, B * 4, B
    assert kp["m1"].shape[0] == M1   # masks were built for this batch size

    def to_rows(x_nchw):
        x = jnp.transpose(x_nchw, (0, 2, 3, 1)).astype(jnp.float32)   # NHWC
        c = x.shape[-1]
        if c < CIN_PAD:
            x = jnp.pad(x, ((0, 0), (0, 0), (0, 0), (0, CIN_PAD - c)))
        return x.reshape(B * HW0 * HW0, CIN_PAD)

    x = jnp.stack([to_rows(x_visual_nchw), to_rows(x_audio_nchw)], axis=0)

    in_specs = [
        pl.BlockSpec((1, M1, CIN_PAD), lambda b: (b, 0, 0)),          # x
        pl.BlockSpec((M1, 9), lambda b: (0, 0)),                      # m1
        pl.BlockSpec((M2, 9), lambda b: (0, 0)),                      # m2
        pl.BlockSpec((M3, 9), lambda b: (0, 0)),                      # m3
        pl.BlockSpec((M2, M1), lambda b: (0, 0)),                     # p1
        pl.BlockSpec((M3, M2), lambda b: (0, 0)),                     # p2
        pl.BlockSpec((M4, M3), lambda b: (0, 0)),                     # p3
        pl.BlockSpec((1, 9, CIN_PAD, 64), lambda b: (b, 0, 0, 0)),    # w1
        pl.BlockSpec((1, 1, 64), lambda b: (b, 0, 0)),                # b1
        pl.BlockSpec((1, 1, 64), lambda b: (b, 0, 0)),                # t1
        pl.BlockSpec((1, 9, 64, 128), lambda b: (b, 0, 0, 0)),        # w2
        pl.BlockSpec((1, 1, 128), lambda b: (b, 0, 0)),               # b2
        pl.BlockSpec((1, 1, 128), lambda b: (b, 0, 0)),               # t2
        pl.BlockSpec((1, 9, 128, 128), lambda b: (b, 0, 0, 0)),       # w3
        pl.BlockSpec((1, 1, 128), lambda b: (b, 0, 0)),               # b3
        pl.BlockSpec((1, 1, 128), lambda b: (b, 0, 0)),               # t3
        pl.BlockSpec((1, 128, 128), lambda b: (b, 0, 0)),             # w4 (centre)
        pl.BlockSpec((1, 1, 128), lambda b: (b, 0, 0)),               # b4
    ]

    feats = pl.pallas_call(
        _branch_kernel,
        out_shape=jax.ShapeDtypeStruct((2, B, 128), jnp.float32),
        grid=(2,),
        in_specs=in_specs,
        out_specs=pl.BlockSpec((1, B, 128), lambda b: (b, 0, 0)),
        compiler_params=pltpu.CompilerParams(
            dimension_semantics=("parallel",)),
    )(x, kp["m1"], kp["m2"], kp["m3"], kp["p1"], kp["p2"], kp["p3"],
      kp["w1"], kp["b1"], kp["t1"], kp["w2"], kp["b2"], kp["t2"],
      kp["w3"], kp["b3"], kp["t3"], kp["w4"], kp["b4"])

    return pl.pallas_call(
        _head_kernel,
        out_shape=jax.ShapeDtypeStruct((B, 10), jnp.float32),
    )(feats, kp["wfv"], kp["wfa"], kp["bf"],
      kp["w1h"], kp["b1h"], kp["w2h"], kp["b2h"])


# ----------------------------------------------------------------------------
# Geometry constants (host/numpy, passed to the kernel as small inputs).
# ----------------------------------------------------------------------------
def _conv_masks(batch, H, W):
    """(M, 9) f32: column t = 1 where the tap's source pixel is inside the image."""
    M = batch * H * W
    r = np.arange(M)
    h = (r // W) % H
    w = r % W
    cols = []
    for dh, dw in _TAPS:
        ok = (h + dh >= 0) & (h + dh < H) & (w + dw >= 0) & (w + dw < W)
        cols.append(ok.astype(np.float32))
    return jnp.asarray(np.stack(cols, axis=1))


def _pool_onehot(batch, H, W):
    """(Mo, M) bf16 one-hot selecting the 2x2-window anchor rows (h,w even)."""
    Ho, Wo = H // 2, W // 2
    Mo, M = batch * Ho * Wo, batch * H * W
    P = np.zeros((Mo, M), np.float32)
    m = np.arange(Mo)
    b = m // (Ho * Wo)
    i = (m // Wo) % Ho
    j = m % Wo
    P[m, (b * H + 2 * i) * W + 2 * j] = 1.0
    return jnp.asarray(P).astype(jnp.bfloat16)


# ----------------------------------------------------------------------------
# Parameter construction (raw f32 params) + kernel-operand preparation
# (BN fold, bf16 cast, branch stacking) - all done once, outside the kernel.
# ----------------------------------------------------------------------------
def _conv_layer_params(key, cin, cout, with_bn, pad_cin=None):
    kw_, kb_ = jax.random.split(key)
    # kernel stored as (9, cin, cout) == PyTorch (cout, cin, kh, kw) permuted
    w = jax.random.normal(kw_, (9, cin, cout), jnp.float32) / (3.0 * float(cin) ** 0.5)
    if pad_cin is not None and pad_cin > cin:
        w = jnp.concatenate(
            [w, jnp.zeros((9, pad_cin - cin, cout), jnp.float32)], axis=1)
    b = 0.01 * jax.random.normal(kb_, (1, cout), jnp.float32)
    if with_bn:
        eps = 1e-5
        gamma = jnp.ones((1, cout), jnp.float32)
        beta = jnp.zeros((1, cout), jnp.float32)
        mean = jnp.zeros((1, cout), jnp.float32)
        var = jnp.ones((1, cout), jnp.float32)
        scale = gamma / jnp.sqrt(var + eps)
        shift = beta - mean * scale
    else:
        scale = jnp.ones((1, cout), jnp.float32)
        shift = jnp.zeros((1, cout), jnp.float32)
    return (w, b, scale, shift)


def _linear_params(key, din, dout):
    kw_, kb_ = jax.random.split(key)
    w = jax.random.normal(kw_, (din, dout), jnp.float32) / float(din) ** 0.5
    b = 0.01 * jax.random.normal(kb_, (1, dout), jnp.float32)
    return w, b


def make_all_params(key):
    keys = jax.random.split(key, 11)
    visual = [
        _conv_layer_params(keys[0], 3, 64, True, pad_cin=CIN_PAD),
        _conv_layer_params(keys[1], 64, 128, True),
        _conv_layer_params(keys[2], 128, 128, True),
        _conv_layer_params(keys[3], 128, 128, False),
    ]
    audio = [
        _conv_layer_params(keys[4], 1, 64, True, pad_cin=CIN_PAD),
        _conv_layer_params(keys[5], 64, 128, True),
        _conv_layer_params(keys[6], 128, 128, True),
        _conv_layer_params(keys[7], 128, 128, False),
    ]
    wf, bf = _linear_params(keys[8], 256, 128)
    w1, b1 = _linear_params(keys[9], 128, 64)
    w2, b2 = _linear_params(keys[10], 64, 10)
    head = dict(wf=wf, bf=bf, w1=w1, b1=b1, w2=w2, b2=b2)
    return dict(visual=visual, audio=audio, head=head)


def prepare_kernel_params(params, batch):
    def fold(layer):
        w, b, s, t = layer
        # BN fold ReLU(x)*s == ReLU(x*s) requires s > 0.
        assert float(np.min(np.asarray(s))) > 0.0
        return w * s.reshape(1, 1, -1), b * s, t

    def stack_layer(li, centre_only=False):
        wv, bv, tv = fold(params["visual"][li])
        wa, ba, ta = fold(params["audio"][li])
        if centre_only:
            wv, wa = wv[4], wa[4]
        w = jnp.stack([wv, wa], axis=0).astype(jnp.bfloat16)
        b = jnp.stack([bv, ba], axis=0).astype(jnp.float32)
        t = jnp.stack([tv, ta], axis=0).astype(jnp.float32)
        return w, b, t

    w1, b1, t1 = stack_layer(0)
    w2, b2, t2 = stack_layer(1)
    w3, b3, t3 = stack_layer(2)
    w4, b4, _ = stack_layer(3, centre_only=True)

    head = params["head"]
    return dict(
        m1=_conv_masks(batch, 8, 8),
        m2=_conv_masks(batch, 4, 4),
        m3=_conv_masks(batch, 2, 2),
        p1=_pool_onehot(batch, 8, 8),
        p2=_pool_onehot(batch, 4, 4),
        p3=_pool_onehot(batch, 2, 2),
        w1=w1, b1=b1, t1=t1, w2=w2, b2=b2, t2=t2,
        w3=w3, b3=b3, t3=t3, w4=w4, b4=b4,
        wfv=head["wf"][:128, :].astype(jnp.bfloat16),
        wfa=head["wf"][128:, :].astype(jnp.bfloat16),
        bf=head["bf"].astype(jnp.float32),
        w1h=head["w1"].astype(jnp.bfloat16), b1h=head["b1"].astype(jnp.float32),
        w2h=head["w2"].astype(jnp.bfloat16), b2h=head["b2"].astype(jnp.float32),
    )


# ----------------------------------------------------------------------------
# Pure-JAX reference of the same network (bf16 MXU operands, f32 accumulation,
# original conv->bias->ReLU->BN->pool formulation) for cross-checking.
# ----------------------------------------------------------------------------
def reference_forward(params, x_visual_nchw, x_audio_nchw):
    def branch(x_nchw, layers):
        x = jnp.transpose(x_nchw, (0, 2, 3, 1)).astype(jnp.float32)   # NHWC
        for li, (w9, b, s, t) in enumerate(layers):
            cin, cout = w9.shape[1], w9.shape[2]
            if x.shape[-1] < cin:
                x = jnp.pad(x, ((0, 0), (0, 0), (0, 0), (0, cin - x.shape[-1])))
            w_hwio = w9.reshape(3, 3, cin, cout)
            y = lax.conv_general_dilated(
                x.astype(jnp.bfloat16), w_hwio.astype(jnp.bfloat16),
                window_strides=(1, 1), padding="SAME",
                dimension_numbers=("NHWC", "HWIO", "NHWC"),
                preferred_element_type=jnp.float32)
            y = y + b.reshape(1, 1, 1, -1)
            if li < 3:
                y = jnp.maximum(y, 0.0)
                y = y * s.reshape(1, 1, 1, -1) + t.reshape(1, 1, 1, -1)
                y = lax.reduce_window(y, -jnp.inf, lax.max,
                                      (1, 2, 2, 1), (1, 2, 2, 1), "VALID")
            x = y
        return x.reshape(x.shape[0], -1)

    def lin(x, w, b):
        return jnp.dot(x.astype(jnp.bfloat16), w.astype(jnp.bfloat16),
                       preferred_element_type=jnp.float32) + b

    vf = branch(x_visual_nchw, params["visual"])
    af = branch(x_audio_nchw, params["audio"])
    head = params["head"]
    fused = jnp.concatenate([vf, af], axis=1)
    y = jnp.maximum(lin(fused, head["wf"], head["bf"]), 0.0)
    y = jnp.maximum(lin(y, head["w1"], head["b1"]), 0.0)
    y = jnp.maximum(lin(y, head["w2"], head["b2"]), 0.0)
    return jax.nn.softmax(y, axis=1)


if __name__ == "__main__":
    key = jax.random.PRNGKey(0)
    kp_key, kv, ka = jax.random.split(key, 3)

    params = make_all_params(kp_key)
    kparams = prepare_kernel_params(params, BATCH)

    # batch=2, visual 3x8x8, audio 1x8x8 (NCHW, PyTorch convention)
    x_visual = jax.random.normal(kv, (BATCH, 3, HW0, HW0), jnp.float32)
    x_audio = jax.random.normal(ka, (BATCH, 1, HW0, HW0), jnp.float32)

    out = jax.block_until_ready(forward(kparams, x_visual, x_audio))

    assert out.shape == (BATCH, 10)
    assert bool(jnp.all(jnp.isfinite(out)))
    assert bool(jnp.allclose(jnp.sum(out, axis=1), 1.0, atol=1e-5))

    # Cross-check against the plain XLA reference (same bf16-operand / f32-acc
    # matmul policy; remaining diff is accumulation order + BN-fold rounding).
    ref = jax.block_until_ready(reference_forward(params, x_visual, x_audio))
    max_diff = float(jnp.max(jnp.abs(out - ref)))
    assert bool(jnp.allclose(out, ref, atol=3e-2)), f"max |diff| = {max_diff}"

    print("KERNEL_OK")
</pallas_src>

<mosaic_0001>
module attributes {stable_mosaic.version = 11 : i64} {
  func.func @_branch_kernel(%arg0: i32, %arg1: memref<1x128x8xf32, #tpu.memory_space<vmem>>, %arg2: memref<128x9xf32, #tpu.memory_space<vmem>>, %arg3: memref<32x9xf32, #tpu.memory_space<vmem>>, %arg4: memref<8x9xf32, #tpu.memory_space<vmem>>, %arg5: memref<32x128xbf16, #tpu.memory_space<vmem>>, %arg6: memref<8x32xbf16, #tpu.memory_space<vmem>>, %arg7: memref<2x8xbf16, #tpu.memory_space<vmem>>, %arg8: memref<1x9x8x64xbf16, #tpu.memory_space<vmem>>, %arg9: memref<1x1x64xf32, #tpu.memory_space<vmem>>, %arg10: memref<1x1x64xf32, #tpu.memory_space<vmem>>, %arg11: memref<1x9x64x128xbf16, #tpu.memory_space<vmem>>, %arg12: memref<1x1x128xf32, #tpu.memory_space<vmem>>, %arg13: memref<1x1x128xf32, #tpu.memory_space<vmem>>, %arg14: memref<1x9x128x128xbf16, #tpu.memory_space<vmem>>, %arg15: memref<1x1x128xf32, #tpu.memory_space<vmem>>, %arg16: memref<1x1x128xf32, #tpu.memory_space<vmem>>, %arg17: memref<1x128x128xbf16, #tpu.memory_space<vmem>>, %arg18: memref<1x1x128xf32, #tpu.memory_space<vmem>>, %arg19: memref<1x2x128xf32, #tpu.memory_space<vmem>>) attributes {dimension_semantics = [#tpu.dimension_semantics<parallel>], iteration_bounds = array<i64: 2>, scalar_prefetch = 0 : i64, scratch_operands = 0 : i64, tpu.core_type = #tpu.core_type<tc>, window_params = [{transform_indices = @transform_0, window_bounds = array<i64: 1, 128, 8>}, {pipeline_mode = #tpu.pipeline_mode<synchronous>, transform_indices = @transform_1, window_bounds = array<i64: 128, 9>}, {pipeline_mode = #tpu.pipeline_mode<synchronous>, transform_indices = @transform_2, window_bounds = array<i64: 32, 9>}, {pipeline_mode = #tpu.pipeline_mode<synchronous>, transform_indices = @transform_3, window_bounds = array<i64: 8, 9>}, {pipeline_mode = #tpu.pipeline_mode<synchronous>, transform_indices = @transform_4, window_bounds = array<i64: 32, 128>}, {pipeline_mode = #tpu.pipeline_mode<synchronous>, transform_indices = @transform_5, window_bounds = array<i64: 8, 32>}, {pipeline_mode = #tpu.pipeline_mode<synchronous>, transform_indices = @transform_6, window_bounds = array<i64: 2, 8>}, {transform_indices = @transform_7, window_bounds = array<i64: 1, 9, 8, 64>}, {transform_indices = @transform_8, window_bounds = array<i64: 1, 1, 64>}, {transform_indices = @transform_9, window_bounds = array<i64: 1, 1, 64>}, {transform_indices = @transform_10, window_bounds = array<i64: 1, 9, 64, 128>}, {transform_indices = @transform_11, window_bounds = array<i64: 1, 1, 128>}, {transform_indices = @transform_12, window_bounds = array<i64: 1, 1, 128>}, {transform_indices = @transform_13, window_bounds = array<i64: 1, 9, 128, 128>}, {transform_indices = @transform_14, window_bounds = array<i64: 1, 1, 128>}, {transform_indices = @transform_15, window_bounds = array<i64: 1, 1, 128>}, {transform_indices = @transform_16, window_bounds = array<i64: 1, 128, 128>}, {transform_indices = @transform_17, window_bounds = array<i64: 1, 1, 128>}, {transform_indices = @transform_18, window_bounds = array<i64: 1, 2, 128>}]} {
    %c0 = arith.constant 0 : index
    %c0_0 = arith.constant 0 : index
    %c0_1 = arith.constant 0 : index
    %0 = vector.load %arg1[%c0, %c0_0, %c0_1] : memref<1x128x8xf32, #tpu.memory_space<vmem>>, vector<1x128x8xf32>
    %1 = vector.shape_cast %0 : vector<1x128x8xf32> to vector<128x8xf32>
    %c0_2 = arith.constant 0 : index
    %c0_3 = arith.constant 0 : index
    %c0_4 = arith.constant 0 : index
    %2 = vector.load %arg9[%c0_2, %c0_3, %c0_4] : memref<1x1x64xf32, #tpu.memory_space<vmem>>, vector<1x1x64xf32>
    %3 = vector.shape_cast %2 : vector<1x1x64xf32> to vector<1x64xf32>
    %c0_5 = arith.constant 0 : index
    %c0_6 = arith.constant 0 : index
    %c0_7 = arith.constant 0 : index
    %4 = vector.load %arg10[%c0_5, %c0_6, %c0_7] : memref<1x1x64xf32, #tpu.memory_space<vmem>>, vector<1x1x64xf32>
    %5 = vector.shape_cast %4 : vector<1x1x64xf32> to vector<1x64xf32>
    %c0_8 = arith.constant 0 : index
    %c0_9 = arith.constant 0 : index
    %6 = vector.load %arg2[%c0_8, %c0_9] : memref<128x9xf32, #tpu.memory_space<vmem>>, vector<128x9xf32>
    %7 = arith.truncf %1 : vector<128x8xf32> to vector<128x8xbf16>
    %c0_10 = arith.constant 0 : index
    %c4 = arith.constant 4 : index
    %c0_11 = arith.constant 0 : index
    %c0_12 = arith.constant 0 : index
    %8 = vector.load %arg8[%c0_10, %c4, %c0_11, %c0_12] : memref<1x9x8x64xbf16, #tpu.memory_space<vmem>>, vector<1x1x8x64xbf16>
    %9 = vector.shape_cast %8 : vector<1x1x8x64xbf16> to vector<8x64xbf16>
    %cst = arith.constant dense<0.000000e+00> : vector<128x64xf32>
    %10 = tpu.matmul %7, %9, %cst {dimension_numbers = #tpu.dot_dimension_numbers<[1], [0], [0], [1], [0, 0, 1, 1], [], []>} : vector<128x8xbf16>, vector<8x64xbf16>, vector<128x64xf32> -> vector<128x64xf32>
    %cst_13 = arith.constant 0.000000e+00 : f32
    %11 = vector.broadcast %cst_13 : f32 to vector<9x8xf32>
    %12 = vector.extract_strided_slice %1 {offsets = [0, 0], sizes = [119, 8], strides = [1, 1]} : vector<128x8xf32> to vector<119x8xf32>
    %13 = tpu.concatenate %11, %12 in 0 : vector<9x8xf32>, vector<119x8xf32> -> vector<128x8xf32>
    %14 = vector.extract_strided_slice %6 {offsets = [0, 0], sizes = [128, 1], strides = [1, 1]} : vector<128x9xf32> to vector<128x1xf32>
    %15 = vector.broadcast %14 : vector<128x1xf32> to vector<128x8xf32>
    %16 = arith.mulf %13, %15 : vector<128x8xf32>
    %17 = arith.truncf %16 : vector<128x8xf32> to vector<128x8xbf16>
    %c0_14 = arith.constant 0 : index
    %c0_15 = arith.constant 0 : index
    %c0_16 = arith.constant 0 : index
    %c0_17 = arith.constant 0 : index
    %18 = vector.load %arg8[%c0_14, %c0_15, %c0_16, %c0_17] : memref<1x9x8x64xbf16, #tpu.memory_space<vmem>>, vector<1x1x8x64xbf16>
    %19 = vector.shape_cast %18 : vector<1x1x8x64xbf16> to vector<8x64xbf16>
    %cst_18 = arith.constant dense<0.000000e+00> : vector<128x64xf32>
    %20 = tpu.matmul %17, %19, %cst_18 {dimension_numbers = #tpu.dot_dimension_numbers<[1], [0], [0], [1], [0, 0, 1, 1], [], []>} : vector<128x8xbf16>, vector<8x64xbf16>, vector<128x64xf32> -> vector<128x64xf32>
    %21 = arith.addf %10, %20 : vector<128x64xf32>
    %cst_19 = arith.constant 0.000000e+00 : f32
    %22 = vector.broadcast %cst_19 : f32 to vector<8x8xf32>
    %23 = vector.extract_strided_slice %1 {offsets = [0, 0], sizes = [120, 8], strides = [1, 1]} : vector<128x8xf32> to vector<120x8xf32>
    %24 = tpu.concatenate %22, %23 in 0 : vector<8x8xf32>, vector<120x8xf32> -> vector<128x8xf32>
    %25 = vector.extract_strided_slice %6 {offsets = [0, 1], sizes = [128, 1], strides = [1, 1]} : vector<128x9xf32> to vector<128x1xf32>
    %26 = vector.broadcast %25 : vector<128x1xf32> to vector<128x8xf32>
    %27 = arith.mulf %24, %26 : vector<128x8xf32>
    %28 = arith.truncf %27 : vector<128x8xf32> to vector<128x8xbf16>
    %c0_20 = arith.constant 0 : index
    %c1 = arith.constant 1 : index
    %c0_21 = arith.constant 0 : index
    %c0_22 = arith.constant 0 : index
    %29 = vector.load %arg8[%c0_20, %c1, %c0_21, %c0_22] : memref<1x9x8x64xbf16, #tpu.memory_space<vmem>>, vector<1x1x8x64xbf16>
    %30 = vector.shape_cast %29 : vector<1x1x8x64xbf16> to vector<8x64xbf16>
    %cst_23 = arith.constant dense<0.000000e+00> : vector<128x64xf32>
    %31 = tpu.matmul %28, %30, %cst_23 {dimension_numbers = #tpu.dot_dimension_numbers<[1], [0], [0], [1], [0, 0, 1, 1], [], []>} : vector<128x8xbf16>, vector<8x64xbf16>, vector<128x64xf32> -> vector<128x64xf32>
    %32 = arith.addf %21, %31 : vector<128x64xf32>
    %cst_24 = arith.constant 0.000000e+00 : f32
    %33 = vector.broadcast %cst_24 : f32 to vector<7x8xf32>
    %34 = vector.extract_strided_slice %1 {offsets = [0, 0], sizes = [121, 8], strides = [1, 1]} : vector<128x8xf32> to vector<121x8xf32>
    %35 = tpu.concatenate %33, %34 in 0 : vector<7x8xf32>, vector<121x8xf32> -> vector<128x8xf32>
    %36 = vector.extract_strided_slice %6 {offsets = [0, 2], sizes = [128, 1], strides = [1, 1]} : vector<128x9xf32> to vector<128x1xf32>
    %37 = vector.broadcast %36 : vector<128x1xf32> to vector<128x8xf32>
    %38 = arith.mulf %35, %37 : vector<128x8xf32>
    %39 = arith.truncf %38 : vector<128x8xf32> to vector<128x8xbf16>
    %c0_25 = arith.constant 0 : index
    %c2 = arith.constant 2 : index
    %c0_26 = arith.constant 0 : index
    %c0_27 = arith.constant 0 : index
    %40 = vector.load %arg8[%c0_25, %c2, %c0_26, %c0_27] : memref<1x9x8x64xbf16, #tpu.memory_space<vmem>>, vector<1x1x8x64xbf16>
    %41 = vector.shape_cast %40 : vector<1x1x8x64xbf16> to vector<8x64xbf16>
    %cst_28 = arith.constant dense<0.000000e+00> : vector<128x64xf32>
    %42 = tpu.matmul %39, %41, %cst_28 {dimension_numbers = #tpu.dot_dimension_numbers<[1], [0], [0], [1], [0, 0, 1, 1], [], []>} : vector<128x8xbf16>, vector<8x64xbf16>, vector<128x64xf32> -> vector<128x64xf32>
    %43 = arith.addf %32, %42 : vector<128x64xf32>
    %cst_29 = arith.constant 0.000000e+00 : f32
    %44 = vector.broadcast %cst_29 : f32 to vector<1x8xf32>
    %45 = vector.extract_strided_slice %1 {offsets = [0, 0], sizes = [127, 8], strides = [1, 1]} : vector<128x8xf32> to vector<127x8xf32>
    %46 = tpu.concatenate %44, %45 in 0 : vector<1x8xf32>, vector<127x8xf32> -> vector<128x8xf32>
    %47 = vector.extract_strided_slice %6 {offsets = [0, 3], sizes = [128, 1], strides = [1, 1]} : vector<128x9xf32> to vector<128x1xf32>
    %48 = vector.broadcast %47 : vector<128x1xf32> to vector<128x8xf32>
    %49 = arith.mulf %46, %48 : vector<128x8xf32>
    %50 = arith.truncf %49 : vector<128x8xf32> to vector<128x8xbf16>
    %c0_30 = arith.constant 0 : index
    %c3 = arith.constant 3 : index
    %c0_31 = arith.constant 0 : index
    %c0_32 = arith.constant 0 : index
    %51 = vector.load %arg8[%c0_30, %c3, %c0_31, %c0_32] : memref<1x9x8x64xbf16, #tpu.memory_space<vmem>>, vector<1x1x8x64xbf16>
    %52 = vector.shape_cast %51 : vector<1x1x8x64xbf16> to vector<8x64xbf16>
    %cst_33 = arith.constant dense<0.000000e+00> : vector<128x64xf32>
    %53 = tpu.matmul %50, %52, %cst_33 {dimension_numbers = #tpu.dot_dimension_numbers<[1], [0], [0], [1], [0, 0, 1, 1], [], []>} : vector<128x8xbf16>, vector<8x64xbf16>, vector<128x64xf32> -> vector<128x64xf32>
    %54 = arith.addf %43, %53 : vector<128x64xf32>
    %cst_34 = arith.constant 0.000000e+00 : f32
    %55 = vector.broadcast %cst_34 : f32 to vector<1x8xf32>
    %56 = vector.extract_strided_slice %1 {offsets = [1, 0], sizes = [127, 8], strides = [1, 1]} : vector<128x8xf32> to vector<127x8xf32>
    %57 = tpu.concatenate %56, %55 in 0 : vector<127x8xf32>, vector<1x8xf32> -> vector<128x8xf32>
    %58 = vector.extract_strided_slice %6 {offsets = [0, 5], sizes = [128, 1], strides = [1, 1]} : vector<128x9xf32> to vector<128x1xf32>
    %59 = vector.broadcast %58 : vector<128x1xf32> to vector<128x8xf32>
    %60 = arith.mulf %57, %59 : vector<128x8xf32>
    %61 = arith.truncf %60 : vector<128x8xf32> to vector<128x8xbf16>
    %c0_35 = arith.constant 0 : index
    %c5 = arith.constant 5 : index
    %c0_36 = arith.constant 0 : index
    %c0_37 = arith.constant 0 : index
    %62 = vector.load %arg8[%c0_35, %c5, %c0_36, %c0_37] : memref<1x9x8x64xbf16, #tpu.memory_space<vmem>>, vector<1x1x8x64xbf16>
    %63 = vector.shape_cast %62 : vector<1x1x8x64xbf16> to vector<8x64xbf16>
    %cst_38 = arith.constant dense<0.000000e+00> : vector<128x64xf32>
    %64 = tpu.matmul %61, %63, %cst_38 {dimension_numbers = #tpu.dot_dimension_numbers<[1], [0], [0], [1], [0, 0, 1, 1], [], []>} : vector<128x8xbf16>, vector<8x64xbf16>, vector<128x64xf32> -> vector<128x64xf32>
    %65 = arith.addf %54, %64 : vector<128x64xf32>
    %cst_39 = arith.constant 0.000000e+00 : f32
    %66 = vector.broadcast %cst_39 : f32 to vector<7x8xf32>
    %67 = vector.extract_strided_slice %1 {offsets = [7, 0], sizes = [121, 8], strides = [1, 1]} : vector<128x8xf32> to vector<121x8xf32>
    %68 = tpu.concatenate %67, %66 in 0 : vector<121x8xf32>, vector<7x8xf32> -> vector<128x8xf32>
    %69 = vector.extract_strided_slice %6 {offsets = [0, 6], sizes = [128, 1], strides = [1, 1]} : vector<128x9xf32> to vector<128x1xf32>
    %70 = vector.broadcast %69 : vector<128x1xf32> to vector<128x8xf32>
    %71 = arith.mulf %68, %70 : vector<128x8xf32>
    %72 = arith.truncf %71 : vector<128x8xf32> to vector<128x8xbf16>
    %c0_40 = arith.constant 0 : index
    %c6 = arith.constant 6 : index
    %c0_41 = arith.constant 0 : index
    %c0_42 = arith.constant 0 : index
    %73 = vector.load %arg8[%c0_40, %c6, %c0_41, %c0_42] : memref<1x9x8x64xbf16, #tpu.memory_space<vmem>>, vector<1x1x8x64xbf16>
    %74 = vector.shape_cast %73 : vector<1x1x8x64xbf16> to vector<8x64xbf16>
    %cst_43 = arith.constant dense<0.000000e+00> : vector<128x64xf32>
    %75 = tpu.matmul %72, %74, %cst_43 {dimension_numbers = #tpu.dot_dimension_numbers<[1], [0], [0], [1], [0, 0, 1, 1], [], []>} : vector<128x8xbf16>, vector<8x64xbf16>, vector<128x64xf32> -> vector<128x64xf32>
    %76 = arith.addf %65, %75 : vector<128x64xf32>
    %cst_44 = arith.constant 0.000000e+00 : f32
    %77 = vector.broadcast %cst_44 : f32 to vector<8x8xf32>
    %78 = vector.extract_strided_slice %1 {offsets = [8, 0], sizes = [120, 8], strides = [1, 1]} : vector<128x8xf32> to vector<120x8xf32>
    %79 = tpu.concatenate %78, %77 in 0 : vector<120x8xf32>, vector<8x8xf32> -> vector<128x8xf32>
    %80 = vector.extract_strided_slice %6 {offsets = [0, 7], sizes = [128, 1], strides = [1, 1]} : vector<128x9xf32> to vector<128x1xf32>
    %81 = vector.broadcast %80 : vector<128x1xf32> to vector<128x8xf32>
    %82 = arith.mulf %79, %81 : vector<128x8xf32>
    %83 = arith.truncf %82 : vector<128x8xf32> to vector<128x8xbf16>
    %c0_45 = arith.constant 0 : index
    %c7 = arith.constant 7 : index
    %c0_46 = arith.constant 0 : index
    %c0_47 = arith.constant 0 : index
    %84 = vector.load %arg8[%c0_45, %c7, %c0_46, %c0_47] : memref<1x9x8x64xbf16, #tpu.memory_space<vmem>>, vector<1x1x8x64xbf16>
    %85 = vector.shape_cast %84 : vector<1x1x8x64xbf16> to vector<8x64xbf16>
    %cst_48 = arith.constant dense<0.000000e+00> : vector<128x64xf32>
    %86 = tpu.matmul %83, %85, %cst_48 {dimension_numbers = #tpu.dot_dimension_numbers<[1], [0], [0], [1], [0, 0, 1, 1], [], []>} : vector<128x8xbf16>, vector<8x64xbf16>, vector<128x64xf32> -> vector<128x64xf32>
    %87 = arith.addf %76, %86 : vector<128x64xf32>
    %cst_49 = arith.constant 0.000000e+00 : f32
    %88 = vector.broadcast %cst_49 : f32 to vector<9x8xf32>
    %89 = vector.extract_strided_slice %1 {offsets = [9, 0], sizes = [119, 8], strides = [1, 1]} : vector<128x8xf32> to vector<119x8xf32>
    %90 = tpu.concatenate %89, %88 in 0 : vector<119x8xf32>, vector<9x8xf32> -> vector<128x8xf32>
    %91 = vector.extract_strided_slice %6 {offsets = [0, 8], sizes = [128, 1], strides = [1, 1]} : vector<128x9xf32> to vector<128x1xf32>
    %92 = vector.broadcast %91 : vector<128x1xf32> to vector<128x8xf32>
    %93 = arith.mulf %90, %92 : vector<128x8xf32>
    %94 = arith.truncf %93 : vector<128x8xf32> to vector<128x8xbf16>
    %c0_50 = arith.constant 0 : index
    %c8 = arith.constant 8 : index
    %c0_51 = arith.constant 0 : index
    %c0_52 = arith.constant 0 : index
    %95 = vector.load %arg8[%c0_50, %c8, %c0_51, %c0_52] : memref<1x9x8x64xbf16, #tpu.memory_space<vmem>>, vector<1x1x8x64xbf16>
    %96 = vector.shape_cast %95 : vector<1x1x8x64xbf16> to vector<8x64xbf16>
    %cst_53 = arith.constant dense<0.000000e+00> : vector<128x64xf32>
    %97 = tpu.matmul %94, %96, %cst_53 {dimension_numbers = #tpu.dot_dimension_numbers<[1], [0], [0], [1], [0, 0, 1, 1], [], []>} : vector<128x8xbf16>, vector<8x64xbf16>, vector<128x64xf32> -> vector<128x64xf32>
    %98 = arith.addf %87, %97 : vector<128x64xf32>
    %99 = vector.broadcast %3 : vector<1x64xf32> to vector<128x64xf32>
    %100 = arith.addf %98, %99 : vector<128x64xf32>
    %cst_54 = arith.constant 0.000000e+00 : f32
    %101 = vector.broadcast %cst_54 : f32 to vector<128x64xf32>
    %102 = arith.maximumf %100, %101 : vector<128x64xf32>
    %103 = vector.broadcast %5 : vector<1x64xf32> to vector<128x64xf32>
    %104 = arith.addf %102, %103 : vector<128x64xf32>
    %c0_55 = arith.constant 0 : index
    %c0_56 = arith.constant 0 : index
    %105 = vector.load %arg5[%c0_55, %c0_56] : memref<32x128xbf16, #tpu.memory_space<vmem>>, vector<32x128xbf16>
    %cst_57 = arith.constant 0.000000e+00 : f32
    %106 = vector.broadcast %cst_57 : f32 to vector<1x64xf32>
    %107 = vector.extract_strided_slice %104 {offsets = [1, 0], sizes = [127, 64], strides = [1, 1]} : vector<128x64xf32> to vector<127x64xf32>
    %108 = tpu.concatenate %107, %106 in 0 : vector<127x64xf32>, vector<1x64xf32> -> vector<128x64xf32>
    %109 = arith.maximumf %104, %108 : vector<128x64xf32>
    %cst_58 = arith.constant 0.000000e+00 : f32
    %110 = vector.broadcast %cst_58 : f32 to vector<8x64xf32>
    %111 = vector.extract_strided_slice %109 {offsets = [8, 0], sizes = [120, 64], strides = [1, 1]} : vector<128x64xf32> to vector<120x64xf32>
    %112 = tpu.concatenate %111, %110 in 0 : vector<120x64xf32>, vector<8x64xf32> -> vector<128x64xf32>
    %113 = arith.maximumf %109, %112 : vector<128x64xf32>
    %114 = arith.truncf %113 : vector<128x64xf32> to vector<128x64xbf16>
    %cst_59 = arith.constant dense<0.000000e+00> : vector<32x64xf32>
    %115 = tpu.matmul %105, %114, %cst_59 {dimension_numbers = #tpu.dot_dimension_numbers<[1], [0], [0], [1], [0, 0, 1, 1], [], []>} : vector<32x128xbf16>, vector<128x64xbf16>, vector<32x64xf32> -> vector<32x64xf32>
    %c0_60 = arith.constant 0 : index
    %c0_61 = arith.constant 0 : index
    %c0_62 = arith.constant 0 : index
    %116 = vector.load %arg12[%c0_60, %c0_61, %c0_62] : memref<1x1x128xf32, #tpu.memory_space<vmem>>, vector<1x1x128xf32>
    %117 = vector.shape_cast %116 : vector<1x1x128xf32> to vector<1x128xf32>
    %c0_63 = arith.constant 0 : index
    %c0_64 = arith.constant 0 : index
    %c0_65 = arith.constant 0 : index
    %118 = vector.load %arg13[%c0_63, %c0_64, %c0_65] : memref<1x1x128xf32, #tpu.memory_space<vmem>>, vector<1x1x128xf32>
    %119 = vector.shape_cast %118 : vector<1x1x128xf32> to vector<1x128xf32>
    %c0_66 = arith.constant 0 : index
    %c0_67 = arith.constant 0 : index
    %120 = vector.load %arg3[%c0_66, %c0_67] : memref<32x9xf32, #tpu.memory_space<vmem>>, vector<32x9xf32>
    %121 = arith.truncf %115 : vector<32x64xf32> to vector<32x64xbf16>
    %c0_68 = arith.constant 0 : index
    %c4_69 = arith.constant 4 : index
    %c0_70 = arith.constant 0 : index
    %c0_71 = arith.constant 0 : index
    %122 = vector.load %arg11[%c0_68, %c4_69, %c0_70, %c0_71] : memref<1x9x64x128xbf16, #tpu.memory_space<vmem>>, vector<1x1x64x128xbf16>
    %123 = vector.shape_cast %122 : vector<1x1x64x128xbf16> to vector<64x128xbf16>
    %cst_72 = arith.constant dense<0.000000e+00> : vector<32x128xf32>
    %124 = tpu.matmul %121, %123, %cst_72 {dimension_numbers = #tpu.dot_dimension_numbers<[1], [0], [0], [1], [0, 0, 1, 1], [], []>} : vector<32x64xbf16>, vector<64x128xbf16>, vector<32x128xf32> -> vector<32x128xf32>
    %cst_73 = arith.constant 0.000000e+00 : f32
    %125 = vector.broadcast %cst_73 : f32 to vector<5x64xf32>
    %126 = vector.extract_strided_slice %115 {offsets = [0, 0], sizes = [27, 64], strides = [1, 1]} : vector<32x64xf32> to vector<27x64xf32>
    %127 = tpu.concatenate %125, %126 in 0 : vector<5x64xf32>, vector<27x64xf32> -> vector<32x64xf32>
    %128 = vector.extract_strided_slice %120 {offsets = [0, 0], sizes = [32, 1], strides = [1, 1]} : vector<32x9xf32> to vector<32x1xf32>
    %129 = vector.broadcast %128 : vector<32x1xf32> to vector<32x64xf32>
    %130 = arith.mulf %127, %129 : vector<32x64xf32>
    %131 = arith.truncf %130 : vector<32x64xf32> to vector<32x64xbf16>
    %c0_74 = arith.constant 0 : index
    %c0_75 = arith.constant 0 : index
    %c0_76 = arith.constant 0 : index
    %c0_77 = arith.constant 0 : index
    %132 = vector.load %arg11[%c0_74, %c0_75, %c0_76, %c0_77] : memref<1x9x64x128xbf16, #tpu.memory_space<vmem>>, vector<1x1x64x128xbf16>
    %133 = vector.shape_cast %132 : vector<1x1x64x128xbf16> to vector<64x128xbf16>
    %cst_78 = arith.constant dense<0.000000e+00> : vector<32x128xf32>
    %134 = tpu.matmul %131, %133, %cst_78 {dimension_numbers = #tpu.dot_dimension_numbers<[1], [0], [0], [1], [0, 0, 1, 1], [], []>} : vector<32x64xbf16>, vector<64x128xbf16>, vector<32x128xf32> -> vector<32x128xf32>
    %135 = arith.addf %124, %134 : vector<32x128xf32>
    %cst_79 = arith.constant 0.000000e+00 : f32
    %136 = vector.broadcast %cst_79 : f32 to vector<4x64xf32>
    %137 = vector.extract_strided_slice %115 {offsets = [0, 0], sizes = [28, 64], strides = [1, 1]} : vector<32x64xf32> to vector<28x64xf32>
    %138 = tpu.concatenate %136, %137 in 0 : vector<4x64xf32>, vector<28x64xf32> -> vector<32x64xf32>
    %139 = vector.extract_strided_slice %120 {offsets = [0, 1], sizes = [32, 1], strides = [1, 1]} : vector<32x9xf32> to vector<32x1xf32>
    %140 = vector.broadcast %139 : vector<32x1xf32> to vector<32x64xf32>
    %141 = arith.mulf %138, %140 : vector<32x64xf32>
    %142 = arith.truncf %141 : vector<32x64xf32> to vector<32x64xbf16>
    %c0_80 = arith.constant 0 : index
    %c1_81 = arith.constant 1 : index
    %c0_82 = arith.constant 0 : index
    %c0_83 = arith.constant 0 : index
    %143 = vector.load %arg11[%c0_80, %c1_81, %c0_82, %c0_83] : memref<1x9x64x128xbf16, #tpu.memory_space<vmem>>, vector<1x1x64x128xbf16>
    %144 = vector.shape_cast %143 : vector<1x1x64x128xbf16> to vector<64x128xbf16>
    %cst_84 = arith.constant dense<0.000000e+00> : vector<32x128xf32>
    %145 = tpu.matmul %142, %144, %cst_84 {dimension_numbers = #tpu.dot_dimension_numbers<[1], [0], [0], [1], [0, 0, 1, 1], [], []>} : vector<32x64xbf16>, vector<64x128xbf16>, vector<32x128xf32> -> vector<32x128xf32>
    %146 = arith.addf %135, %145 : vector<32x128xf32>
    %cst_85 = arith.constant 0.000000e+00 : f32
    %147 = vector.broadcast %cst_85 : f32 to vector<3x64xf32>
    %148 = vector.extract_strided_slice %115 {offsets = [0, 0], sizes = [29, 64], strides = [1, 1]} : vector<32x64xf32> to vector<29x64xf32>
    %149 = tpu.concatenate %147, %148 in 0 : vector<3x64xf32>, vector<29x64xf32> -> vector<32x64xf32>
    %150 = vector.extract_strided_slice %120 {offsets = [0, 2], sizes = [32, 1], strides = [1, 1]} : vector<32x9xf32> to vector<32x1xf32>
    %151 = vector.broadcast %150 : vector<32x1xf32> to vector<32x64xf32>
    %152 = arith.mulf %149, %151 : vector<32x64xf32>
    %153 = arith.truncf %152 : vector<32x64xf32> to vector<32x64xbf16>
    %c0_86 = arith.constant 0 : index
    %c2_87 = arith.constant 2 : index
    %c0_88 = arith.constant 0 : index
    %c0_89 = arith.constant 0 : index
    %154 = vector.load %arg11[%c0_86, %c2_87, %c0_88, %c0_89] : memref<1x9x64x128xbf16, #tpu.memory_space<vmem>>, vector<1x1x64x128xbf16>
    %155 = vector.shape_cast %154 : vector<1x1x64x128xbf16> to vector<64x128xbf16>
    %cst_90 = arith.constant dense<0.000000e+00> : vector<32x128xf32>
    %156 = tpu.matmul %153, %155, %cst_90 {dimension_numbers = #tpu.dot_dimension_numbers<[1], [0], [0], [1], [0, 0, 1, 1], [], []>} : vector<32x64xbf16>, vector<64x128xbf16>, vector<32x128xf32> -> vector<32x128xf32>
    %157 = arith.addf %146, %156 : vector<32x128xf32>
    %cst_91 = arith.constant 0.000000e+00 : f32
    %158 = vector.broadcast %cst_91 : f32 to vector<1x64xf32>
    %159 = vector.extract_strided_slice %115 {offsets = [0, 0], sizes = [31, 64], strides = [1, 1]} : vector<32x64xf32> to vector<31x64xf32>
    %160 = tpu.concatenate %158, %159 in 0 : vector<1x64xf32>, vector<31x64xf32> -> vector<32x64xf32>
    %161 = vector.extract_strided_slice %120 {offsets = [0, 3], sizes = [32, 1], strides = [1, 1]} : vector<32x9xf32> to vector<32x1xf32>
    %162 = vector.broadcast %161 : vector<32x1xf32> to vector<32x64xf32>
    %163 = arith.mulf %160, %162 : vector<32x64xf32>
    %164 = arith.truncf %163 : vector<32x64xf32> to vector<32x64xbf16>
    %c0_92 = arith.constant 0 : index
    %c3_93 = arith.constant 3 : index
    %c0_94 = arith.constant 0 : index
    %c0_95 = arith.constant 0 : index
    %165 = vector.load %arg11[%c0_92, %c3_93, %c0_94, %c0_95] : memref<1x9x64x128xbf16, #tpu.memory_space<vmem>>, vector<1x1x64x128xbf16>
    %166 = vector.shape_cast %165 : vector<1x1x64x128xbf16> to vector<64x128xbf16>
    %cst_96 = arith.constant dense<0.000000e+00> : vector<32x128xf32>
    %167 = tpu.matmul %164, %166, %cst_96 {dimension_numbers = #tpu.dot_dimension_numbers<[1], [0], [0], [1], [0, 0, 1, 1], [], []>} : vector<32x64xbf16>, vector<64x128xbf16>, vector<32x128xf32> -> vector<32x128xf32>
    %168 = arith.addf %157, %167 : vector<32x128xf32>
    %cst_97 = arith.constant 0.000000e+00 : f32
    %169 = vector.broadcast %cst_97 : f32 to vector<1x64xf32>
    %170 = vector.extract_strided_slice %115 {offsets = [1, 0], sizes = [31, 64], strides = [1, 1]} : vector<32x64xf32> to vector<31x64xf32>
    %171 = tpu.concatenate %170, %169 in 0 : vector<31x64xf32>, vector<1x64xf32> -> vector<32x64xf32>
    %172 = vector.extract_strided_slice %120 {offsets = [0, 5], sizes = [32, 1], strides = [1, 1]} : vector<32x9xf32> to vector<32x1xf32>
    %173 = vector.broadcast %172 : vector<32x1xf32> to vector<32x64xf32>
    %174 = arith.mulf %171, %173 : vector<32x64xf32>
    %175 = arith.truncf %174 : vector<32x64xf32> to vector<32x64xbf16>
    %c0_98 = arith.constant 0 : index
    %c5_99 = arith.constant 5 : index
    %c0_100 = arith.constant 0 : index
    %c0_101 = arith.constant 0 : index
    %176 = vector.load %arg11[%c0_98, %c5_99, %c0_100, %c0_101] : memref<1x9x64x128xbf16, #tpu.memory_space<vmem>>, vector<1x1x64x128xbf16>
    %177 = vector.shape_cast %176 : vector<1x1x64x128xbf16> to vector<64x128xbf16>
    %cst_102 = arith.constant dense<0.000000e+00> : vector<32x128xf32>
    %178 = tpu.matmul %175, %177, %cst_102 {dimension_numbers = #tpu.dot_dimension_numbers<[1], [0], [0], [1], [0, 0, 1, 1], [], []>} : vector<32x64xbf16>, vector<64x128xbf16>, vector<32x128xf32> -> vector<32x128xf32>
    %179 = arith.addf %168, %178 : vector<32x128xf32>
    %cst_103 = arith.constant 0.000000e+00 : f32
    %180 = vector.broadcast %cst_103 : f32 to vector<3x64xf32>
    %181 = vector.extract_strided_slice %115 {offsets = [3, 0], sizes = [29, 64], strides = [1, 1]} : vector<32x64xf32> to vector<29x64xf32>
    %182 = tpu.concatenate %181, %180 in 0 : vector<29x64xf32>, vector<3x64xf32> -> vector<32x64xf32>
    %183 = vector.extract_strided_slice %120 {offsets = [0, 6], sizes = [32, 1], strides = [1, 1]} : vector<32x9xf32> to vector<32x1xf32>
    %184 = vector.broadcast %183 : vector<32x1xf32> to vector<32x64xf32>
    %185 = arith.mulf %182, %184 : vector<32x64xf32>
    %186 = arith.truncf %185 : vector<32x64xf32> to vector<32x64xbf16>
    %c0_104 = arith.constant 0 : index
    %c6_105 = arith.constant 6 : index
    %c0_106 = arith.constant 0 : index
    %c0_107 = arith.constant 0 : index
    %187 = vector.load %arg11[%c0_104, %c6_105, %c0_106, %c0_107] : memref<1x9x64x128xbf16, #tpu.memory_space<vmem>>, vector<1x1x64x128xbf16>
    %188 = vector.shape_cast %187 : vector<1x1x64x128xbf16> to vector<64x128xbf16>
    %cst_108 = arith.constant dense<0.000000e+00> : vector<32x128xf32>
    %189 = tpu.matmul %186, %188, %cst_108 {dimension_numbers = #tpu.dot_dimension_numbers<[1], [0], [0], [1], [0, 0, 1, 1], [], []>} : vector<32x64xbf16>, vector<64x128xbf16>, vector<32x128xf32> -> vector<32x128xf32>
    %190 = arith.addf %179, %189 : vector<32x128xf32>
    %cst_109 = arith.constant 0.000000e+00 : f32
    %191 = vector.broadcast %cst_109 : f32 to vector<4x64xf32>
    %192 = vector.extract_strided_slice %115 {offsets = [4, 0], sizes = [28, 64], strides = [1, 1]} : vector<32x64xf32> to vector<28x64xf32>
    %193 = tpu.concatenate %192, %191 in 0 : vector<28x64xf32>, vector<4x64xf32> -> vector<32x64xf32>
    %194 = vector.extract_strided_slice %120 {offsets = [0, 7], sizes = [32, 1], strides = [1, 1]} : vector<32x9xf32> to vector<32x1xf32>
    %195 = vector.broadcast %194 : vector<32x1xf32> to vector<32x64xf32>
    %196 = arith.mulf %193, %195 : vector<32x64xf32>
    %197 = arith.truncf %196 : vector<32x64xf32> to vector<32x64xbf16>
    %c0_110 = arith.constant 0 : index
    %c7_111 = arith.constant 7 : index
    %c0_112 = arith.constant 0 : index
    %c0_113 = arith.constant 0 : index
    %198 = vector.load %arg11[%c0_110, %c7_111, %c0_112, %c0_113] : memref<1x9x64x128xbf16, #tpu.memory_space<vmem>>, vector<1x1x64x128xbf16>
    %199 = vector.shape_cast %198 : vector<1x1x64x128xbf16> to vector<64x128xbf16>
    %cst_114 = arith.constant dense<0.000000e+00> : vector<32x128xf32>
    %200 = tpu.matmul %197, %199, %cst_114 {dimension_numbers = #tpu.dot_dimension_numbers<[1], [0], [0], [1], [0, 0, 1, 1], [], []>} : vector<32x64xbf16>, vector<64x128xbf16>, vector<32x128xf32> -> vector<32x128xf32>
    %201 = arith.addf %190, %200 : vector<32x128xf32>
    %cst_115 = arith.constant 0.000000e+00 : f32
    %202 = vector.broadcast %cst_115 : f32 to vector<5x64xf32>
    %203 = vector.extract_strided_slice %115 {offsets = [5, 0], sizes = [27, 64], strides = [1, 1]} : vector<32x64xf32> to vector<27x64xf32>
    %204 = tpu.concatenate %203, %202 in 0 : vector<27x64xf32>, vector<5x64xf32> -> vector<32x64xf32>
    %205 = vector.extract_strided_slice %120 {offsets = [0, 8], sizes = [32, 1], strides = [1, 1]} : vector<32x9xf32> to vector<32x1xf32>
    %206 = vector.broadcast %205 : vector<32x1xf32> to vector<32x64xf32>
    %207 = arith.mulf %204, %206 : vector<32x64xf32>
    %208 = arith.truncf %207 : vector<32x64xf32> to vector<32x64xbf16>
    %c0_116 = arith.constant 0 : index
    %c8_117 = arith.constant 8 : index
    %c0_118 = arith.constant 0 : index
    %c0_119 = arith.constant 0 : index
    %209 = vector.load %arg11[%c0_116, %c8_117, %c0_118, %c0_119] : memref<1x9x64x128xbf16, #tpu.memory_space<vmem>>, vector<1x1x64x128xbf16>
    %210 = vector.shape_cast %209 : vector<1x1x64x128xbf16> to vector<64x128xbf16>
    %cst_120 = arith.constant dense<0.000000e+00> : vector<32x128xf32>
    %211 = tpu.matmul %208, %210, %cst_120 {dimension_numbers = #tpu.dot_dimension_numbers<[1], [0], [0], [1], [0, 0, 1, 1], [], []>} : vector<32x64xbf16>, vector<64x128xbf16>, vector<32x128xf32> -> vector<32x128xf32>
    %212 = arith.addf %201, %211 : vector<32x128xf32>
    %213 = vector.broadcast %117 : vector<1x128xf32> to vector<32x128xf32>
    %214 = arith.addf %212, %213 : vector<32x128xf32>
    %cst_121 = arith.constant 0.000000e+00 : f32
    %215 = vector.broadcast %cst_121 : f32 to vector<32x128xf32>
    %216 = arith.maximumf %214, %215 : vector<32x128xf32>
    %217 = vector.broadcast %119 : vector<1x128xf32> to vector<32x128xf32>
    %218 = arith.addf %216, %217 : vector<32x128xf32>
    %c0_122 = arith.constant 0 : index
    %c0_123 = arith.constant 0 : index
    %219 = vector.load %arg6[%c0_122, %c0_123] : memref<8x32xbf16, #tpu.memory_space<vmem>>, vector<8x32xbf16>
    %cst_124 = arith.constant 0.000000e+00 : f32
    %220 = vector.broadcast %cst_124 : f32 to vector<1x128xf32>
    %221 = vector.extract_strided_slice %218 {offsets = [1, 0], sizes = [31, 128], strides = [1, 1]} : vector<32x128xf32> to vector<31x128xf32>
    %222 = tpu.concatenate %221, %220 in 0 : vector<31x128xf32>, vector<1x128xf32> -> vector<32x128xf32>
    %223 = arith.maximumf %218, %222 : vector<32x128xf32>
    %cst_125 = arith.constant 0.000000e+00 : f32
    %224 = vector.broadcast %cst_125 : f32 to vector<4x128xf32>
    %225 = vector.extract_strided_slice %223 {offsets = [4, 0], sizes = [28, 128], strides = [1, 1]} : vector<32x128xf32> to vector<28x128xf32>
    %226 = tpu.concatenate %225, %224 in 0 : vector<28x128xf32>, vector<4x128xf32> -> vector<32x128xf32>
    %227 = arith.maximumf %223, %226 : vector<32x128xf32>
    %228 = arith.truncf %227 : vector<32x128xf32> to vector<32x128xbf16>
    %cst_126 = arith.constant dense<0.000000e+00> : vector<8x128xf32>
    %229 = tpu.matmul %219, %228, %cst_126 {dimension_numbers = #tpu.dot_dimension_numbers<[1], [0], [0], [1], [0, 0, 1, 1], [], []>} : vector<8x32xbf16>, vector<32x128xbf16>, vector<8x128xf32> -> vector<8x128xf32>
    %c0_127 = arith.constant 0 : index
    %c0_128 = arith.constant 0 : index
    %c0_129 = arith.constant 0 : index
    %230 = vector.load %arg15[%c0_127, %c0_128, %c0_129] : memref<1x1x128xf32, #tpu.memory_space<vmem>>, vector<1x1x128xf32>
    %231 = vector.shape_cast %230 : vector<1x1x128xf32> to vector<1x128xf32>
    %c0_130 = arith.constant 0 : index
    %c0_131 = arith.constant 0 : index
    %c0_132 = arith.constant 0 : index
    %232 = vector.load %arg16[%c0_130, %c0_131, %c0_132] : memref<1x1x128xf32, #tpu.memory_space<vmem>>, vector<1x1x128xf32>
    %233 = vector.shape_cast %232 : vector<1x1x128xf32> to vector<1x128xf32>
    %c0_133 = arith.constant 0 : index
    %c0_134 = arith.constant 0 : index
    %234 = vector.load %arg4[%c0_133, %c0_134] : memref<8x9xf32, #tpu.memory_space<vmem>>, vector<8x9xf32>
    %235 = arith.truncf %229 : vector<8x128xf32> to vector<8x128xbf16>
    %c0_135 = arith.constant 0 : index
    %c4_136 = arith.constant 4 : index
    %c0_137 = arith.constant 0 : index
    %c0_138 = arith.constant 0 : index
    %236 = vector.load %arg14[%c0_135, %c4_136, %c0_137, %c0_138] : memref<1x9x128x128xbf16, #tpu.memory_space<vmem>>, vector<1x1x128x128xbf16>
    %237 = vector.shape_cast %236 : vector<1x1x128x128xbf16> to vector<128x128xbf16>
    %cst_139 = arith.constant dense<0.000000e+00> : vector<8x128xf32>
    %238 = tpu.matmul %235, %237, %cst_139 {dimension_numbers = #tpu.dot_dimension_numbers<[1], [0], [0], [1], [0, 0, 1, 1], [], []>} : vector<8x128xbf16>, vector<128x128xbf16>, vector<8x128xf32> -> vector<8x128xf32>
    %cst_140 = arith.constant 0.000000e+00 : f32
    %239 = vector.broadcast %cst_140 : f32 to vector<3x128xf32>
    %240 = vector.extract_strided_slice %229 {offsets = [0, 0], sizes = [5, 128], strides = [1, 1]} : vector<8x128xf32> to vector<5x128xf32>
    %241 = tpu.concatenate %239, %240 in 0 : vector<3x128xf32>, vector<5x128xf32> -> vector<8x128xf32>
    %242 = vector.extract_strided_slice %234 {offsets = [0, 0], sizes = [8, 1], strides = [1, 1]} : vector<8x9xf32> to vector<8x1xf32>
    %243 = vector.broadcast %242 : vector<8x1xf32> to vector<8x128xf32>
    %244 = arith.mulf %241, %243 : vector<8x128xf32>
    %245 = arith.truncf %244 : vector<8x128xf32> to vector<8x128xbf16>
    %c0_141 = arith.constant 0 : index
    %c0_142 = arith.constant 0 : index
    %c0_143 = arith.constant 0 : index
    %c0_144 = arith.constant 0 : index
    %246 = vector.load %arg14[%c0_141, %c0_142, %c0_143, %c0_144] : memref<1x9x128x128xbf16, #tpu.memory_space<vmem>>, vector<1x1x128x128xbf16>
    %247 = vector.shape_cast %246 : vector<1x1x128x128xbf16> to vector<128x128xbf16>
    %cst_145 = arith.constant dense<0.000000e+00> : vector<8x128xf32>
    %248 = tpu.matmul %245, %247, %cst_145 {dimension_numbers = #tpu.dot_dimension_numbers<[1], [0], [0], [1], [0, 0, 1, 1], [], []>} : vector<8x128xbf16>, vector<128x128xbf16>, vector<8x128xf32> -> vector<8x128xf32>
    %249 = arith.addf %238, %248 : vector<8x128xf32>
    %cst_146 = arith.constant 0.000000e+00 : f32
    %250 = vector.broadcast %cst_146 : f32 to vector<2x128xf32>
    %251 = vector.extract_strided_slice %229 {offsets = [0, 0], sizes = [6, 128], strides = [1, 1]} : vector<8x128xf32> to vector<6x128xf32>
    %252 = tpu.concatenate %250, %251 in 0 : vector<2x128xf32>, vector<6x128xf32> -> vector<8x128xf32>
    %253 = vector.extract_strided_slice %234 {offsets = [0, 1], sizes = [8, 1], strides = [1, 1]} : vector<8x9xf32> to vector<8x1xf32>
    %254 = vector.broadcast %253 : vector<8x1xf32> to vector<8x128xf32>
    %255 = arith.mulf %252, %254 : vector<8x128xf32>
    %256 = arith.truncf %255 : vector<8x128xf32> to vector<8x128xbf16>
    %c0_147 = arith.constant 0 : index
    %c1_148 = arith.constant 1 : index
    %c0_149 = arith.constant 0 : index
    %c0_150 = arith.constant 0 : index
    %257 = vector.load %arg14[%c0_147, %c1_148, %c0_149, %c0_150] : memref<1x9x128x128xbf16, #tpu.memory_space<vmem>>, vector<1x1x128x128xbf16>
    %258 = vector.shape_cast %257 : vector<1x1x128x128xbf16> to vector<128x128xbf16>
    %cst_151 = arith.constant dense<0.000000e+00> : vector<8x128xf32>
    %259 = tpu.matmul %256, %258, %cst_151 {dimension_numbers = #tpu.dot_dimension_numbers<[1], [0], [0], [1], [0, 0, 1, 1], [], []>} : vector<8x128xbf16>, vector<128x128xbf16>, vector<8x128xf32> -> vector<8x128xf32>
    %260 = arith.addf %249, %259 : vector<8x128xf32>
    %cst_152 = arith.constant 0.000000e+00 : f32
    %261 = vector.broadcast %cst_152 : f32 to vector<1x128xf32>
    %262 = vector.extract_strided_slice %229 {offsets = [0, 0], sizes = [7, 128], strides = [1, 1]} : vector<8x128xf32> to vector<7x128xf32>
    %263 = tpu.concatenate %261, %262 in 0 : vector<1x128xf32>, vector<7x128xf32> -> vector<8x128xf32>
    %264 = vector.extract_strided_slice %234 {offsets = [0, 2], sizes = [8, 1], strides = [1, 1]} : vector<8x9xf32> to vector<8x1xf32>
    %265 = vector.broadcast %264 : vector<8x1xf32> to vector<8x128xf32>
    %266 = arith.mulf %263, %265 : vector<8x128xf32>
    %267 = arith.truncf %266 : vector<8x128xf32> to vector<8x128xbf16>
    %c0_153 = arith.constant 0 : index
    %c2_154 = arith.constant 2 : index
    %c0_155 = arith.constant 0 : index
    %c0_156 = arith.constant 0 : index
    %268 = vector.load %arg14[%c0_153, %c2_154, %c0_155, %c0_156] : memref<1x9x128x128xbf16, #tpu.memory_space<vmem>>, vector<1x1x128x128xbf16>
    %269 = vector.shape_cast %268 : vector<1x1x128x128xbf16> to vector<128x128xbf16>
    %cst_157 = arith.constant dense<0.000000e+00> : vector<8x128xf32>
    %270 = tpu.matmul %267, %269, %cst_157 {dimension_numbers = #tpu.dot_dimension_numbers<[1], [0], [0], [1], [0, 0, 1, 1], [], []>} : vector<8x128xbf16>, vector<128x128xbf16>, vector<8x128xf32> -> vector<8x128xf32>
    %271 = arith.addf %260, %270 : vector<8x128xf32>
    %cst_158 = arith.constant 0.000000e+00 : f32
    %272 = vector.broadcast %cst_158 : f32 to vector<1x128xf32>
    %273 = vector.extract_strided_slice %229 {offsets = [0, 0], sizes = [7, 128], strides = [1, 1]} : vector<8x128xf32> to vector<7x128xf32>
    %274 = tpu.concatenate %272, %273 in 0 : vector<1x128xf32>, vector<7x128xf32> -> vector<8x128xf32>
    %275 = vector.extract_strided_slice %234 {offsets = [0, 3], sizes = [8, 1], strides = [1, 1]} : vector<8x9xf32> to vector<8x1xf32>
    %276 = vector.broadcast %275 : vector<8x1xf32> to vector<8x128xf32>
    %277 = arith.mulf %274, %276 : vector<8x128xf32>
    %278 = arith.truncf %277 : vector<8x128xf32> to vector<8x128xbf16>
    %c0_159 = arith.constant 0 : index
    %c3_160 = arith.constant 3 : index
    %c0_161 = arith.constant 0 : index
    %c0_162 = arith.constant 0 : index
    %279 = vector.load %arg14[%c0_159, %c3_160, %c0_161, %c0_162] : memref<1x9x128x128xbf16, #tpu.memory_space<vmem>>, vector<1x1x128x128xbf16>
    %280 = vector.shape_cast %279 : vector<1x1x128x128xbf16> to vector<128x128xbf16>
    %cst_163 = arith.constant dense<0.000000e+00> : vector<8x128xf32>
    %281 = tpu.matmul %278, %280, %cst_163 {dimension_numbers = #tpu.dot_dimension_numbers<[1], [0], [0], [1], [0, 0, 1, 1], [], []>} : vector<8x128xbf16>, vector<128x128xbf16>, vector<8x128xf32> -> vector<8x128xf32>
    %282 = arith.addf %271, %281 : vector<8x128xf32>
    %cst_164 = arith.constant 0.000000e+00 : f32
    %283 = vector.broadcast %cst_164 : f32 to vector<1x128xf32>
    %284 = vector.extract_strided_slice %229 {offsets = [1, 0], sizes = [7, 128], strides = [1, 1]} : vector<8x128xf32> to vector<7x128xf32>
    %285 = tpu.concatenate %284, %283 in 0 : vector<7x128xf32>, vector<1x128xf32> -> vector<8x128xf32>
    %286 = vector.extract_strided_slice %234 {offsets = [0, 5], sizes = [8, 1], strides = [1, 1]} : vector<8x9xf32> to vector<8x1xf32>
    %287 = vector.broadcast %286 : vector<8x1xf32> to vector<8x128xf32>
    %288 = arith.mulf %285, %287 : vector<8x128xf32>
    %289 = arith.truncf %288 : vector<8x128xf32> to vector<8x128xbf16>
    %c0_165 = arith.constant 0 : index
    %c5_166 = arith.constant 5 : index
    %c0_167 = arith.constant 0 : index
    %c0_168 = arith.constant 0 : index
    %290 = vector.load %arg14[%c0_165, %c5_166, %c0_167, %c0_168] : memref<1x9x128x128xbf16, #tpu.memory_space<vmem>>, vector<1x1x128x128xbf16>
    %291 = vector.shape_cast %290 : vector<1x1x128x128xbf16> to vector<128x128xbf16>
    %cst_169 = arith.constant dense<0.000000e+00> : vector<8x128xf32>
    %292 = tpu.matmul %289, %291, %cst_169 {dimension_numbers = #tpu.dot_dimension_numbers<[1], [0], [0], [1], [0, 0, 1, 1], [], []>} : vector<8x128xbf16>, vector<128x128xbf16>, vector<8x128xf32> -> vector<8x128xf32>
    %293 = arith.addf %282, %292 : vector<8x128xf32>
    %cst_170 = arith.constant 0.000000e+00 : f32
    %294 = vector.broadcast %cst_170 : f32 to vector<1x128xf32>
    %295 = vector.extract_strided_slice %229 {offsets = [1, 0], sizes = [7, 128], strides = [1, 1]} : vector<8x128xf32> to vector<7x128xf32>
    %296 = tpu.concatenate %295, %294 in 0 : vector<7x128xf32>, vector<1x128xf32> -> vector<8x128xf32>
    %297 = vector.extract_strided_slice %234 {offsets = [0, 6], sizes = [8, 1], strides = [1, 1]} : vector<8x9xf32> to vector<8x1xf32>
    %298 = vector.broadcast %297 : vector<8x1xf32> to vector<8x128xf32>
    %299 = arith.mulf %296, %298 : vector<8x128xf32>
    %300 = arith.truncf %299 : vector<8x128xf32> to vector<8x128xbf16>
    %c0_171 = arith.constant 0 : index
    %c6_172 = arith.constant 6 : index
    %c0_173 = arith.constant 0 : index
    %c0_174 = arith.constant 0 : index
    %301 = vector.load %arg14[%c0_171, %c6_172, %c0_173, %c0_174] : memref<1x9x128x128xbf16, #tpu.memory_space<vmem>>, vector<1x1x128x128xbf16>
    %302 = vector.shape_cast %301 : vector<1x1x128x128xbf16> to vector<128x128xbf16>
    %cst_175 = arith.constant dense<0.000000e+00> : vector<8x128xf32>
    %303 = tpu.matmul %300, %302, %cst_175 {dimension_numbers = #tpu.dot_dimension_numbers<[1], [0], [0], [1], [0, 0, 1, 1], [], []>} : vector<8x128xbf16>, vector<128x128xbf16>, vector<8x128xf32> -> vector<8x128xf32>
    %304 = arith.addf %293, %303 : vector<8x128xf32>
    %cst_176 = arith.constant 0.000000e+00 : f32
    %305 = vector.broadcast %cst_176 : f32 to vector<2x128xf32>
    %306 = vector.extract_strided_slice %229 {offsets = [2, 0], sizes = [6, 128], strides = [1, 1]} : vector<8x128xf32> to vector<6x128xf32>
    %307 = tpu.concatenate %306, %305 in 0 : vector<6x128xf32>, vector<2x128xf32> -> vector<8x128xf32>
    %308 = vector.extract_strided_slice %234 {offsets = [0, 7], sizes = [8, 1], strides = [1, 1]} : vector<8x9xf32> to vector<8x1xf32>
    %309 = vector.broadcast %308 : vector<8x1xf32> to vector<8x128xf32>
    %310 = arith.mulf %307, %309 : vector<8x128xf32>
    %311 = arith.truncf %310 : vector<8x128xf32> to vector<8x128xbf16>
    %c0_177 = arith.constant 0 : index
    %c7_178 = arith.constant 7 : index
    %c0_179 = arith.constant 0 : index
    %c0_180 = arith.constant 0 : index
    %312 = vector.load %arg14[%c0_177, %c7_178, %c0_179, %c0_180] : memref<1x9x128x128xbf16, #tpu.memory_space<vmem>>, vector<1x1x128x128xbf16>
    %313 = vector.shape_cast %312 : vector<1x1x128x128xbf16> to vector<128x128xbf16>
    %cst_181 = arith.constant dense<0.000000e+00> : vector<8x128xf32>
    %314 = tpu.matmul %311, %313, %cst_181 {dimension_numbers = #tpu.dot_dimension_numbers<[1], [0], [0], [1], [0, 0, 1, 1], [], []>} : vector<8x128xbf16>, vector<128x128xbf16>, vector<8x128xf32> -> vector<8x128xf32>
    %315 = arith.addf %304, %314 : vector<8x128xf32>
    %cst_182 = arith.constant 0.000000e+00 : f32
    %316 = vector.broadcast %cst_182 : f32 to vector<3x128xf32>
    %317 = vector.extract_strided_slice %229 {offsets = [3, 0], sizes = [5, 128], strides = [1, 1]} : vector<8x128xf32> to vector<5x128xf32>
    %318 = tpu.concatenate %317, %316 in 0 : vector<5x128xf32>, vector<3x128xf32> -> vector<8x128xf32>
    %319 = vector.extract_strided_slice %234 {offsets = [0, 8], sizes = [8, 1], strides = [1, 1]} : vector<8x9xf32> to vector<8x1xf32>
    %320 = vector.broadcast %319 : vector<8x1xf32> to vector<8x128xf32>
    %321 = arith.mulf %318, %320 : vector<8x128xf32>
    %322 = arith.truncf %321 : vector<8x128xf32> to vector<8x128xbf16>
    %c0_183 = arith.constant 0 : index
    %c8_184 = arith.constant 8 : index
    %c0_185 = arith.constant 0 : index
    %c0_186 = arith.constant 0 : index
    %323 = vector.load %arg14[%c0_183, %c8_184, %c0_185, %c0_186] : memref<1x9x128x128xbf16, #tpu.memory_space<vmem>>, vector<1x1x128x128xbf16>
    %324 = vector.shape_cast %323 : vector<1x1x128x128xbf16> to vector<128x128xbf16>
    %cst_187 = arith.constant dense<0.000000e+00> : vector<8x128xf32>
    %325 = tpu.matmul %322, %324, %cst_187 {dimension_numbers = #tpu.dot_dimension_numbers<[1], [0], [0], [1], [0, 0, 1, 1], [], []>} : vector<8x128xbf16>, vector<128x128xbf16>, vector<8x128xf32> -> vector<8x128xf32>
    %326 = arith.addf %315, %325 : vector<8x128xf32>
    %327 = vector.broadcast %231 : vector<1x128xf32> to vector<8x128xf32>
    %328 = arith.addf %326, %327 : vector<8x128xf32>
    %cst_188 = arith.constant 0.000000e+00 : f32
    %329 = vector.broadcast %cst_188 : f32 to vector<8x128xf32>
    %330 = arith.maximumf %328, %329 : vector<8x128xf32>
    %331 = vector.broadcast %233 : vector<1x128xf32> to vector<8x128xf32>
    %332 = arith.addf %330, %331 : vector<8x128xf32>
    %c0_189 = arith.constant 0 : index
    %c0_190 = arith.constant 0 : index
    %333 = vector.load %arg7[%c0_189, %c0_190] : memref<2x8xbf16, #tpu.memory_space<vmem>>, vector<2x8xbf16>
    %cst_191 = arith.constant 0.000000e+00 : f32
    %334 = vector.broadcast %cst_191 : f32 to vector<1x128xf32>
    %335 = vector.extract_strided_slice %332 {offsets = [1, 0], sizes = [7, 128], strides = [1, 1]} : vector<8x128xf32> to vector<7x128xf32>
    %336 = tpu.concatenate %335, %334 in 0 : vector<7x128xf32>, vector<1x128xf32> -> vector<8x128xf32>
    %337 = arith.maximumf %332, %336 : vector<8x128xf32>
    %cst_192 = arith.constant 0.000000e+00 : f32
    %338 = vector.broadcast %cst_192 : f32 to vector<2x128xf32>
    %339 = vector.extract_strided_slice %337 {offsets = [2, 0], sizes = [6, 128], strides = [1, 1]} : vector<8x128xf32> to vector<6x128xf32>
    %340 = tpu.concatenate %339, %338 in 0 : vector<6x128xf32>, vector<2x128xf32> -> vector<8x128xf32>
    %341 = arith.maximumf %337, %340 : vector<8x128xf32>
    %342 = arith.truncf %341 : vector<8x128xf32> to vector<8x128xbf16>
    %cst_193 = arith.constant dense<0.000000e+00> : vector<2x128xf32>
    %343 = tpu.matmul %333, %342, %cst_193 {dimension_numbers = #tpu.dot_dimension_numbers<[1], [0], [0], [1], [0, 0, 1, 1], [], []>} : vector<2x8xbf16>, vector<8x128xbf16>, vector<2x128xf32> -> vector<2x128xf32>
    %344 = arith.truncf %343 : vector<2x128xf32> to vector<2x128xbf16>
    %c0_194 = arith.constant 0 : index
    %c0_195 = arith.constant 0 : index
    %c0_196 = arith.constant 0 : index
    %345 = vector.load %arg17[%c0_194, %c0_195, %c0_196] : memref<1x128x128xbf16, #tpu.memory_space<vmem>>, vector<1x128x128xbf16>
    %346 = vector.shape_cast %345 : vector<1x128x128xbf16> to vector<128x128xbf16>
    %cst_197 = arith.constant dense<0.000000e+00> : vector<2x128xf32>
    %347 = tpu.matmul %344, %346, %cst_197 {dimension_numbers = #tpu.dot_dimension_numbers<[1], [0], [0], [1], [0, 0, 1, 1], [], []>} : vector<2x128xbf16>, vector<128x128xbf16>, vector<2x128xf32> -> vector<2x128xf32>
    %c0_198 = arith.constant 0 : index
    %c0_199 = arith.constant 0 : index
    %c0_200 = arith.constant 0 : index
    %348 = vector.load %arg18[%c0_198, %c0_199, %c0_200] : memref<1x1x128xf32, #tpu.memory_space<vmem>>, vector<1x1x128xf32>
    %349 = vector.shape_cast %348 : vector<1x1x128xf32> to vector<1x128xf32>
    %350 = vector.broadcast %349 : vector<1x128xf32> to vector<2x128xf32>
    %351 = arith.addf %347, %350 : vector<2x128xf32>
    %c0_201 = arith.constant 0 : index
    %c0_202 = arith.constant 0 : index
    %c0_203 = arith.constant 0 : index
    %352 = vector.load %arg19[%c0_201, %c0_202, %c0_203] : memref<1x2x128xf32, #tpu.memory_space<vmem>>, vector<1x2x128xf32>
    %353 = vector.shape_cast %352 : vector<1x2x128xf32> to vector<2x128xf32>
    %354 = vector.shape_cast %351 : vector<2x128xf32> to vector<1x2x128xf32>
    tpu.vector_store %arg19[%c0_201, %c0_202, %c0_203], %354 {strides = array<i32>} : memref<1x2x128xf32, #tpu.memory_space<vmem>>, vector<1x2x128xf32>,
    return
  }
  func.func @transform_0(%arg0: i32) -> (i32, i32, i32) {
    %c0_i32 = arith.constant 0 : i32
    %c0_i32_0 = arith.constant 0 : i32
    %c0_i32_1 = arith.constant 0 : i32
    return %arg0, %c0_i32, %c0_i32_0 : i32, i32, i32
  }
  func.func @transform_1(%arg0: i32) -> (i32, i32) {
    %c0_i32 = arith.constant 0 : i32
    %c0_i32_0 = arith.constant 0 : i32
    %c0_i32_1 = arith.constant 0 : i32
    return %c0_i32, %c0_i32_0 : i32, i32
  }
  func.func @transform_2(%arg0: i32) -> (i32, i32) {
    %c0_i32 = arith.constant 0 : i32
    %c0_i32_0 = arith.constant 0 : i32
    %c0_i32_1 = arith.constant 0 : i32
    return %c0_i32, %c0_i32_0 : i32, i32
  }
  func.func @transform_3(%arg0: i32) -> (i32, i32) {
    %c0_i32 = arith.constant 0 : i32
    %c0_i32_0 = arith.constant 0 : i32
    %c0_i32_1 = arith.constant 0 : i32
    return %c0_i32, %c0_i32_0 : i32, i32
  }
  func.func @transform_4(%arg0: i32) -> (i32, i32) {
    %c0_i32 = arith.constant 0 : i32
    %c0_i32_0 = arith.constant 0 : i32
    %c0_i32_1 = arith.constant 0 : i32
    return %c0_i32, %c0_i32_0 : i32, i32
  }
  func.func @transform_5(%arg0: i32) -> (i32, i32) {
    %c0_i32 = arith.constant 0 : i32
    %c0_i32_0 = arith.constant 0 : i32
    %c0_i32_1 = arith.constant 0 : i32
    return %c0_i32, %c0_i32_0 : i32, i32
  }
  func.func @transform_6(%arg0: i32) -> (i32, i32) {
    %c0_i32 = arith.constant 0 : i32
    %c0_i32_0 = arith.constant 0 : i32
    %c0_i32_1 = arith.constant 0 : i32
    return %c0_i32, %c0_i32_0 : i32, i32
  }
  func.func @transform_7(%arg0: i32) -> (i32, i32, i32, i32) {
    %c0_i32 = arith.constant 0 : i32
    %c0_i32_0 = arith.constant 0 : i32
    %c0_i32_1 = arith.constant 0 : i32
    %c0_i32_2 = arith.constant 0 : i32
    return %arg0, %c0_i32, %c0_i32_0, %c0_i32_1 : i32, i32, i32, i32
  }
  func.func @transform_8(%arg0: i32) -> (i32, i32, i32) {
    %c0_i32 = arith.constant 0 : i32
    %c0_i32_0 = arith.constant 0 : i32
    %c0_i32_1 = arith.constant 0 : i32
    return %arg0, %c0_i32, %c0_i32_0 : i32, i32, i32
  }
  func.func @transform_9(%arg0: i32) -> (i32, i32, i32) {
    %c0_i32 = arith.constant 0 : i32
    %c0_i32_0 = arith.constant 0 : i32
    %c0_i32_1 = arith.constant 0 : i32
    return %arg0, %c0_i32, %c0_i32_0 : i32, i32, i32
  }
  func.func @transform_10(%arg0: i32) -> (i32, i32, i32, i32) {
    %c0_i32 = arith.constant 0 : i32
    %c0_i32_0 = arith.constant 0 : i32
    %c0_i32_1 = arith.constant 0 : i32
    %c0_i32_2 = arith.constant 0 : i32
    return %arg0, %c0_i32, %c0_i32_0, %c0_i32_1 : i32, i32, i32, i32
  }
  func.func @transform_11(%arg0: i32) -> (i32, i32, i32) {
    %c0_i32 = arith.constant 0 : i32
    %c0_i32_0 = arith.constant 0 : i32
    %c0_i32_1 = arith.constant 0 : i32
    return %arg0, %c0_i32, %c0_i32_0 : i32, i32, i32
  }
  func.func @transform_12(%arg0: i32) -> (i32, i32, i32) {
    %c0_i32 = arith.constant 0 : i32
    %c0_i32_0 = arith.constant 0 : i32
    %c0_i32_1 = arith.constant 0 : i32
    return %arg0, %c0_i32, %c0_i32_0 : i32, i32, i32
  }
  func.func @transform_13(%arg0: i32) -> (i32, i32, i32, i32) {
    %c0_i32 = arith.constant 0 : i32
    %c0_i32_0 = arith.constant 0 : i32
    %c0_i32_1 = arith.constant 0 : i32
    %c0_i32_2 = arith.constant 0 : i32
    return %arg0, %c0_i32, %c0_i32_0, %c0_i32_1 : i32, i32, i32, i32
  }
  func.func @transform_14(%arg0: i32) -> (i32, i32, i32) {
    %c0_i32 = arith.constant 0 : i32
    %c0_i32_0 = arith.constant 0 : i32
    %c0_i32_1 = arith.constant 0 : i32
    return %arg0, %c0_i32, %c0_i32_0 : i32, i32, i32
  }
  func.func @transform_15(%arg0: i32) -> (i32, i32, i32) {
    %c0_i32 = arith.constant 0 : i32
    %c0_i32_0 = arith.constant 0 : i32
    %c0_i32_1 = arith.constant 0 : i32
    return %arg0, %c0_i32, %c0_i32_0 : i32, i32, i32
  }
  func.func @transform_16(%arg0: i32) -> (i32, i32, i32) {
    %c0_i32 = arith.constant 0 : i32
    %c0_i32_0 = arith.constant 0 : i32
    %c0_i32_1 = arith.constant 0 : i32
    return %arg0, %c0_i32, %c0_i32_0 : i32, i32, i32
  }
  func.func @transform_17(%arg0: i32) -> (i32, i32, i32) {
    %c0_i32 = arith.constant 0 : i32
    %c0_i32_0 = arith.constant 0 : i32
    %c0_i32_1 = arith.constant 0 : i32
    return %arg0, %c0_i32, %c0_i32_0 : i32, i32, i32
  }
  func.func @transform_18(%arg0: i32) -> (i32, i32, i32) {
    %c0_i32 = arith.constant 0 : i32
    %c0_i32_0 = arith.constant 0 : i32
    %c0_i32_1 = arith.constant 0 : i32
    return %arg0, %c0_i32, %c0_i32_0 : i32, i32, i32
  }
}

module attributes {stable_mosaic.version = 11 : i64} {
  func.func @_head_kernel(%arg0: memref<2x2x128xf32, #tpu.memory_space<vmem>>, %arg1: memref<128x128xbf16, #tpu.memory_space<vmem>>, %arg2: memref<128x128xbf16, #tpu.memory_space<vmem>>, %arg3: memref<1x128xf32, #tpu.memory_space<vmem>>, %arg4: memref<128x64xbf16, #tpu.memory_space<vmem>>, %arg5: memref<1x64xf32, #tpu.memory_space<vmem>>, %arg6: memref<64x10xbf16, #tpu.memory_space<vmem>>, %arg7: memref<1x10xf32, #tpu.memory_space<vmem>>, %arg8: memref<2x10xf32, #tpu.memory_space<vmem>>) attributes {dimension_semantics = [], scalar_prefetch = 0 : i64, scratch_operands = 0 : i64, tpu.core_type = #tpu.core_type<tc>} {
    %c0 = arith.constant 0 : index
    %c0_0 = arith.constant 0 : index
    %c0_1 = arith.constant 0 : index
    %0 = vector.load %arg0[%c0, %c0_0, %c0_1] : memref<2x2x128xf32, #tpu.memory_space<vmem>>, vector<1x2x128xf32>
    %1 = vector.shape_cast %0 : vector<1x2x128xf32> to vector<2x128xf32>
    %2 = arith.truncf %1 : vector<2x128xf32> to vector<2x128xbf16>
    %c1 = arith.constant 1 : index
    %c0_2 = arith.constant 0 : index
    %c0_3 = arith.constant 0 : index
    %3 = vector.load %arg0[%c1, %c0_2, %c0_3] : memref<2x2x128xf32, #tpu.memory_space<vmem>>, vector<1x2x128xf32>
    %4 = vector.shape_cast %3 : vector<1x2x128xf32> to vector<2x128xf32>
    %5 = arith.truncf %4 : vector<2x128xf32> to vector<2x128xbf16>
    %c0_4 = arith.constant 0 : index
    %c0_5 = arith.constant 0 : index
    %6 = vector.load %arg1[%c0_4, %c0_5] : memref<128x128xbf16, #tpu.memory_space<vmem>>, vector<128x128xbf16>
    %cst = arith.constant dense<0.000000e+00> : vector<2x128xf32>
    %7 = tpu.matmul %2, %6, %cst {dimension_numbers = #tpu.dot_dimension_numbers<[1], [0], [0], [1], [0, 0, 1, 1], [], []>} : vector<2x128xbf16>, vector<128x128xbf16>, vector<2x128xf32> -> vector<2x128xf32>
    %c0_6 = arith.constant 0 : index
    %c0_7 = arith.constant 0 : index
    %8 = vector.load %arg2[%c0_6, %c0_7] : memref<128x128xbf16, #tpu.memory_space<vmem>>, vector<128x128xbf16>
    %cst_8 = arith.constant dense<0.000000e+00> : vector<2x128xf32>
    %9 = tpu.matmul %5, %8, %cst_8 {dimension_numbers = #tpu.dot_dimension_numbers<[1], [0], [0], [1], [0, 0, 1, 1], [], []>} : vector<2x128xbf16>, vector<128x128xbf16>, vector<2x128xf32> -> vector<2x128xf32>
    %10 = arith.addf %7, %9 : vector<2x128xf32>
    %c0_9 = arith.constant 0 : index
    %c0_10 = arith.constant 0 : index
    %11 = vector.load %arg3[%c0_9, %c0_10] : memref<1x128xf32, #tpu.memory_space<vmem>>, vector<1x128xf32>
    %12 = vector.broadcast %11 : vector<1x128xf32> to vector<2x128xf32>
    %13 = arith.addf %10, %12 : vector<2x128xf32>
    %cst_11 = arith.constant 0.000000e+00 : f32
    %14 = vector.broadcast %cst_11 : f32 to vector<2x128xf32>
    %15 = arith.maximumf %13, %14 : vector<2x128xf32>
    %16 = arith.truncf %15 : vector<2x128xf32> to vector<2x128xbf16>
    %c0_12 = arith.constant 0 : index
    %c0_13 = arith.constant 0 : index
    %17 = vector.load %arg4[%c0_12, %c0_13] : memref<128x64xbf16, #tpu.memory_space<vmem>>, vector<128x64xbf16>
    %cst_14 = arith.constant dense<0.000000e+00> : vector<2x64xf32>
    %18 = tpu.matmul %16, %17, %cst_14 {dimension_numbers = #tpu.dot_dimension_numbers<[1], [0], [0], [1], [0, 0, 1, 1], [], []>} : vector<2x128xbf16>, vector<128x64xbf16>, vector<2x64xf32> -> vector<2x64xf32>
    %c0_15 = arith.constant 0 : index
    %c0_16 = arith.constant 0 : index
    %19 = vector.load %arg5[%c0_15, %c0_16] : memref<1x64xf32, #tpu.memory_space<vmem>>, vector<1x64xf32>
    %20 = vector.broadcast %19 : vector<1x64xf32> to vector<2x64xf32>
    %21 = arith.addf %18, %20 : vector<2x64xf32>
    %cst_17 = arith.constant 0.000000e+00 : f32
    %22 = vector.broadcast %cst_17 : f32 to vector<2x64xf32>
    %23 = arith.maximumf %21, %22 : vector<2x64xf32>
    %24 = arith.truncf %23 : vector<2x64xf32> to vector<2x64xbf16>
    %c0_18 = arith.constant 0 : index
    %c0_19 = arith.constant 0 : index
    %25 = vector.load %arg6[%c0_18, %c0_19] : memref<64x10xbf16, #tpu.memory_space<vmem>>, vector<64x10xbf16>
    %cst_20 = arith.constant dense<0.000000e+00> : vector<2x10xf32>
    %26 = tpu.matmul %24, %25, %cst_20 {dimension_numbers = #tpu.dot_dimension_numbers<[1], [0], [0], [1], [0, 0, 1, 1], [], []>} : vector<2x64xbf16>, vector<64x10xbf16>, vector<2x10xf32> -> vector<2x10xf32>
    %c0_21 = arith.constant 0 : index
    %c0_22 = arith.constant 0 : index
    %27 = vector.load %arg7[%c0_21, %c0_22] : memref<1x10xf32, #tpu.memory_space<vmem>>, vector<1x10xf32>
    %28 = vector.broadcast %27 : vector<1x10xf32> to vector<2x10xf32>
    %29 = arith.addf %26, %28 : vector<2x10xf32>
    %cst_23 = arith.constant 0.000000e+00 : f32
    %30 = vector.broadcast %cst_23 : f32 to vector<2x10xf32>
    %31 = arith.maximumf %29, %30 : vector<2x10xf32>
    %cst_24 = arith.constant dense<0xFF800000> : vector<2xf32>
    %32 = vector.multi_reduction <maximumf>, %31, %cst_24 [1] : vector<2x10xf32> to vector<2xf32>
    %33 = vector.shape_cast %32 : vector<2xf32> to vector<2x1xf32>
    %34 = vector.broadcast %33 : vector<2x1xf32> to vector<2x10xf32>
    %35 = arith.subf %31, %34 : vector<2x10xf32>
    %36 = math.exp %35 : vector<2x10xf32>
    %cst_25 = arith.constant dense<0.000000e+00> : vector<2xf32>
    %37 = vector.multi_reduction <add>, %36, %cst_25 [1] : vector<2x10xf32> to vector<2xf32>
    %38 = vector.shape_cast %37 : vector<2xf32> to vector<2x1xf32>
    %39 = vector.broadcast %38 : vector<2x1xf32> to vector<2x10xf32>
    %40 = arith.divf %36, %39 : vector<2x10xf32>
    %c0_26 = arith.constant 0 : index
    %c0_27 = arith.constant 0 : index
    %41 = vector.load %arg8[%c0_26, %c0_27] : memref<2x10xf32, #tpu.memory_space<vmem>>, vector<2x10xf32>
    tpu.vector_store %arg8[%c0_26, %c0_27], %40 {strides = array<i32>} : memref<2x10xf32, #tpu.memory_space<vmem>>, vector<2x10xf32>,
    return
  }
}

</mosaic_0001>

<bundles_post_ra>
// kernel: forward.3
= control target key start
LH: loop header
LB: loop body
LE: loop exit
PB: predicated region body
PF: predicated region fallthrough
CT: control target
= control target key end

     0   :  { %s703_s0 = inlined_call_operand.vmem [shape: f32[2,2,128], index: 0, kind: input, shape index: {}]   ;;  %s704_s1 = inlined_call_operand.vmem [shape: bf16[128,128], index: 1, kind: input, shape index: {}]   ;;  %s705_s2 = inlined_call_operand.vmem [shape: bf16[128,128], index: 2, kind: input, shape index: {}]   ;;  %s706_s3 = inlined_call_operand.vmem [shape: f32[1,128], index: 3, kind: input, shape index: {}]   ;;  %s707_s4 = inlined_call_operand.vmem [shape: bf16[128,64], index: 4, kind: input, shape index: {}]   ;;  %s708_s5 = inlined_call_operand.vmem [shape: f32[1,64], index: 5, kind: input, shape index: {}]   ;;  %s709_s6 = inlined_call_operand.vmem [shape: bf16[64,10], index: 6, kind: input, shape index: {}]   ;;  %s710_s7 = inlined_call_operand.vmem [shape: f32[1,10], index: 7, kind: input, shape index: {}]   ;;  %s711_s8 = inlined_call_operand.hbm [shape: f32[2,10], index: 8, kind: output, shape index: {}]  }
   0x1   :  { %v505_v0 = vld [vmem:[%s705_s2 + $0x38] sm:$0xff]  ;;  %v504_v2 = vld [vmem:[%s705_s2 + $0x30] sm:$0xff]  ;;  %v503_v4 = vld [vmem:[%s705_s2 + $0x28] sm:$0xff] }
   0x2   :  { %v497_v1 = vld [vmem:[%s704_s1 + $0x38] sm:$0xff]  ;;  %116 = vmatpush.bf16.msra.mxu0 %v505_v0  ;;  %v496_v3 = vld [vmem:[%s704_s1 + $0x30] sm:$0xff]  ;;  %v495_v5 = vld [vmem:[%s704_s1 + $0x28] sm:$0xff] }
   0x3   :  { %177 = vmatpush.bf16.msra.mxu1 %v497_v1  ;;  %v513_v6 = vld [vmem:[%s707_s4 + $0x38] sm:$0xff]  ;;  %v512_v7 = vld [vmem:[%s707_s4 + $0x30] sm:$0xff] }
   0x4   :  { %265 = vmatpush.bf16.msra.mxu2 %v513_v6 }
   0x6   :  { %117 = vmatpush.bf16.msra.mxu0 %v504_v2 }
   0x7   :  { %178 = vmatpush.bf16.msra.mxu1 %v496_v3 }
   0x8   :  { %13 = vsyncpa [#allocation3], 0  ;;  %v502_v8 = vld [vmem:[%s705_s2 + $0x20] sm:$0xff]  ;;  %266 = vmatpush.bf16.msra.mxu2 %v512_v7  ;;  %v511_v10 = vld [vmem:[%s707_s4 + $0x28] sm:$0xff]  ;;  %vm316_vm0 = vcmask 523264   ;;  %vm334_vm1 = vcmask 74752  }
   0x9   :  { %v494_v9 = vld [vmem:[%s704_s1 + $0x20] sm:$0xff]  ;;  %v501_v11 = vld [vmem:[%s705_s2 + $0x18] sm:$0xff]  ;;  %v500_v14 = vld [vmem:[%s705_s2 + $0x10] sm:$0xff]  ;;  %s367_s23 = sshll.u32 %s711_s8, 4  ;;  %s368_s23 = int_to_ptr.hbm [resolvable:$true] %s367_s23 }
   0xa   :  { %118 = vmatpush.bf16.msra.mxu0 %v503_v4  ;;  %v493_v12 = vld [vmem:[%s704_s1 + $0x18] sm:$0xff]  ;;  %v510_v13 = vld [vmem:[%s707_s4 + $0x20] sm:$0xff]  ;;  %v492_v15 = vld [vmem:[%s704_s1 + $0x10] sm:$0xff] }
   0xb   :  { %179 = vmatpush.bf16.msra.mxu1 %v495_v5  ;;  %v509_v16 = vld [vmem:[%s707_s4 + $0x18] sm:$0xff]  ;;  %v499_v17 = vld [vmem:[%s705_s2 + $0x8] sm:$0xff]  ;;  %v508_v19 = vld [vmem:[%s707_s4 + $0x10] sm:$0xff] }
   0xc   :  { %267 = vmatpush.bf16.msra.mxu2 %v511_v10  ;;  %v491_v18 = vld [vmem:[%s704_s1 + $0x8] sm:$0xff]  ;;  %v498_v20 = vld [vmem:[%s705_s2] sm:$0xff]  ;;  %v517_v28 = vld [vmem:[%s709_s6 + $0x18] sm:$0xff] }
   0xd   :  { %v490_v21 = vld [vmem:[%s704_s1] sm:$0xff]  ;;  %v507_v26 = vld [vmem:[%s707_s4 + $0x8] sm:$0xff]  ;;  %324 = vmatpush.bf16.msra.mxu3 %v517_v28  ;;  %v516_v29 = vld [vmem:[%s709_s6 + $0x10] sm:$0xff] }
   0xe   :  { %119 = vmatpush.bf16.msra.mxu0 %v502_v8  ;;  %v376_v22 = vld [vmem:[%s703_s0 + $0x2] sm:$0x3]  ;;  %v31_v23 = vld [vmem:[%s703_s0] sm:$0x3]  ;;  %v515_v39 = vld [vmem:[%s709_s6 + $0x8] sm:$0xff] }
   0xf   :  { %180 = vmatpush.bf16.msra.mxu1 %v494_v9  ;;  %v35_v24 = vpack.c.bf16 %v376_v22, %v376_v22  ;;  %v32_v25 = vpack.c.bf16 %v31_v23, %v31_v23  ;;  %v506_v27 = vld [vmem:[%s707_s4] sm:$0xff] }
  0x10   :  { %268 = vmatpush.bf16.msra.mxu2 %v510_v13  ;;  %v519_v30 = vld [vmem:[%s706_s3] ss:$0 sm:$0xff] }
  0x11   :  { %325 = vmatpush.bf16.msra.mxu3 %v516_v29  ;;  %v514_v40 = vld [vmem:[%s709_s6] sm:$0xff] }
  0x12   :  { %120 = vmatpush.bf16.msra.mxu0 %v501_v11  ;;  %v520_v41 = vld [vmem:[%s708_s5] ss:$0 sm:$0xff]  ;;  %s552_s5 = smov [#allocation2]  }
  0x13   :  { %181 = vmatpush.bf16.msra.mxu1 %v493_v12  ;;  %v521_v47 = vld [vmem:[%s710_s7] ss:$0 sm:$0xff]  ;;  %s365_s6 = sshll.u32 %s552_s5, 4  ;;  %s366_s6 = int_to_ptr.vmem [resolvable:$true] %s365_s6 }
  0x14   :  { %269 = vmatpush.bf16.msra.mxu2 %v509_v16 }
  0x15   :  { %326 = vmatpush.bf16.msra.mxu3 %v515_v39 }
  0x16   :  { %121 = vmatpush.bf16.msra.mxu0 %v500_v14 }
  0x17   :  { %182 = vmatpush.bf16.msra.mxu1 %v492_v15 }
  0x18   :  { %270 = vmatpush.bf16.msra.mxu2 %v508_v19 }
  0x19   :  { %327 = vmatpush.bf16.msra.mxu3 %v514_v40 }
  0x1a   :  { %122 = vmatpush.bf16.msra.mxu0 %v499_v17 }
  0x1b   :  { %183 = vmatpush.bf16.msra.mxu1 %v491_v18 }
  0x1c   :  { %271 = vmatpush.bf16.msra.mxu2 %v507_v26 }
  0x1e   :  { %123 = vmatpush.bf16.msra.mxu0 %v498_v20 }
  0x1f   :  { %184 = vmatpush.bf16.msra.mxu1 %v490_v21 }
  0x20   :  { %272 = vmatpush.bf16.msra.mxu2 %v506_v27 }
  0x21   :  { %124 = vmatmul.bf16.vlgmr.msra.gmra.mxu0 %v35_v24 }
  0x22   :  { %185 = vmatmul.bf16.vlgmr.msra.gmra.mxu1 %v32_v25 }
  0x9e   :  { %v125_v31 = vpop.f32.mrf.mxu0 }
  0x9f   :  { %v186_v32 = vpop.f32.mrf.mxu1 }
  0xa0   :  { %v187_v33 = vadd.f32 %v186_v32, %v125_v31 }
  0xa2   :  { %v194_v34 = vadd.f32 %v519_v30, %v187_v33 }
  0xa4   :  { %v195_v35 = vmax.f32 %v194_v34, 0.0 }
  0xa6   :  { %v196_v36 = vpack.c.bf16 %v195_v35, %v195_v35  ;;  %v127_v37 = vpop.f32.mrf.mxu0 }
  0xa7   :  { %v188_v38 = vpop.f32.mrf.mxu1 }
  0xa8   :  { %273 = vmatmul.bf16.vlgmr.msra.gmra.mxu2 %v196_v36 }
 0x12b   :  { %v274_v42 = vpop.f32.mrf.mxu2 }
 0x12c   :  { %v275_v43 = vadd.f32 %v520_v41, %v274_v42 }
 0x12e   :  { %v278_v44 = vmax.f32 %v275_v43, 0.0 }
 0x130   :  { %v279_v45 = vpack.c.bf16 %v278_v44, %v278_v44 }
 0x132   :  { %489 = vmatmul.msk.bf16.vlgmr.msra.gmra.mxu3 %vm316_vm0, %v279_v45 }
 0x133   :  { %v276_v46 = vpop.f32.mrf.mxu2 }
 0x1b5   :  { %v329_v48 = vpop.f32.mrf.mxu3 }
 0x1b6   :  { %v330_v49 = vadd.f32 %v521_v47, %v329_v48 }
 0x1b8   :  { %v333_v50 = vmax.f32 %v330_v49, 0.0 }
 0x1ba   :  { %v335_v51 = vsel %vm334_vm1, %v333_v50, -inf }
 0x1bb   :  { %336 = vmax.xlane.f32.xlu0 %v335_v51 }
 0x1bd   :  { %v331_v52 = vpop.f32.mrf.mxu3 }
 0x22e   :  { %v337_v53 = vpop.xlane.xlu0 %336 }
 0x22f   :  { %v338_v54 = vsub.f32 %v333_v50, %v337_v53 }
 0x231   :  { %v339_v55 = vmul.f32 1.442695, %v338_v54 }
 0x233   :  { %522 = vpow2.f32 %v339_v55 }
 0x239   :  { %v523_v56 = vpop.eup %522 }
 0x23a   :  { %v341_v57 = vsel %vm334_vm1, %v523_v56, 0.0 }
 0x23b   :  { %342 = vadd.xlane.f32.xlu0 %v341_v57 }
 0x2ae   :  { %v343_v58 = vpop.xlane.xlu0 %342 }
 0x2af   :  { %524 = vrcp.f32 %v343_v58  ;;  %v355_v62 = vand.u32 2147483648, %v343_v58  ;;  %v353_v0 = vand.u32 2147483647, %v343_v58  ;;  %vm349_vm3 = vweird.f32 %v343_v58 }
 0x2b1   :  { %v356_v2 = vor.u32 1.1754944e-38, %v355_v62  ;;  %vm354_vm5 = vcmp.eq.f32.partialorder %v353_v0, 8.507059e+37 }
 0x2b5   :  { %v525_v59 = vpop.eup %524 }
 0x2b6   :  { %v345_v60 = vmul.f32 %v525_v59, %v343_v58  ;;  %vm350_vm2 = vweird.f32 %v525_v59 }
 0x2b7   :  { %vm351_vm4 = vmor %vm349_vm3, %vm350_vm2 }
 0x2b8   :  { %v346_v61 = vsub.f32 1.0, %v345_v60 }
 0x2ba   :  { %v347_v63 = vmul.f32 %v525_v59, %v346_v61 }
 0x2bc   :  { %v348_v1 = vadd.f32 %v525_v59, %v347_v63 }
 0x2be   :  { %v352_v3 = vsel %vm351_vm4, %v525_v59, %v348_v1 }
 0x2bf   :  { %v357_v4 = vsel %vm354_vm5, %v356_v2, %v352_v3 }
 0x2c0   :  { %v358_v5 = vmul.f32 %v523_v56, %v357_v4 }
 0x2c2   :  { %359 = vst.msk [vmem:[#allocation2] sm:$0x3] %vm334_vm1, %v358_v5 }
 0x2c3   :  { %370 = dma.vmem_to_hbm [thread:$0]  %s366_s6, 32, %s368_s23, [#allocation3]  }
 0x2c4   :  { %550 = dma.done.wait [#allocation3], 32  }
 0x2c5   :  { %551 = vsyncadd [#allocation3], 4294967264 }
 0x2c6   :  { %375 = vsyncpa [#allocation3], 1 }

// kernel: forward.2
= control target key start
LH: loop header
LB: loop body
LE: loop exit
PB: predicated region body
PF: predicated region fallthrough
CT: control target
= control target key end

     0   :  { %s7630_s0 = inlined_call_operand.vmem [shape: f32[2,128,8], index: 0, kind: input, shape index: {}]   ;;  %s7631_s1 = inlined_call_operand.vmem [shape: f32[128,9], index: 1, kind: input, shape index: {}]   ;;  %s7632_s2 = inlined_call_operand.vmem [shape: f32[32,9], index: 2, kind: input, shape index: {}]   ;;  %s7633_s3 = inlined_call_operand.vmem [shape: f32[8,9], index: 3, kind: input, shape index: {}]   ;;  %s7634_s4 = inlined_call_operand.vmem [shape: bf16[32,128], index: 4, kind: input, shape index: {}]   ;;  %s7635_s5 = inlined_call_operand.vmem [shape: bf16[8,32], index: 5, kind: input, shape index: {}]   ;;  %s7636_s6 = inlined_call_operand.vmem [shape: bf16[2,8], index: 6, kind: input, shape index: {}]   ;;  %s7637_s7 = inlined_call_operand.vmem [shape: bf16[2,9,8,64], index: 7, kind: input, shape index: {}]   ;;  %s7638_s8 = inlined_call_operand.vmem [shape: f32[2,1,64], index: 8, kind: input, shape index: {}]   ;;  %s7639_s9 = inlined_call_operand.vmem [shape: f32[2,1,64], index: 9, kind: input, shape index: {}]   ;;  %s7640_s10 = inlined_call_operand.vmem [shape: bf16[2,9,64,128], index: 10, kind: input, shape index: {}]   ;;  %s7641_s11 = inlined_call_operand.vmem [shape: f32[2,1,128], index: 11, kind: input, shape index: {}]   ;;  %s7642_s12 = inlined_call_operand.vmem [shape: f32[2,1,128], index: 12, kind: input, shape index: {}]   ;;  %s7643_s13 = inlined_call_operand.hbm [shape: bf16[2,9,128,128], index: 13, kind: input, shape index: {}]   ;;  %s7644_s14 = inlined_call_operand.vmem [shape: f32[2,1,128], index: 14, kind: input, shape index: {}]   ;;  %s7645_s15 = inlined_call_operand.vmem [shape: f32[2,1,128], index: 15, kind: input, shape index: {}]   ;;  %s7646_s16 = inlined_call_operand.vmem [shape: bf16[2,128,128], index: 16, kind: input, shape index: {}]   ;;  %s7647_s17 = inlined_call_operand.vmem [shape: f32[2,1,128], index: 17, kind: input, shape index: {}]   ;;  %s7648_s18 = inlined_call_operand.vmem [shape: f32[2,2,128], index: 18, kind: output, shape index: {}]  }
   0x1   :  { %7698 = sst [smem:[#allocation32_spill]] %s7630_s0 }
   0x2   :  { %7699 = sst [smem:[#allocation33_spill]] %s7631_s1 }
   0x3   :  { %7700 = sst [smem:[#allocation34_spill]] %s7632_s2 }
   0x4   :  { %7701 = sst [smem:[#allocation35_spill]] %s7636_s6 }
   0x5   :  { %7702 = sst [smem:[#allocation36_spill]] %s7646_s16 }
   0x6   :  { %7703 = sst [smem:[#allocation37_spill]] %s7647_s17 }
   0x7   :  { %7704 = sst [smem:[#allocation38_spill]] %s7648_s18 }
   0x8   :  { %23 = vsyncpa [#allocation3], 0 }
   0x9   :  { %25 = vsyncpa [#allocation3 + $0x1], 0  ;;  %s5925_s27 = smov 0   ;;  %s5927_s28 = smov 0  }
   0xa   :  { %s5929_s29 = smov 0   ;;  %s5931_s30 = smov 0  }
   0xb LB: > { %7705 = sst [smem:[#allocation5_spill]] %s5814_s29  ;;  %s5944_s0 = sadd.s32 4294967295, %s5818_s30   ;;  %s5818_s30 = sphi %s5931_s30, %s7795_s30   ;;  %s5814_s29 = sphi %s5929_s29, %s7797_s29   ;;  %s5810_s28 = sphi %s5927_s28, %s7799_s28   ;;  %s5806_s27 = sphi %s5925_s27, %s7798_s27  }
   0xc   : > { %s5947_s19 = sadd.s32 1, %s5818_s30   ;;  %s346_s20 = sadd.s32 1, %s5814_s29 }
   0xd   : > { %7706 = sst [smem:[#allocation6_spill]] %s5947_s19  ;;  %s343_s1 = ssub.s32 %s5818_s30, %s5947_s19 }
   0xe   : > { %p344_p0 = scmp.eq.s32.totalorder %s343_s1, 0  ;;  %p353_p1 = scmp.ne.s32.totalorder %s5814_s29, %s5810_s28 }
   0xf   : > { %p354_p2 = scmp.eq.s32.totalorder %s5818_s30, 0  ;;  %p359_p3 = scmp.ne.s32.totalorder %s5810_s28, %s5806_s27 }
  0x10   : > { %s5957_s21 = scalar_select %p344_p0, %s5814_s29, %s346_s20  }
  0x11   : > { %p355_p4 = por %p354_p2, %p353_p1  ;;  %p360_p5 = scmp.eq.s32.totalorder %s5944_s0, 0 }
  0x12   : > { %7707 = sst [smem:[#allocation7_spill]] %s5957_s21  ;;  %p5542_p6 = scmp.lt.s32.totalorder %s5818_s30, 2 }
  0x13   : > { %p5961_p7 = por %p360_p5, %p359_p3  ;;  %s579_s2 = sand.u32 1, %s5814_s29  }
  0x14   : > { %s5531_s23 = smul.u32 576, %s579_s2  ;;  %p5967_p8 = pnand %p5542_p6, %p355_p4 }
  0x15   : > { %s5532_s24 = smul.u32 576, %s5818_s30  ;;  %p4636_p9 = scmp.ge.s32.totalorder %s5818_s30, 1 }
  0x16   : > { %s583_s20 = scalar_lea.vmem [#allocation2], %s5531_s23  ;;  %s580_s18 = scalar_lea.sflag [#allocation3], %s579_s2 }
  0x17   : > { %s588_s27 = scalar_lea.hbm %s7643_s13, %s5532_s24  ;;  %s591_s21 = sshll.u32 %s583_s20, 4  ;;  %s592_s21 = int_to_ptr.vmem [resolvable:$true] %s591_s21 }
  0x18   : > { %s589_s19 = sshll.u32 %s588_s27, 4  ;;  %p5758_p11 = pneg %p5967_p8  ;;  %s590_s19 = int_to_ptr.hbm [resolvable:$true] %s589_s19 }
  0x19   : > { %s5754_s17 = sshra.s32 %s590_s19, 4  ;;  %s5761_s26 = scalar_lea.hbm %s7643_s13, 1152  ;;  %s5755_s17 = int_to_ptr.hbm [resolvable:$true] %s5754_s17 }
  0x1a   : > { %s5756_s29 = scalar_lea.hbm %s5755_s17, 576  ;;  %p5762_p0 = scmp.lt.s32.totalorder %s5755_s17, %s7643_s13 }
  0x1b   : > { %p5757_p10 = scmp.ne.s32.totalorder %s5755_s17, %s5756_s29  ;;  %p5763_p1 = scmp.lt.s32.totalorder %s5761_s26, %s5756_s29 }
  0x1d   : > { %p5759_p12 = pnand %p5758_p11, %p5757_p10  ;;  %p5764_p2 = por %p5763_p1, %p5762_p0 }
  0x1f   : > { %p5760_p13 = pneg %p5759_p12 }
  0x21   : > { %p5765_p3 = pnand %p5764_p2, %p5760_p13 }
  0x23   : > { %5768 = shalt.err (!%p5765_p3)
}
  0x24   : > { %s5820_s2 = smov 64   ;;  %s5821_s1 = smov 4  }
  0x25   : > { %5541 = dma.hbm_to_vmem [thread:$0]  (!%p5967_p8), %s590_s19, 9216, %s592_s21, %s580_s18, %s5820_s2, %s5820_s2, %s5821_s1  }
  0x26   : > { %p625_p4 = scmp.lt.s32.totalorder %s5818_s30, 3 }
  0x28   : > { %p626_p5 = pnand %p4636_p9, %p625_p4 }
  0x2a   : > { %629 = sbr.rel (%p626_p5) target bundleno = 1769 (0x6e9), region = 92 }
  0x2f   : > { %s631_s6 = sand.u32 1, %s5810_s28  }
  0x30   : > { %s5533_s16 = smul.u32 576, %s631_s6  ;;  %s632_s17 = scalar_lea.sflag [#allocation3], %s631_s6 }
  0x32   : > { %s5989_s29 = scalar_lea.vmem [#allocation2], %s5533_s16 }
  0x33   : > { %5801 = dma.done.wait (%p5961_p7), %s632_s17, 9216  }
  0x34   : > { %5803 = vsyncadd (%p5961_p7), %s632_s17, 4294958080  ;;  %v7654_v0 = vmov 0   ;;  %s7710_s19 = sld [smem:[#allocation33_spill]]  ;;  %v7665_v17 = vmov 1   ;;  %v7663_v18 = vmov 2   ;;  %v7661_v19 = vmov 3  }
  0x35   : > { %5587 = vset.pattern.permute.xlu2 %v7654_v0  ;;  %5586 = vset.pattern.permute.xlu1 %v7654_v0  ;;  %p729_p6 = scmp.lt.s32.totalorder %s5944_s0, 1  ;;  %s7711_s23 = sld [smem:[#allocation32_spill]]  ;;  %vm1010_vm0 = vcmask 1043456   ;;  %vm985_vm1 = vcmask 64512   ;;  %vm834_vm2 = vcmask 1040384   ;;  %vm1322_vm3 = vcmask 1046528  }
  0x36   : > { %5585 = vset.pattern.permute.xlu0 %v7654_v0  ;;  %s7788_s17 = sld [smem:[#allocation34_spill]]  ;;  %vm2684_vm4 = vcmask 1044480   ;;  %vm2755_vm5 = vcmask 523264   ;;  %vm2926_vm6 = vcmask 1042432   ;;  %vm3534_vm7 = vcmask 261120  }
  0x37   : > { %s7801_s0 = smov (!%p729_p6, %s5944_s0), 1  ;;  %vm3723_vm8 = vcmask 1041408   ;;  %vm4158_vm9 = vcmask 1045504  }
  0x38   : > { %s5534_s21 = smul.u32 36, %s7801_s0  ;;  %s5410_s25 = sshll.u32 %s7801_s0, 7 }
  0x39   : > { %s741_s16 = scalar_lea.vmem %s7638_s8, %s7801_s0  ;;  %s744_s30 = scalar_lea.vmem %s7639_s9, %s7801_s0 }
  0x3a   : > { %v6001_v1 = vld [vmem:[%s7710_s19 + $0x20] sm:$0xff]  ;;  %v6006_v2 = vld [vmem:[%s7710_s19 + $0x10] sm:$0xff]  ;;  %v6019_v4 = vld [vmem:[%s7710_s19 + $0x28] sm:$0xff]  ;;  %s6134_s20 = scalar_lea.vmem %s7637_s7, %s5534_s21  ;;  %s5535_s26 = smul.u32 288, %s7801_s0 }
  0x3b   : > { %v6011_v3 = vld [vmem:[%s7710_s19] sm:$0xff]  ;;  %902 = vperm.xlu2 %5587, %v6001_v1   ;;  %892 = vperm.xlu1 %5586, %v6006_v2   ;;  %v6024_v5 = vld [vmem:[%s7710_s19 + $0x18] sm:$0xff]  ;;  %v6029_v6 = vld [vmem:[%s7710_s19 + $0x8] sm:$0xff]  ;;  %s6139_s2 = scalar_lea.vmem %s7711_s23, %s5410_s25  ;;  %s752_s21 = scalar_lea.vmem %s7641_s11, %s7801_s0 }
  0x3c   : > { %882 = vperm.xlu0 %5585, %v6011_v3   ;;  %v6037_v7 = vld [vmem:[%s7710_s19 + $0x40] sm:$0xff]  ;;  %v6042_v8 = vld [vmem:[%s7710_s19 + $0x38] sm:$0xff]  ;;  %v6047_v9 = vld [vmem:[%s7710_s19 + $0x30] sm:$0xff]  ;;  %s755_s22 = scalar_lea.vmem %s7642_s12, %s7801_s0  ;;  %s7794_s23 = sld [smem:[#allocation38_spill]] }
  0x3d   : > { %v6055_v10 = vld [vmem:[%s7710_s19 + $0x58] sm:$0xff]  ;;  %v6060_v11 = vld [vmem:[%s7710_s19 + $0x50] sm:$0xff]  ;;  %v6065_v12 = vld [vmem:[%s7710_s19 + $0x48] sm:$0xff] }
  0x3e   : > { %v6073_v13 = vld [vmem:[%s7710_s19 + $0x70] sm:$0xff]  ;;  %v6078_v14 = vld [vmem:[%s7710_s19 + $0x68] sm:$0xff]  ;;  %v6083_v15 = vld [vmem:[%s7710_s19 + $0x60] sm:$0xff] }
  0x3f   : > { %v6091_v16 = vld [vmem:[%s7710_s19 + $0x78] sm:$0xff]  ;;  %v984_v21 = vld [vmem:[%s6134_s20] sm:$0xf]  ;;  %v4644_v22 = vld [vmem:[%s6134_s20 + $0x10] sm:$0xf] }
  0x40   : > { %v6148_v23 = vld [vmem:[%s6139_s2] sm:$0xff]  ;;  %v6151_v24 = vld [vmem:[%s6139_s2 + $0x8] sm:$0xff]  ;;  %v1012_v25 = vsel %vm1010_vm0, %v984_v21, 0  ;;  %v1088_v26 = vsel %vm1010_vm0, %v4644_v22, 0  ;;  %v6173_v30 = vld [vmem:[%s6139_s2 + $0x10] sm:$0xff] }
  0x41   : > { %7712 = vst [vmem:[#allocation8_spill] sm:$0xff] %v6151_v24  ;;  %1021 = vmatpush.bf16.msra.mxu0 %v1012_v25  ;;  %v809_v27 = vpack.c.bf16 %v6151_v24, %v6148_v23  ;;  %1097 = vmatpush.bf16.msra.mxu1 %v1088_v26  ;;  %v6176_v31 = vld [vmem:[%s6139_s2 + $0x18] sm:$0xff]  ;;  %v6181_v33 = vld [vmem:[%s6139_s2 + $0x70] sm:$0xff]  ;;  %v835_v39 = vrot.slane %v6148_v23, 7  ;;  %v4661_v46 = vld [vmem:[%s6134_s20 + $0x4] sm:$0xf] }
  0x42   : > { %5530 = vmatpush.bf16.msra.mxu2 %v1088_v26  ;;  %7713 = vst [vmem:[#allocation9_spill] sm:$0xff] %v6173_v30  ;;  %v810_v32 = vpack.c.bf16 %v6176_v31, %v6173_v30  ;;  %v6184_v34 = vld [vmem:[%s6139_s2 + $0x78] sm:$0xff]  ;;  %v6211_v47 = vld [vmem:[%s6139_s2 + $0x20] sm:$0xff]  ;;  %v6215_v48 = vld [vmem:[%s6139_s2 + $0x28] sm:$0xff]  ;;  %v1254_v49 = vsel %vm1010_vm0, %v4661_v46, 0  ;;  %v838_v55 = vrot.slane %v6173_v30, 7 }
  0x43   : > { %907 = vperm.xlu2 %5587, %v6019_v4   ;;  %897 = vperm.xlu1 %5586, %v6024_v5   ;;  %7714 = vst [vmem:[#allocation10_spill] sm:$0xff] %v6184_v34  ;;  %v816_v35 = vpack.c.bf16 %v6184_v34, %v6181_v33  ;;  %v6200_v40 = vsel %vm834_vm2, 0.0, %v835_v39  ;;  %v811_v51 = vpack.c.bf16 %v6215_v48, %v6211_v47  ;;  %v836_v56 = vrot.slane %v6151_v24, 7  ;;  %v4670_v57 = vld [vmem:[%s6134_s20 + $0x8] sm:$0xf]  ;;  %v6250_v22 = vld [vmem:[%s6139_s2 + $0x30] sm:$0xff] }
  0x44   : > { %887 = vperm.xlu0 %5585, %v6029_v6   ;;  %4653 = vmatmul.msk.bf16.vlgmr.msra.gmra.mxu1 %vm985_vm1, %v809_v27  ;;  %7715 = vst [vmem:[#allocation11_spill] sm:$0xff] %v6211_v47  ;;  %v1486_v58 = vsel %vm1010_vm0, %v4670_v57, 0  ;;  %v6253_v25 = vld [vmem:[%s6139_s2 + $0x38] sm:$0xff]  ;;  %v6288_v57 = vld [vmem:[%s6139_s2 + $0x48] sm:$0xff]  ;;  %v7658_v0 = vrot.slane %v6176_v31, 1 }
  0x45   : > { %4660 = vmatmul.msk.bf16.vlgmr.msra.gmra.mxu2 %vm985_vm1, %v816_v35  ;;  %v6236_v59 = vsel %vm834_vm2, %v836_v56, %v838_v55  ;;  %1495 = vmatpush.bf16.msra.mxu3 %v1486_v58  ;;  %v6239_v60 = vsel %vm834_vm2, %v835_v39, %v836_v56  ;;  %7716 = vst [vmem:[#allocation12_spill] sm:$0xff] %v6250_v22  ;;  %v840_v35 = vrot.slane %v6176_v31, 7  ;;  %v6291_v58 = vld [vmem:[%s6139_s2 + $0x40] sm:$0xff] }
  0x46   : > { %1263 = vmatpush.bf16.msrb.mxu2 %v1254_v49 }
  0x4b   : > { %922 = vperm.xlu2 %5587, %v6037_v7   ;;  %917 = vperm.xlu1 %5586, %v6042_v8  }
  0x4c   : > { %912 = vperm.xlu0 %5585, %v6047_v9  }
  0x53   : > { %937 = vperm.xlu2 %5587, %v6055_v10   ;;  %932 = vperm.xlu1 %5586, %v6060_v11  }
  0x54   : > { %927 = vperm.xlu0 %5585, %v6065_v12   ;;  %4654 = vmatmul.msk.bf16.gmra.mxu1 %vm985_vm1, %v810_v32  ;;  %v812_v32 = vpack.c.bf16 %v6253_v25, %v6250_v22 }
  0x5b   : > { %952 = vperm.xlu2 %5587, %v6073_v13   ;;  %947 = vperm.xlu1 %5586, %v6078_v14  }
  0x5c   : > { %942 = vperm.xlu0 %5585, %v6083_v15  }
  0x63   : > { %5588 = vset.pattern.permute.xlu1 %v7665_v17  ;;  %5589 = vset.pattern.permute.xlu2 %v7665_v17 }
  0x64   : > { %957 = vperm.xlu0 %5585, %v6091_v16   ;;  %1140 = vperm.xlu1 %5588, %v6011_v3  }
  0x65   : > { %1144 = vperm.xlu2 %5589, %v6029_v6   ;;  %4655 = vmatmul.msk.bf16.gmra.mxu1 %vm985_vm1, %v811_v51 }
  0x6c   : > { %5590 = vset.pattern.permute.xlu0 %v7663_v18  ;;  %5591 = vset.pattern.permute.xlu1 %v7663_v18 }
  0x6d   : > { %1372 = vperm.xlu0 %5590, %v6011_v3   ;;  %1376 = vperm.xlu1 %5591, %v6029_v6  }
  0x6e   : > { %5592 = vset.pattern.permute.xlu2 %v7661_v19 }
  0x6f   : > { %1557 = vperm.xlu2 %5592, %v6011_v3  }
  0x75   : > { %5595 = vset.pattern.permute.xlu0 %v7665_v17  ;;  %5593 = vset.pattern.permute.xlu1 %v7661_v19 }
  0x76   : > { %1152 = vperm.xlu0 %5595, %v6024_v5   ;;  %1561 = vperm.xlu1 %5593, %v6029_v6  }
  0x77   : > { %5594 = vset.pattern.permute.xlu2 %v7665_v17  ;;  %4656 = vmatmul.msk.bf16.gmra.mxu1 %vm985_vm1, %v812_v32  ;;  %v844_v32 = vrot.slane %v6215_v48, 7 }
  0x78   : > { %1148 = vperm.xlu2 %5594, %v6006_v2  }
  0x7e   : > { %1156 = vperm.xlu0 %5595, %v6001_v1   ;;  %5596 = vset.pattern.permute.xlu1 %v7663_v18 }
  0x7f   : > { %1380 = vperm.xlu1 %5596, %v6006_v2  }
  0x80   : > { %5597 = vset.pattern.permute.xlu2 %v7663_v18 }
  0x81   : > { %1384 = vperm.xlu2 %5597, %v6024_v5  }
  0x86   : > { %1184 = vperm.xlu0 %5595, %v6055_v10  }
  0x87   : > { %5598 = vset.pattern.permute.xlu1 %v7661_v19 }
  0x88   : > { %1565 = vperm.xlu1 %5598, %v6006_v2  }
  0x89   : > { %5599 = vset.pattern.permute.xlu2 %v7661_v19 }
  0x8a   : > { %1569 = vperm.xlu2 %5599, %v6024_v5  }
  0x8e   : > { %1188 = vperm.xlu0 %5595, %v6083_v15  }
  0x90   : > { %5600 = vset.pattern.permute.xlu1 %v7665_v17 }
  0x91   : > { %1160 = vperm.xlu1 %5600, %v6019_v4  }
  0x92   : > { %5601 = vset.pattern.permute.xlu2 %v7663_v18 }
  0x93   : > { %1388 = vperm.xlu2 %5601, %v6001_v1  }
  0x95   : > { %v6141_v20 = vpop.permute.xlu2 %902 }
  0x96   : > { %5618 = vset.pattern.permute.xlu0 %v7663_v18 }
  0x97   : > { %1392 = vperm.xlu0 %5618, %v6019_v4  }
  0x99   : > { %5602 = vset.pattern.permute.xlu1 %v7661_v19 }
  0x9a   : > { %1573 = vperm.xlu1 %5602, %v6001_v1  }
  0x9b   : > { %5603 = vset.pattern.permute.xlu2 %v7661_v19 }
  0x9c   : > { %1577 = vperm.xlu2 %5603, %v6019_v4  }
  0x9d   : > { %v6161_v28 = vpop.permute.xlu2 %907 }
  0x9f   : > { %1396 = vperm.xlu0 %5618, %v6047_v9  }
  0xa2   : > { %5604 = vset.pattern.permute.xlu1 %v7665_v17 }
  0xa3   : > { %1164 = vperm.xlu1 %5604, %v6047_v9  }
  0xa4   : > { %5605 = vset.pattern.permute.xlu2 %v7665_v17 }
  0xa5   : > { %v6168_v29 = vpop.permute.xlu2 %922  ;;  %1168 = vperm.xlu2 %5605, %v6042_v8  }
  0xa7   : > { %1424 = vperm.xlu0 %5618, %v6078_v14  }
  0xab   : > { %5606 = vset.pattern.permute.xlu1 %v7663_v18 }
  0xac   : > { %1400 = vperm.xlu1 %5606, %v6042_v8  }
  0xad   : > { %v6191_v36 = vpop.permute.xlu2 %937  ;;  %v893_v37 = vpop.permute.xlu1 %892  ;;  %5607 = vset.pattern.permute.xlu2 %v7661_v19 }
  0xae   : > { %v883_v38 = vpop.permute.xlu0 %882  ;;  %1581 = vperm.xlu2 %5607, %v6047_v9   ;;  %v962_v21 = vmul.f32 %v893_v37, %v6239_v60  ;;  %v842_v37 = vrot.slane %v6211_v47, 7 }
  0xaf   : > { %1428 = vperm.xlu0 %5618, %v6073_v13   ;;  %v960_v41 = vmul.f32 0.0, %v883_v38 }
  0xb4   : > { %5608 = vset.pattern.permute.xlu1 %v7665_v17 }
  0xb5   : > { %v898_v42 = vpop.permute.xlu1 %897  ;;  %1172 = vperm.xlu1 %5608, %v6037_v7   ;;  %v6204_v44 = vpop.permute.xlu2 %952 }
  0xb6   : > { %v888_v43 = vpop.permute.xlu0 %887  ;;  %5609 = vset.pattern.permute.xlu2 %v7665_v17  ;;  %v963_v61 = vmul.f32 %v898_v42, %v6236_v59  ;;  %v6276_v42 = vsel %vm834_vm2, %v840_v35, %v842_v37 }
  0xb7   : > { %v961_v45 = vmul.f32 %v888_v43, %v6200_v40  ;;  %5625 = vset.pattern.permute.xlu0 %v7661_v19  ;;  %1176 = vperm.xlu2 %5609, %v6065_v12   ;;  %v965_v46 = vmul.f32 %v6161_v28, %v6276_v42  ;;  %v1324_v28 = vrot.slane %v6151_v24, 1 }
  0xb8   : > { %1585 = vperm.xlu0 %5625, %v6042_v8   ;;  %v977_v26 = vpack.c.bf16 %v963_v61, %v962_v21 }
  0xb9   : > { %v976_v50 = vpack.c.bf16 %v961_v45, %v960_v41  ;;  %v6273_v41 = vsel %vm834_vm2, %v838_v55, %v840_v35  ;;  %v7656_v35 = vmov 8  }
  0xba   : > { %v964_v45 = vmul.f32 %v6141_v20, %v6273_v41  ;;  %v1323_v20 = vrot.slane %v6148_v23, 1 }
  0xbb   : > { %4645 = vmatmul.msk.bf16.vlgmr.msra.gmra.mxu0 %vm985_vm1, %v976_v50 }
  0xbc   : > { %v978_v56 = vpack.c.bf16 %v965_v46, %v964_v45 }
  0xbd   : > { %v6221_v52 = vpop.permute.xlu1 %917  ;;  %5610 = vset.pattern.permute.xlu1 %v7663_v18 }
  0xbe   : > { %v6225_v53 = vpop.permute.xlu0 %912  ;;  %1404 = vperm.xlu1 %5610, %v6037_v7  }
  0xbf   : > { %5611 = vset.pattern.permute.xlu2 %v7663_v18  ;;  %v1145_v54 = vpop.permute.xlu2 %1144 }
  0xc0   : > { %1589 = vperm.xlu0 %5625, %v6037_v7   ;;  %1408 = vperm.xlu2 %5611, %v6065_v12   ;;  %v1204_v49 = vmul.f32 %v1145_v54, %v6148_v23  ;;  %v813_v54 = vpack.c.bf16 %v6288_v57, %v6291_v58  ;;  %v1370_v23 = vsel %vm1322_vm3, 0.0, %v1323_v20 }
  0xc2   : > { %4657 = vmatmul.msk.bf16.gmra.mxu1 %vm985_vm1, %v813_v54 }
  0xc5   : > { %v6242_v62 = vpop.permute.xlu1 %932 }
  0xc6   : > { %v6244_v63 = vpop.permute.xlu0 %927  ;;  %5612 = vset.pattern.permute.xlu1 %v7661_v19 }
  0xc7   : > { %1593 = vperm.xlu1 %5612, %v6065_v12  }
  0xc8   : > { %5613 = vset.pattern.permute.xlu2 %v7665_v17  ;;  %1617 = vperm.xlu0 %5625, %v6091_v16  }
  0xc9   : > { %1180 = vperm.xlu2 %5613, %v6060_v11   ;;  %v6258_v27 = vpop.permute.xlu2 %1557 }
  0xcb   : > { %4646 = vmatmul.msk.bf16.gmra.mxu0 %vm985_vm1, %v977_v26  ;;  %v6304_v26 = vsel %vm1322_vm3, %v1323_v20, %v1324_v28 }
  0xcc   : > { %7717 = vst [vmem:[#allocation13_spill] sm:$0xff] %v6304_v26 }
  0xcd   : > { %v6265_v38 = vpop.permute.xlu1 %947 }
  0xce   : > { %v6268_v39 = vpop.permute.xlu0 %942 }
  0xcf   : > { %5614 = vset.pattern.permute.xlu1 %v7663_v18 }
  0xd0   : > { %1412 = vperm.xlu1 %5614, %v6060_v11   ;;  %5640 = vset.pattern.permute.xlu0 %v7656_v35 }
  0xd1   : > { %5615 = vset.pattern.permute.xlu2 %v7663_v18  ;;  %2297 = vperm.xlu0 %5640, %v6006_v2  }
  0xd2   : > { %1416 = vperm.xlu2 %5615, %v6055_v10   ;;  %v1149_v43 = vpop.permute.xlu2 %1148 }
  0xd6   : > { %v1141_v50 = vpop.permute.xlu1 %1140  ;;  %v6285_v51 = vpop.permute.xlu0 %957 }
  0xd7   : > { %v1203_v55 = vmul.f32 0.0, %v1141_v50 }
  0xd8   : > { %5616 = vset.pattern.permute.xlu1 %v7661_v19 }
  0xd9   : > { %v1219_v61 = vpack.c.bf16 %v1204_v49, %v1203_v55  ;;  %1597 = vperm.xlu1 %5616, %v6060_v11   ;;  %v846_v49 = vrot.slane %v6250_v22, 7 }
  0xda   : > { %5617 = vset.pattern.permute.xlu2 %v7661_v19 }
  0xdb   : > { %4647 = vmatmul.msk.bf16.gmra.mxu0 %vm985_vm1, %v978_v56  ;;  %4662 = vmatmul.msk.bf16.vlgmr.msrb.gmra.mxu2 %vm985_vm1, %v1219_v61  ;;  %v1385_v21 = vpop.permute.xlu2 %1384  ;;  %v6315_v55 = vsel %vm834_vm2, %v844_v32, %v846_v49  ;;  %v6318_v56 = vsel %vm834_vm2, %v842_v37, %v844_v32  ;;  %v1205_v37 = vmul.f32 %v1149_v43, %v6151_v24  ;;  %v7659_v32 = vmov 6  }
  0xdc   : > { %1601 = vperm.xlu2 %5617, %v6055_v10   ;;  %v967_v54 = vmul.f32 %v6221_v52, %v6315_v55  ;;  %5641 = vset.pattern.permute.xlu0 %v7659_v32 }
  0xdd   : > { %1937 = vperm.xlu0 %5641, %v6024_v5  }
  0xdf   : > { %v1377_v45 = vpop.permute.xlu1 %1376  ;;  %v1373_v46 = vpop.permute.xlu0 %1372 }
  0xe0   : > { %v1436_v10 = vmul.f32 %v1377_v45, %v6304_v26  ;;  %v1435_v50 = vmul.f32 %v1373_v46, %v1370_v23  ;;  %v966_v23 = vmul.f32 %v6225_v53, %v6318_v56  ;;  %v1326_v53 = vrot.slane %v6173_v30, 1 }
  0xe1   : > { %5619 = vset.pattern.permute.xlu1 %v7665_v17 }
  0xe2   : > { %v1451_v61 = vpack.c.bf16 %v1436_v10, %v1435_v50  ;;  %1192 = vperm.xlu1 %5619, %v6078_v14   ;;  %v6336_v10 = vld [vmem:[%s6139_s2 + $0x50] sm:$0xff]  ;;  %v979_v50 = vpack.c.bf16 %v967_v54, %v966_v23  ;;  %v6353_v54 = vsel %vm1322_vm3, %v1326_v53, %v7658_v0 }
  0xe3   : > { %7718 = vst [vmem:[#allocation14_spill] sm:$0xff] %v6353_v54 }
  0xe4   : > { %4671 = vmatmul.msk.bf16.vlgmr.msra.gmra.mxu3 %vm985_vm1, %v1451_v61  ;;  %5620 = vset.pattern.permute.xlu2 %v7663_v18  ;;  %v6323_v20 = vpop.permute.xlu2 %1569  ;;  %v6339_v61 = vld [vmem:[%s6139_s2 + $0x58] sm:$0xff] }
  0xe5   : > { %1420 = vperm.xlu2 %5620, %v6083_v15   ;;  %v814_v43 = vpack.c.bf16 %v6339_v61, %v6336_v10  ;;  %1949 = vperm.xlu0 %5641, %v6047_v9  }
  0xe7   : > { %4658 = vmatmul.msk.bf16.gmra.mxu1 %vm985_vm1, %v814_v43 }
  0xe8   : > { %v1153_v45 = vpop.permute.xlu0 %1152  ;;  %v6332_v46 = vpop.permute.xlu1 %1561 }
  0xe9   : > { %v1206_v52 = vmul.f32 %v1153_v45, %v6173_v30  ;;  %v850_v45 = vrot.slane %v6291_v58, 7  ;;  %v7723_v30 = vmov 6  }
  0xea   : > { %5621 = vset.pattern.permute.xlu1 %v7661_v19 }
  0xeb   : > { %v1220_v35 = vpack.c.bf16 %v1206_v52, %v1205_v37  ;;  %4648 = vmatmul.msk.bf16.gmra.mxu0 %vm985_vm1, %v979_v50  ;;  %1605 = vperm.xlu1 %5621, %v6083_v15   ;;  %v6362_v37 = vsel %vm1322_vm3, %v1324_v28, %v1326_v53  ;;  %v1438_v52 = vmul.f32 %v1385_v21, %v6353_v54 }
  0xec   : > { %7719 = vst [vmem:[#allocation15_spill] sm:$0xff] %v6362_v37 }
  0xed   : > { %4663 = vmatmul.msk.bf16.gmra.mxu2 %vm985_vm1, %v1220_v35  ;;  %5622 = vset.pattern.permute.xlu2 %v7661_v19  ;;  %v6356_v23 = vpop.permute.xlu2 %1388  ;;  %v848_v35 = vrot.slane %v6253_v25, 7 }
  0xee   : > { %1609 = vperm.xlu2 %5622, %v6078_v14  }
  0xef   : > { %v6368_v32 = vsel %vm834_vm2, %v848_v35, %v850_v45  ;;  %v6373_v28 = vsel %vm834_vm2, %v846_v49, %v848_v35  ;;  %v7667_v49 = vmov 5   ;;  %v6392_v35 = vld [vmem:[%s6139_s2 + $0x68] sm:$0xff] }
  0xf0   : > { %v1157_v50 = vpop.permute.xlu0 %1156  ;;  %7720 = vst [vmem:[#allocation16_spill] sm:$0xff] %v6368_v32  ;;  %v969_v21 = vmul.f32 %v6244_v63, %v6368_v32  ;;  %5650 = vset.pattern.permute.xlu0 %v7667_v49 }
  0xf1   : > { %v1381_v0 = vpop.permute.xlu1 %1380  ;;  %1741 = vperm.xlu0 %5650, %v6011_v3  }
  0xf2   : > { %v1437_v19 = vmul.f32 %v1381_v0, %v6362_v37  ;;  %v968_v0 = vmul.f32 %v6168_v29, %v6373_v28  ;;  %v7721_v29 = vmov 2  }
  0xf3   : > { %5623 = vset.pattern.permute.xlu1 %v7665_v17 }
  0xf4   : > { %v1452_v53 = vpack.c.bf16 %v1438_v52, %v1437_v19  ;;  %1196 = vperm.xlu1 %5623, %v6073_v13   ;;  %v6389_v19 = vld [vmem:[%s6139_s2 + $0x60] sm:$0xff]  ;;  %v980_v63 = vpack.c.bf16 %v969_v21, %v968_v0  ;;  %v852_v21 = vrot.slane %v6288_v57, 7  ;;  %v854_v0 = vrot.slane %v6336_v10, 7 }
  0xf6   : > { %4672 = vmatmul.msk.bf16.gmra.mxu3 %vm985_vm1, %v1452_v53  ;;  %5624 = vset.pattern.permute.xlu2 %v7665_v17  ;;  %v6380_v43 = vpop.permute.xlu2 %1577  ;;  %v815_v53 = vpack.c.bf16 %v6392_v35, %v6389_v19  ;;  %v7722_v17 = vmov 3   ;;  %v6417_v26 = vsel %vm834_vm2, %v852_v21, %v854_v0 }
  0xf7   : > { %1200 = vperm.xlu2 %5624, %v6091_v16  }
  0xf8   : > { %v6385_v18 = vpop.permute.xlu0 %1184  ;;  %4659 = vmatmul.msk.bf16.gmra.mxu1 %vm985_vm1, %v815_v53  ;;  %v1330_v53 = vrot.slane %v6211_v47, 1 }
  0xf9   : > { %1769 = vperm.xlu0 %5650, %v6042_v8  }
  0xfa   : > { %v6395_v52 = vpop.permute.xlu1 %1565 }
  0xfb   : > { %4649 = vmatmul.msk.bf16.gmra.mxu0 %vm985_vm1, %v980_v63  ;;  %v6411_v63 = vsel %vm834_vm2, %v850_v45, %v852_v21  ;;  %v971_v45 = vmul.f32 %v6191_v36, %v6417_v26 }
  0xfc   : > { %5626 = vset.pattern.permute.xlu1 %v7721_v29  ;;  %v1207_v29 = vmul.f32 %v1157_v50, %v6176_v31  ;;  %v7724_v50 = vrot.slane %v6176_v31, 1 }
  0xfd   : > { %1432 = vperm.xlu1 %5626, %v6091_v16  }
  0xfe   : > { %v6429_v34 = vsel %vm1322_vm3, %v7724_v50, %v1330_v53 }
  0xff   : > { %5627 = vset.pattern.permute.xlu2 %v7722_v17  ;;  %v1169_v49 = vpop.permute.xlu2 %1168  ;;  %v1332_v17 = vrot.slane %v6215_v48, 1  ;;  %7725 = vst [vmem:[#allocation17_spill] sm:$0xff] %v6429_v34  ;;  %v1439_v31 = vmul.f32 %v6356_v23, %v6429_v34  ;;  %v858_v23 = vrot.slane %v6389_v19, 7 }
 0x100   : > { %v6406_v54 = vpop.permute.xlu0 %1188  ;;  %1613 = vperm.xlu2 %5627, %v6073_v13   ;;  %v970_v13 = vmul.f32 %v6242_v62, %v6411_v63 }
 0x101   : > { %v6432_v21 = vsel %vm1322_vm3, %v1330_v53, %v1332_v17 }
 0x102   : > { %7726 = vst [vmem:[#allocation18_spill] sm:$0xff] %v6432_v21 }
 0x103   : > { %v1161_v37 = vpop.permute.xlu1 %1160 }
 0x104   : > { %v1208_v24 = vmul.f32 %v1161_v37, %v6211_v47 }
 0x105   : > { %5628 = vset.pattern.permute.xlu1 %v7723_v30 }
 0x106   : > { %v1221_v32 = vpack.c.bf16 %v1208_v24, %v1207_v29  ;;  %1925 = vperm.xlu1 %5628, %v6011_v3   ;;  %v981_v24 = vpack.c.bf16 %v971_v45, %v970_v13  ;;  %v7680_v29 = vmov 7   ;;  %v856_v13 = vrot.slane %v6339_v61, 7 }
 0x107   : > { %5655 = vset.pattern.permute.xlu0 %v7680_v29 }
 0x108   : > { %4664 = vmatmul.msk.bf16.gmra.mxu2 %vm985_vm1, %v1221_v32  ;;  %5629 = vset.pattern.permute.xlu2 %v7723_v30  ;;  %v6436_v62 = vpop.permute.xlu2 %1581  ;;  %v6454_v50 = vsel %vm834_vm2, %v856_v13, %v858_v23 }
 0x109   : > { %v1393_v37 = vpop.permute.xlu0 %1392  ;;  %1929 = vperm.xlu2 %5629, %v6029_v6   ;;  %2127 = vperm.xlu0 %5655, %v6019_v4  }
 0x10a   : > { %v1440_v36 = vmul.f32 %v1393_v37, %v6432_v21  ;;  %v1210_v37 = vmul.f32 %v1169_v49, %v6250_v22  ;;  %v1334_v21 = vrot.slane %v6250_v22, 1  ;;  %v1336_v49 = vrot.slane %v6253_v25, 1 }
 0x10b   : > { %4650 = vmatmul.msk.bf16.gmra.mxu0 %vm985_vm1, %v981_v24  ;;  %v6457_v24 = vsel %vm834_vm2, %v854_v0, %v856_v13  ;;  %v7727_v13 = vmov 5  }
 0x10c   : > { %v1453_v32 = vpack.c.bf16 %v1440_v36, %v1439_v31  ;;  %v6445_v53 = vpop.permute.xlu1 %1573  ;;  %v973_v31 = vmul.f32 %v6265_v38, %v6454_v50  ;;  %v972_v36 = vmul.f32 %v6268_v39, %v6457_v24  ;;  %v6474_v47 = vsel %vm1322_vm3, %v1332_v17, %v1334_v21 }
 0x10d   : > { %v7728_v39 = vmov 8   ;;  %v7688_v17 = vrot.slane %v6181_v33, 7 }
 0x10e   : > { %4673 = vmatmul.msk.bf16.gmra.mxu3 %vm985_vm1, %v1453_v32  ;;  %5630 = vset.pattern.permute.xlu1 %v7680_v29  ;;  %v982_v38 = vpack.c.bf16 %v973_v31, %v972_v36  ;;  %v1099_v31 = vpop.f32.mrf.mxu1 }
 0x10f   : > { %2107 = vperm.xlu1 %5630, %v6011_v3  }
 0x111   : > { %5631 = vset.pattern.permute.xlu2 %v7680_v29  ;;  %v1177_v45 = vpop.permute.xlu2 %1176  ;;  %2139 = vperm.xlu0 %5655, %v6037_v7   ;;  %v4679_v29 = vld [vmem:[%s6134_s20 + $0xc] sm:$0xf] }
 0x112   : > { %2111 = vperm.xlu2 %5631, %v6029_v6   ;;  %v1671_v0 = vsel %vm1010_vm0, %v4679_v29, 0 }
 0x113   : > { %1680 = vmatpush.bf16.msrb.mxu0 %v1671_v0 }
 0x115   : > { %v1165_v32 = vpop.permute.xlu1 %1164 }
 0x116   : > { %v1209_v34 = vmul.f32 %v1165_v32, %v6215_v48  ;;  %v1397_v48 = vpop.permute.xlu0 %1396  ;;  %v860_v32 = vrot.slane %v6392_v35, 7 }
 0x117   : > { %5632 = vset.pattern.permute.xlu1 %v7727_v13  ;;  %v1441_v29 = vmul.f32 %v1397_v48, %v6474_v47 }
 0x118   : > { %v1222_v7 = vpack.c.bf16 %v1210_v37, %v1209_v34  ;;  %1745 = vperm.xlu1 %5632, %v6029_v6   ;;  %v6481_v34 = vsel %vm1322_vm3, %v1334_v21, %v1336_v49  ;;  %v6494_v21 = vsel %vm834_vm2, %v860_v32, %v7688_v17 }
 0x119   : > { %5664 = vset.pattern.permute.xlu0 %v7728_v39 }
 0x11a   : > { %4665 = vmatmul.msk.bf16.gmra.mxu2 %vm985_vm1, %v1222_v7  ;;  %5633 = vset.pattern.permute.xlu2 %v7728_v39  ;;  %v1409_v22 = vpop.permute.xlu2 %1408  ;;  %v975_v7 = vmul.f32 %v6285_v51, %v6494_v21  ;;  %v7729_v51 = vmov 7  }
 0x11b   : > { %4651 = vmatmul.msk.bf16.gmra.mxu0 %vm985_vm1, %v982_v38  ;;  %2289 = vperm.xlu2 %5633, %v6011_v3  }
 0x11c   : > { %2325 = vperm.xlu0 %5664, %v6065_v12   ;;  %v6499_v12 = vsel %vm834_vm2, %v858_v23, %v860_v32  ;;  %v1338_v23 = vrot.slane %v6291_v58, 1 }
 0x11d   : > { %v974_v38 = vmul.f32 %v6204_v44, %v6499_v12 }
 0x11e   : > { %v1401_v37 = vpop.permute.xlu1 %1400 }
 0x11f   : > { %v1442_v36 = vmul.f32 %v1401_v37, %v6481_v34  ;;  %v1340_v37 = vrot.slane %v6288_v57, 1  ;;  %v983_v32 = vpack.c.bf16 %v975_v7, %v974_v38 }
 0x120   : > { %5634 = vset.pattern.permute.xlu1 %v7728_v39 }
 0x121   : > { %v1454_v3 = vpack.c.bf16 %v1442_v36, %v1441_v29  ;;  %2293 = vperm.xlu1 %5634, %v6029_v6   ;;  %v1212_v6 = vmul.f32 %v1177_v45, %v6291_v58  ;;  %v6512_v36 = vpop.f32.mrf.mxu1 }
 0x123   : > { %4674 = vmatmul.msk.bf16.gmra.mxu3 %vm985_vm1, %v1454_v3  ;;  %5635 = vset.pattern.permute.xlu2 %v7723_v30  ;;  %v1181_v0 = vpop.permute.xlu2 %1180 }
 0x124   : > { %1933 = vperm.xlu2 %5635, %v6006_v2   ;;  %5669 = vset.pattern.permute.xlu0 %v7727_v13 }
 0x125   : > { %1781 = vperm.xlu0 %5669, %v6060_v11   ;;  %v6519_v11 = vsel %vm1322_vm3, %v1338_v23, %v1340_v37 }
 0x126   : > { %v1444_v58 = vmul.f32 %v1409_v22, %v6519_v11  ;;  %v1620_v22 = vmul.f32 %v6258_v27, %v6200_v40 }
 0x127   : > { %v1173_v48 = vpop.permute.xlu1 %1172 }
 0x128   : > { %v1211_v29 = vmul.f32 %v1173_v48, %v6253_v25  ;;  %v6524_v25 = vsel %vm1322_vm3, %v1336_v49, %v1338_v23  ;;  %v1214_v48 = vmul.f32 %v6385_v18, %v6336_v10  ;;  %v1213_v49 = vmul.f32 %v1181_v0, %v6288_v57  ;;  %v1425_v23 = vpop.permute.xlu0 %1424 }
 0x129   : > { %5636 = vset.pattern.permute.xlu1 %v7729_v51 }
 0x12a   : > { %v1223_v3 = vpack.c.bf16 %v1212_v6, %v1211_v29  ;;  %2115 = vperm.xlu1 %5636, %v6006_v2   ;;  %v1104_v6 = vpop.f32.mrf.mxu1  ;;  %v1621_v29 = vmul.f32 %v6332_v46, %v6239_v60 }
 0x12b   : > { %4652 = vmatmul.msk.bf16.gmra.mxu0 %vm985_vm1, %v983_v32  ;;  %v1342_v32 = vrot.slane %v6336_v10, 1 }
 0x12c   : > { %4666 = vmatmul.msk.bf16.gmra.mxu2 %vm985_vm1, %v1223_v3  ;;  %5637 = vset.pattern.permute.xlu2 %v7729_v51  ;;  %v1417_v44 = vpop.permute.xlu2 %1416  ;;  %v1636_v57 = vpack.c.bf16 %v1621_v29, %v1620_v22  ;;  %v1344_v3 = vrot.slane %v6339_v61, 1 }
 0x12d   : > { %2119 = vperm.xlu2 %5637, %v6024_v5   ;;  %5674 = vset.pattern.permute.xlu0 %v7723_v30 }
 0x12e   : > { %1977 = vperm.xlu0 %5674, %v6078_v14  }
 0x130   : > { %v1405_v45 = vpop.permute.xlu1 %1404 }
 0x131   : > { %v1443_v7 = vmul.f32 %v1405_v45, %v6524_v25 }
 0x132   : > { %5638 = vset.pattern.permute.xlu1 %v7727_v13  ;;  %v6556_v40 = vpop.f32.mrf.mxu1 }
 0x133   : > { %v1455_v38 = vpack.c.bf16 %v1444_v58, %v1443_v7  ;;  %1749 = vperm.xlu1 %5638, %v6006_v2   ;;  %v1224_v2 = vpack.c.bf16 %v1214_v48, %v1213_v49  ;;  %7730 = vst [vmem:[#allocation19_spill] sm:$0xff] %v6556_v40  ;;  %v6572_v7 = vpop.permute.xlu0 %1428 }
 0x135   : > { %4675 = vmatmul.msk.bf16.gmra.mxu3 %vm985_vm1, %v1455_v38  ;;  %5639 = vset.pattern.permute.xlu2 %v7727_v13  ;;  %v1623_v38 = vmul.f32 %v6323_v20, %v6273_v41 }
 0x136   : > { %1753 = vperm.xlu2 %5639, %v6024_v5   ;;  %v6540_v14 = vpop.permute.xlu2 %1601  ;;  %5679 = vset.pattern.permute.xlu0 %v7728_v39 }
 0x137   : > { %2337 = vperm.xlu0 %5679, %v6083_v15   ;;  %v6559_v15 = vsel %vm1322_vm3, %v1342_v32, %v1344_v3 }
 0x138   : > { %v1023_v18 = vpop.f32.mrf.mxu0 }
 0x139   : > { %v6546_v0 = vadd.f32 %v1099_v31, %v1023_v18  ;;  %v6548_v46 = vpop.permute.xlu1 %1593  ;;  %v6566_v31 = vsel %vm1322_vm3, %v1340_v37, %v1342_v32  ;;  %v1622_v37 = vmul.f32 %v6395_v52, %v6236_v59  ;;  %v7731_v52 = vmov 0   ;;  %v6590_v18 = vpop.f32.mrf.mxu2 }
 0x13a   : > { %v1109_v49 = vpop.f32.mrf.mxu1 }
 0x13b   : > { %4680 = vmatmul.msk.bf16.vlgmr.msrb.gmra.mxu0 %vm985_vm1, %v1636_v57  ;;  %5642 = vset.pattern.permute.xlu1 %v7728_v39  ;;  %v1637_v20 = vpack.c.bf16 %v1623_v38, %v1622_v37 }
 0x13c   : > { %2301 = vperm.xlu1 %5642, %v6024_v5   ;;  %4667 = vmatmul.msk.bf16.gmra.mxu2 %vm985_vm1, %v1224_v2  ;;  %v1446_v5 = vmul.f32 %v1417_v44, %v6559_v15  ;;  %v7689_v44 = vrot.slane %v6392_v35, 1 }
 0x13e   : > { %5643 = vset.pattern.permute.xlu2 %v7723_v30 }
 0x13f   : > { %1941 = vperm.xlu2 %5643, %v6001_v1   ;;  %v1421_v27 = vpop.permute.xlu2 %1420  ;;  %5684 = vset.pattern.permute.xlu0 %v7729_v51 }
 0x140   : > { %v6563_v10 = vpop.f32.mrf.mxu0  ;;  %2167 = vperm.xlu0 %5684, %v6091_v16   ;;  %v1346_v16 = vrot.slane %v6389_v19, 1 }
 0x142   : > { %v1413_v58 = vpop.permute.xlu1 %1412  ;;  %v6598_v32 = vsel %vm1322_vm3, %v1346_v16, %v7689_v44  ;;  %v6610_v37 = vpop.f32.mrf.mxu1 }
 0x143   : > { %v1445_v45 = vmul.f32 %v1413_v58, %v6566_v31  ;;  %v1448_v58 = vmul.f32 %v1425_v23, %v6598_v32  ;;  %7733 = vst [vmem:[#allocation21_spill] sm:$0xff] %v6610_v37  ;;  %v1625_v23 = vmul.f32 %v6380_v43, %v6318_v56  ;;  %v4697_v43 = vld [vmem:[%s6134_s20 + $0x18] sm:$0xf] }
 0x144   : > { %5644 = vset.pattern.permute.xlu1 %v7723_v30 }
 0x145   : > { %v1456_v48 = vpack.c.bf16 %v1446_v5, %v1445_v45  ;;  %1945 = vperm.xlu1 %5644, %v6019_v4   ;;  %v6601_v5 = vsel %vm1322_vm3, %v1344_v3, %v1346_v16  ;;  %v1215_v3 = vmul.f32 %v6406_v54, %v6339_v61 }
 0x146   : > { %v1447_v45 = vmul.f32 %v1421_v27, %v6601_v5  ;;  %v1624_v27 = vmul.f32 %v6445_v53, %v6276_v42 }
 0x147   : > { %4676 = vmatmul.msk.bf16.gmra.mxu3 %vm985_vm1, %v1456_v48  ;;  %5645 = vset.pattern.permute.xlu2 %v7729_v51 }
 0x148   : > { %v1028_v29 = vpop.f32.mrf.mxu0  ;;  %2123 = vperm.xlu2 %5645, %v6001_v1   ;;  %v6585_v22 = vpop.permute.xlu2 %1609  ;;  %5689 = vset.pattern.permute.xlu0 %v7731_v52  ;;  %v1457_v16 = vpack.c.bf16 %v1448_v58, %v1447_v45  ;;  %v1638_v54 = vpack.c.bf16 %v1625_v23, %v1624_v27 }
 0x149   : > { %v6587_v2 = vadd.f32 %v1104_v6, %v1028_v29  ;;  %v1586_v6 = vpop.permute.xlu0 %1585 }
 0x14a   : > { %v1627_v27 = vmul.f32 %v1586_v6, %v6373_v28 }
 0x14b   : > { %4681 = vmatmul.msk.bf16.gmra.mxu0 %vm985_vm1, %v1637_v20  ;;  %v6593_v57 = vpop.permute.xlu1 %1597  ;;  %v6615_v20 = vpop.f32.mrf.mxu2 }
 0x14c   : > { %7734 = vst [vmem:[#allocation22_spill] sm:$0xff] %v6615_v20  ;;  %v7738_v20 = vrot.slane %v6392_v35, 1 }
 0x14d   : > { %5646 = vset.pattern.permute.xlu1 %v7727_v13 }
 0x14e   : > { %1757 = vperm.xlu1 %5646, %v6001_v1  }
 0x150   : > { %v6607_v38 = vpop.f32.mrf.mxu0  ;;  %5647 = vset.pattern.permute.xlu2 %v7727_v13 }
 0x151   : > { %7732 = vst [vmem:[#allocation20_spill] sm:$0xff] %v6607_v38  ;;  %1761 = vperm.xlu2 %5647, %v6019_v4   ;;  %v1201_v48 = vpop.permute.xlu2 %1200  ;;  %v6622_v44 = vpop.permute.xlu0 %1589 }
 0x154   : > { %v1193_v29 = vpop.permute.xlu1 %1192 }
 0x155   : > { %v1216_v17 = vmul.f32 %v1193_v29, %v6389_v19  ;;  %v1114_v19 = vpop.f32.mrf.mxu1 }
 0x156   : > { %5648 = vset.pattern.permute.xlu1 %v7728_v39 }
 0x157   : > { %v1225_v37 = vpack.c.bf16 %v1216_v17, %v1215_v3  ;;  %2305 = vperm.xlu1 %5648, %v6001_v1   ;;  %4677 = vmatmul.msk.bf16.gmra.mxu3 %vm985_vm1, %v1457_v16  ;;  %v2039_v17 = vsel %vm1010_vm0, %v4697_v43, 0  ;;  %v1626_v43 = vmul.f32 %v6436_v62, %v6315_v55  ;;  %v7737_v62 = vld [vmem:[#allocation10_spill] sm:$0xff] }
 0x158   : > { %v1033_v61 = vpop.f32.mrf.mxu0  ;;  %2048 = vmatpush.bf16.msra.mxu2 %v2039_v17  ;;  %v1350_v17 = vrot.slane %v6181_v33, 1  ;;  %v7690_v38 = vrot.slane %v7737_v62, 1 }
 0x159   : > { %v6627_v58 = vadd.f32 %v1109_v49, %v1033_v61  ;;  %4668 = vmatmul.msk.bf16.gmra.mxu2 %vm985_vm1, %v1225_v37  ;;  %5649 = vset.pattern.permute.xlu2 %v7728_v39  ;;  %v6639_v45 = vpop.permute.xlu0 %1617 }
 0x15a   : > { %2309 = vperm.xlu2 %5649, %v6019_v4   ;;  %v6633_v53 = vpop.permute.xlu2 %1613  ;;  %v4706_v4 = vld [vmem:[%s6134_s20 + $0x1c] sm:$0xf] }
 0x15b   : > { %4682 = vmatmul.msk.bf16.gmra.mxu0 %vm985_vm1, %v1638_v54  ;;  %v2221_v29 = vsel %vm1010_vm0, %v4706_v4, 0 }
 0x15c   : > { %2230 = vmatpush.bf16.msrb.mxu3 %v2221_v29 }
 0x15d   : > { %v6637_v1 = vpop.permute.xlu1 %1605  ;;  %v6650_v23 = vpop.f32.mrf.mxu1 }
 0x15e   : > { %v1265_v49 = vpop.f32.mrf.mxu2  ;;  %7736 = vst [vmem:[#allocation24_spill] sm:$0xff] %v6650_v23 }
 0x15f   : > { %v1305_v37 = vadd.f32 %v1265_v49, %v6546_v0  ;;  %5651 = vset.pattern.permute.xlu1 %v7723_v30  ;;  %v1218_v0 = vmul.f32 %v1201_v48, %v6181_v33  ;;  %v1639_v48 = vpack.c.bf16 %v1627_v27, %v1626_v43 }
 0x160   : > { %v6643_v3 = vpop.f32.mrf.mxu0  ;;  %1953 = vperm.xlu1 %5651, %v6042_v8  }
 0x161   : > { %7735 = vst [vmem:[#allocation23_spill] sm:$0xff] %v6643_v3  ;;  %v6663_v6 = vpop.permute.xlu0 %2297 }
 0x162   : > { %5652 = vset.pattern.permute.xlu2 %v7729_v51 }
 0x163   : > { %2131 = vperm.xlu2 %5652, %v6047_v9   ;;  %v1930_v16 = vpop.permute.xlu2 %1929 }
 0x166   : > { %v1197_v61 = vpop.permute.xlu1 %1196  ;;  %v6654_v54 = vpop.f32.mrf.mxu2 }
 0x167   : > { %v1217_v49 = vmul.f32 %v1197_v61, %v6392_v35  ;;  %v1497_v3 = vpop.f32.mrf.mxu3  ;;  %v6672_v61 = vsel %vm1322_vm3, %v7738_v20, %v1350_v17  ;;  %v1119_v20 = vpop.f32.mrf.mxu1 }
 0x168   : > { %v1038_v4 = vpop.f32.mrf.mxu0  ;;  %v6660_v40 = vadd.f32 %v1497_v3, %v1305_v37  ;;  %5653 = vset.pattern.permute.xlu1 %v7729_v51  ;;  %v4688_v37 = vld [vmem:[%s6134_s20 + $0x14] sm:$0xf]  ;;  %v1449_v35 = vmul.f32 %v6572_v7, %v6672_v61 }
 0x169   : > { %v1226_v29 = vpack.c.bf16 %v1218_v0, %v1217_v49  ;;  %v6665_v23 = vadd.f32 %v1114_v19, %v1038_v4  ;;  %2135 = vperm.xlu1 %5653, %v6042_v8   ;;  %v1855_v19 = vsel %vm1010_vm0, %v4688_v37, 0  ;;  %v6682_v8 = vsel %vm1322_vm3, %v1350_v17, %v7690_v38  ;;  %v1938_v7 = vpop.permute.xlu0 %1937  ;;  %v7741_v37 = vld [vmem:[#allocation16_spill] sm:$0xff] }
 0x16a   : > { %7739 = vst [vmem:[#allocation25_spill] sm:$0xff] %v6682_v8  ;;  %1864 = vmatpush.bf16.msrb.mxu1 %v1855_v19  ;;  %v1628_v19 = vmul.f32 %v6622_v44, %v7741_v37 }
 0x16b   : > { %4683 = vmatmul.msk.bf16.gmra.mxu0 %vm985_vm1, %v1639_v48  ;;  %4669 = vmatmul.msk.bf16.gmra.mxu2 %vm985_vm1, %v1226_v29  ;;  %v1629_v29 = vmul.f32 %v6548_v46, %v6411_v63 }
 0x16c   : > { %5654 = vset.pattern.permute.xlu2 %v7727_v13  ;;  %v2112_v3 = vpop.permute.xlu2 %2111 }
 0x16d   : > { %1765 = vperm.xlu2 %5654, %v6047_v9   ;;  %v5733_v9 = vld [vmem:[%s7710_s19 + $0x30] sm:$0xff] }
 0x16f   : > { %v1433_v27 = vpop.permute.xlu1 %1432  ;;  %v6691_v48 = vpop.f32.mrf.mxu3 }
 0x170   : > { %v1450_v0 = vmul.f32 %v1433_v27, %v6682_v8  ;;  %v6688_v43 = vpop.f32.mrf.mxu0  ;;  %v1270_v49 = vpop.f32.mrf.mxu2  ;;  %v1989_v27 = vmul.f32 %v1930_v16, %v6236_v59  ;;  %v5735_v59 = vld [vmem:[%s7710_s19 + $0x40] sm:$0xff] }
 0x171   : > { %7740 = vst [vmem:[#allocation26_spill] sm:$0xff] %v6688_v43  ;;  %v1307_v4 = vadd.f32 %v1270_v49, %v6587_v2  ;;  %5656 = vset.pattern.permute.xlu1 %v7728_v39  ;;  %v6709_v49 = vpop.f32.mrf.mxu1 }
 0x172   : > { %v1458_v17 = vpack.c.bf16 %v1450_v0, %v1449_v35  ;;  %2313 = vperm.xlu1 %5656, %v5733_v9   ;;  %v5734_v35 = vld [vmem:[%s7710_s19 + $0x38] sm:$0xff]  ;;  %7742 = vst [vmem:[#allocation16_spill] sm:$0xff] %v6709_v49  ;;  %v1630_v49 = vmul.f32 %v6593_v57, %v6417_v26 }
 0x174   : > { %4678 = vmatmul.msk.bf16.gmra.mxu3 %vm985_vm1, %v1458_v17  ;;  %v1640_v17 = vpack.c.bf16 %v1629_v29, %v1628_v19 }
 0x175   : > { %5657 = vset.pattern.permute.xlu2 %v7728_v39  ;;  %v6703_v2 = vpop.permute.xlu2 %2289 }
 0x176   : > { %2317 = vperm.xlu2 %5657, %v5734_v35   ;;  %v6721_v35 = vpop.permute.xlu0 %1949 }
 0x178   : > { %v1043_v0 = vpop.f32.mrf.mxu0  ;;  %v1926_v46 = vpop.permute.xlu1 %1925 }
 0x179   : > { %v6711_v9 = vadd.f32 %v1119_v20, %v1043_v0  ;;  %v1502_v38 = vpop.f32.mrf.mxu3  ;;  %v1988_v44 = vmul.f32 %v1926_v46, %v6239_v60  ;;  %v5736_v60 = vld [vmem:[%s7710_s19 + $0x48] sm:$0xff]  ;;  %v7745_v0 = vld [vmem:[#allocation8_spill] sm:$0xff]  ;;  %v6732_v46 = vpop.f32.mrf.mxu2 }
 0x17a   : > { %v6714_v43 = vadd.f32 %v1502_v38, %v1307_v4  ;;  %5658 = vset.pattern.permute.xlu1 %v7723_v30  ;;  %v7743_v20 = vld [vmem:[#allocation9_spill] sm:$0xff]  ;;  %7746 = vst [vmem:[#allocation8_spill] sm:$0xff] %v6732_v46 }
 0x17b   : > { %4684 = vmatmul.msk.bf16.gmra.mxu0 %vm985_vm1, %v1640_v17  ;;  %1957 = vperm.xlu1 %5658, %v5735_v59   ;;  %v2004_v16 = vpack.c.bf16 %v1989_v27, %v1988_v44  ;;  %v2171_v4 = vmul.f32 %v2112_v3, %v7743_v20  ;;  %v1124_v27 = vpop.f32.mrf.mxu1  ;;  %v1991_v3 = vmul.f32 %v1938_v7, %v6276_v42  ;;  %v7749_v42 = vld [vmem:[#allocation15_spill] sm:$0xff] }
 0x17d   : > { %4698 = vmatmul.msk.bf16.vlgmr.msra.gmra.mxu2 %vm985_vm1, %v2004_v16  ;;  %v1631_v16 = vmul.f32 %v6540_v14, %v6457_v24  ;;  %v7748_v14 = vld [vmem:[#allocation13_spill] sm:$0xff] }
 0x17e   : > { %5659 = vset.pattern.permute.xlu2 %v7723_v30  ;;  %v1934_v38 = vpop.permute.xlu2 %1933  ;;  %v1742_v20 = vpop.permute.xlu0 %1741 }
 0x17f   : > { %1961 = vperm.xlu2 %5659, %v5736_v60   ;;  %v1804_v46 = vmul.f32 %v1742_v20, %v7748_v14  ;;  %v5737_v20 = vld [vmem:[%s7710_s19 + $0x50] sm:$0xff] }
 0x180   : > { %v6729_v29 = vpop.f32.mrf.mxu0 }
 0x181   : > { %7744 = vst [vmem:[#allocation9_spill] sm:$0xff] %v6729_v29  ;;  %v2108_v19 = vpop.permute.xlu1 %2107 }
 0x182   : > { %v2170_v17 = vmul.f32 %v2108_v19, %v7745_v0  ;;  %v1990_v19 = vmul.f32 %v1934_v38, %v6273_v41 }
 0x183   : > { %5660 = vset.pattern.permute.xlu1 %v7729_v51  ;;  %v6752_v38 = vpop.f32.mrf.mxu1 }
 0x184   : > { %v2186_v44 = vpack.c.bf16 %v2171_v4, %v2170_v17  ;;  %2143 = vperm.xlu1 %5660, %v5736_v60   ;;  %v1641_v4 = vpack.c.bf16 %v1631_v16, %v1630_v49  ;;  %v6743_v17 = vpop.f32.mrf.mxu3  ;;  %v2005_v8 = vpack.c.bf16 %v1991_v3, %v1990_v19  ;;  %7750 = vst [vmem:[#allocation13_spill] sm:$0xff] %v6752_v38  ;;  %v4715_v19 = vld [vmem:[%s6134_s20 + $0x20] sm:$0xf]  ;;  %s7198_s20 = scalar_lea.vmem %s7640_s10, %s5535_s26  ;;  %s4643_s26 = sshll.u32 %s7801_s0, 1 }
 0x185   : > { %7747 = vst [vmem:[#allocation27_spill] sm:$0xff] %v6743_v17  ;;  %s773_s1 = scalar_lea.vmem %s7794_s23, %s4643_s26 }
 0x186   : > { %4707 = vmatmul.msk.bf16.vlgmr.msrb.gmra.mxu3 %vm985_vm1, %v2186_v44 }
 0x187   : > { %5661 = vset.pattern.permute.xlu2 %v7727_v13  ;;  %v2120_v0 = vpop.permute.xlu2 %2119 }
 0x188   : > { %v1048_v29 = vpop.f32.mrf.mxu0  ;;  %1773 = vperm.xlu2 %5661, %v5735_v59  }
 0x189   : > { %v6745_v62 = vadd.f32 %v1124_v27, %v1048_v29 }
 0x18a   : > { %v1746_v57 = vpop.permute.xlu1 %1745 }
 0x18b   : > { %v1805_v7 = vmul.f32 %v1746_v57, %v7749_v42  ;;  %4685 = vmatmul.msk.bf16.gmra.mxu0 %vm985_vm1, %v1641_v4  ;;  %v1275_v44 = vpop.f32.mrf.mxu2  ;;  %v2403_v4 = vsel %vm1010_vm0, %v4715_v19, 0  ;;  %v5739_v19 = vld [vmem:[%s6139_s2 + $0x18] sm:$0xff] }
 0x18c   : > { %v1309_v41 = vadd.f32 %v1275_v44, %v6627_v58  ;;  %5662 = vset.pattern.permute.xlu1 %v7727_v13  ;;  %2412 = vmatpush.bf16.msra.mxu0 %v2403_v4  ;;  %v7753_v44 = vld [vmem:[#allocation11_spill] sm:$0xff] }
 0x18d   : > { %v1820_v49 = vpack.c.bf16 %v1805_v7, %v1804_v46  ;;  %1777 = vperm.xlu1 %5662, %v5736_v60   ;;  %4699 = vmatmul.msk.bf16.gmra.mxu2 %vm985_vm1, %v2005_v8  ;;  %v1633_v46 = vmul.f32 %v6585_v22, %v6499_v12  ;;  %v1632_v8 = vmul.f32 %v6637_v1, %v6454_v50  ;;  %v5738_v7 = vld [vmem:[%s7710_s19 + $0x58] sm:$0xff] }
 0x18f   : > { %4689 = vmatmul.msk.bf16.vlgmr.msrb.gmra.mxu1 %vm985_vm1, %v1820_v49  ;;  %v1642_v22 = vpack.c.bf16 %v1633_v46, %v1632_v8  ;;  %v6787_v8 = vld [vmem:[%s6139_s2 + $0x78] sm:$0xff] }
 0x190   : > { %v6756_v29 = vpop.f32.mrf.mxu0  ;;  %5663 = vset.pattern.permute.xlu2 %v7728_v39  ;;  %v1754_v27 = vpop.permute.xlu2 %1753  ;;  %7754 = vst [vmem:[#allocation11_spill] sm:$0xff] %v6787_v8 }
 0x191   : > { %7751 = vst [vmem:[#allocation15_spill] sm:$0xff] %v6756_v29  ;;  %v1507_v16 = vpop.f32.mrf.mxu3  ;;  %2321 = vperm.xlu2 %5663, %v5735_v59   ;;  %v1129_v59 = vpop.f32.mrf.mxu1 }
 0x192   : > { %v6759_v3 = vadd.f32 %v1507_v16, %v1309_v41  ;;  %v2173_v41 = vmul.f32 %v2120_v0, %v7753_v44  ;;  %v6783_v16 = vpop.permute.xlu0 %1769 }
 0x193   : > { %v6761_v58 = vpop.permute.xlu1 %2293  ;;  %v6767_v60 = vpop.f32.mrf.mxu2 }
 0x194   : > { %7752 = vst [vmem:[#allocation28_spill] sm:$0xff] %v6767_v60 }
 0x195   : > { %5665 = vset.pattern.permute.xlu1 %v7723_v30 }
 0x196   : > { %1965 = vperm.xlu1 %5665, %v5737_v20  }
 0x198   : > { %v1053_v14 = vpop.f32.mrf.mxu0 }
 0x199   : > { %v6775_v57 = vadd.f32 %v1129_v59, %v1053_v14  ;;  %5666 = vset.pattern.permute.xlu2 %v7723_v30  ;;  %v1942_v1 = vpop.permute.xlu2 %1941  ;;  %v7694_v59 = vrot.slane %v6787_v8, 7  ;;  %v6790_v14 = vpop.f32.mrf.mxu3  ;;  %v7762_v8 = vld [vmem:[#allocation12_spill] sm:$0xff] }
 0x19a   : > { %1969 = vperm.xlu2 %5666, %v5738_v7   ;;  %7755 = vst [vmem:[#allocation29_spill] sm:$0xff] %v6790_v14  ;;  %v2128_v14 = vpop.permute.xlu0 %2127 }
 0x19b   : > { %4686 = vmatmul.msk.bf16.gmra.mxu0 %vm985_vm1, %v1642_v22  ;;  %v7757_v22 = vrot.slane %v6181_v33, 7 }
 0x19c   : > { %v2116_v49 = vpop.permute.xlu1 %2115 }
 0x19d   : > { %v2172_v4 = vmul.f32 %v5739_v19, %v2116_v49  ;;  %v1280_v46 = vpop.f32.mrf.mxu2  ;;  %v6802_v44 = vsel %vm834_vm2, %v7757_v22, %v7694_v59 }
 0x19e   : > { %v1311_v38 = vadd.f32 %v1280_v46, %v6665_v23  ;;  %5667 = vset.pattern.permute.xlu1 %v7729_v51  ;;  %7758 = vst [vmem:[#allocation31_spill] sm:$0xff] %v6802_v44  ;;  %v7759_v23 = vld [vmem:[#allocation17_spill] sm:$0xff]  ;;  %v7760_v46 = vld [vmem:[#allocation14_spill] sm:$0xff] }
 0x19f   : > { %v2187_v29 = vpack.c.bf16 %v2173_v41, %v2172_v4  ;;  %2147 = vperm.xlu1 %5667, %v5737_v20   ;;  %v1807_v19 = vmul.f32 %v1754_v27, %v7759_v23  ;;  %v1635_v41 = vmul.f32 %v6639_v45, %v6802_v44  ;;  %v5741_v45 = vld [vmem:[%s6139_s2 + $0x28] sm:$0xff] }
 0x1a0   : > { %v6794_v0 = vpop.f32.mrf.mxu0 }
 0x1a1   : > { %7756 = vst [vmem:[#allocation30_spill] sm:$0xff] %v6794_v0  ;;  %4708 = vmatmul.msk.bf16.gmra.mxu3 %vm985_vm1, %v2187_v29  ;;  %v1634_v29 = vmul.f32 %v6633_v53, %v6494_v21  ;;  %v2175_v53 = vmul.f32 %v2128_v14, %v7762_v8  ;;  %v5742_v8 = vld [vmem:[%s7710_s19 + $0x60] sm:$0xff] }
 0x1a2   : > { %5668 = vset.pattern.permute.xlu2 %v7729_v51  ;;  %v2124_v49 = vpop.permute.xlu2 %2123 }
 0x1a3   : > { %2151 = vperm.xlu2 %5668, %v5738_v7   ;;  %v1643_v27 = vpack.c.bf16 %v1635_v41, %v1634_v29  ;;  %v2174_v44 = vmul.f32 %v5741_v45, %v2124_v49 }
 0x1a5   : > { %v1750_v4 = vpop.permute.xlu1 %1749  ;;  %v6811_v22 = vpop.f32.mrf.mxu2 }
 0x1a6   : > { %v1806_v0 = vmul.f32 %v1750_v4, %v7760_v46  ;;  %v1512_v33 = vpop.f32.mrf.mxu3  ;;  %7761 = vst [vmem:[#allocation17_spill] sm:$0xff] %v6811_v22 }
 0x1a7   : > { %v6813_v59 = vadd.f32 %v1512_v33, %v1311_v38  ;;  %5670 = vset.pattern.permute.xlu1 %v7727_v13  ;;  %v2188_v38 = vpack.c.bf16 %v2175_v53, %v2174_v44 }
 0x1a8   : > { %v1821_v60 = vpack.c.bf16 %v1807_v19, %v1806_v0  ;;  %v6816_v17 = vpop.f32.mrf.mxu0  ;;  %1785 = vperm.xlu1 %5670, %v5738_v7  }
 0x1aa   : > { %4690 = vmatmul.msk.bf16.gmra.mxu1 %vm985_vm1, %v1821_v60 }
 0x1ab   : > { %4687 = vmatmul.msk.bf16.gmra.mxu0 %vm985_vm1, %v1643_v27  ;;  %5671 = vset.pattern.permute.xlu2 %v7728_v39  ;;  %v1762_v4 = vpop.permute.xlu2 %1761 }
 0x1ac   : > { %2329 = vperm.xlu2 %5671, %v5737_v20   ;;  %v2353_v20 = vmul.f32 %v6761_v58, %v7760_v46 }
 0x1ae   : > { %v2302_v33 = vpop.permute.xlu1 %2301  ;;  %v6823_v0 = vpop.f32.mrf.mxu3 }
 0x1af   : > { %v1285_v22 = vpop.f32.mrf.mxu2 }
 0x1b0   : > { %v6825_v19 = vpop.f32.mrf.mxu0  ;;  %v1313_v41 = vadd.f32 %v1285_v22, %v6711_v9  ;;  %5672 = vset.pattern.permute.xlu1 %v7728_v39  ;;  %v2352_v9 = vmul.f32 %v6703_v2, %v7749_v42  ;;  %v1102_v2 = vadd.f32 %v6512_v36, %v6563_v10  ;;  %v5743_v36 = vld [vmem:[%s7710_s19 + $0x68] sm:$0xff]  ;;  %v1809_v10 = vmul.f32 %v1762_v4, %v6474_v47 }
 0x1b1   : > { %2333 = vperm.xlu1 %5672, %v5738_v7   ;;  %4709 = vmatmul.msk.bf16.gmra.mxu3 %vm985_vm1, %v2188_v38  ;;  %v1992_v7 = vmul.f32 %v1942_v1, %v6318_v56 }
 0x1b2   : > { %v2368_v42 = vpack.c.bf16 %v2353_v20, %v2352_v9  ;;  %v1306_v1 = vadd.f32 %v6654_v54, %v1102_v2  ;;  %v7763_v54 = vld [vmem:[#allocation18_spill] sm:$0xff] }
 0x1b3   : > { %v2355_v4 = vmul.f32 %v2302_v33, %v7763_v54 }
 0x1b4   : > { %5673 = vset.pattern.permute.xlu2 %v7723_v30  ;;  %v6831_v60 = vpop.permute.xlu2 %2309 }
 0x1b5   : > { %1973 = vperm.xlu2 %5673, %v5742_v8  }
 0x1b7   : > { %v1946_v14 = vpop.permute.xlu1 %1945  ;;  %v6840_v44 = vpop.f32.mrf.mxu2 }
 0x1b8   : > { %v1993_v49 = vmul.f32 %v1946_v14, %v6315_v55  ;;  %v1682_v29 = vpop.f32.mrf.mxu0  ;;  %v1517_v22 = vpop.f32.mrf.mxu3 }
 0x1b9   : > { %v6855_v58 = vadd.f32 %v1682_v29, %v6660_v40  ;;  %v6857_v56 = vadd.f32 %v1517_v22, %v1313_v41  ;;  %5675 = vset.pattern.permute.xlu1 %v7729_v51  ;;  %v1538_v40 = vadd.f32 %v6691_v48, %v1306_v1  ;;  %v2354_v48 = vmul.f32 %v6663_v6, %v7759_v23 }
 0x1ba   : > { %v2006_v55 = vpack.c.bf16 %v1993_v49, %v1992_v7  ;;  %2155 = vperm.xlu1 %5675, %v5742_v8   ;;  %v1811_v6 = vmul.f32 %v6783_v16, %v6524_v25 }
 0x1bb   : > { %4716 = vmatmul.msk.bf16.vlgmr.msra.gmra.mxu0 %vm985_vm1, %v2368_v42  ;;  %v2369_v49 = vpack.c.bf16 %v2355_v4, %v2354_v48 }
 0x1bc   : > { %4700 = vmatmul.msk.bf16.gmra.mxu2 %vm985_vm1, %v2006_v55  ;;  %v1994_v55 = vmul.f32 %v6721_v35, %v6373_v28  ;;  %v5745_v28 = vld [vmem:[%s7710_s19 + $0x78] sm:$0xff] }
 0x1bd   : > { %5676 = vset.pattern.permute.xlu2 %v7729_v51  ;;  %v2132_v46 = vpop.permute.xlu2 %2131 }
 0x1be   : > { %2159 = vperm.xlu2 %5676, %v5743_v36  }
 0x1bf   : > { %v1290_v27 = vpop.f32.mrf.mxu2 }
 0x1c0   : > { %v1315_v45 = vadd.f32 %v1290_v27, %v6745_v62  ;;  %v1684_v53 = vpop.f32.mrf.mxu0  ;;  %v1758_v38 = vpop.permute.xlu1 %1757  ;;  %v2357_v27 = vmul.f32 %v6831_v60, %v6481_v34  ;;  %v5746_v60 = vld [vmem:[%s6139_s2 + $0x38] sm:$0xff] }
 0x1c1   : > { %v6870_v41 = vadd.f32 %v1684_v53, %v1538_v40  ;;  %v1808_v20 = vmul.f32 %v1758_v38, %v7763_v54  ;;  %v6873_v9 = vpop.f32.mrf.mxu3  ;;  %v2176_v54 = vmul.f32 %v5746_v60, %v2132_v46 }
 0x1c2   : > { %5677 = vset.pattern.permute.xlu1 %v7727_v13 }
 0x1c3   : > { %v1822_v14 = vpack.c.bf16 %v1809_v10, %v1808_v20  ;;  %1789 = vperm.xlu1 %5677, %v5742_v8   ;;  %v5747_v20 = vld [vmem:[%s6139_s2 + $0x40] sm:$0xff] }
 0x1c5   : > { %4691 = vmatmul.msk.bf16.gmra.mxu1 %vm985_vm1, %v1822_v14 }
 0x1c6   : > { %5678 = vset.pattern.permute.xlu2 %v7727_v13 }
 0x1c7   : > { %1793 = vperm.xlu2 %5678, %v5743_v36   ;;  %v1766_v7 = vpop.permute.xlu2 %1765  ;;  %v6900_v16 = vpop.f32.mrf.mxu2 }
 0x1c8   : > { %v1687_v62 = vpop.f32.mrf.mxu0  ;;  %v1810_v23 = vmul.f32 %v1766_v7, %v6481_v34 }
 0x1c9   : > { %v6882_v29 = vadd.f32 %v1687_v62, %v6714_v43  ;;  %v2306_v22 = vpop.permute.xlu1 %2305  ;;  %v5744_v43 = vld [vmem:[%s7710_s19 + $0x70] sm:$0xff] }
 0x1ca   : > { %v1522_v2 = vpop.f32.mrf.mxu3  ;;  %v1823_v1 = vpack.c.bf16 %v1811_v6, %v1810_v23  ;;  %v2140_v23 = vpop.permute.xlu0 %2139 }
 0x1cb   : > { %v6884_v42 = vadd.f32 %v1522_v2, %v1315_v45  ;;  %4717 = vmatmul.msk.bf16.gmra.mxu0 %vm985_vm1, %v2369_v49  ;;  %5680 = vset.pattern.permute.xlu1 %v7728_v39  ;;  %v2356_v45 = vmul.f32 %v2306_v22, %v6474_v47 }
 0x1cc   : > { %2341 = vperm.xlu1 %5680, %v5743_v36  }
 0x1cd   : > { %v2370_v35 = vpack.c.bf16 %v2357_v27, %v2356_v45 }
 0x1cf   : > { %5681 = vset.pattern.permute.xlu2 %v7723_v30 }
 0x1d0   : > { %v6892_v33 = vpop.f32.mrf.mxu0  ;;  %1981 = vperm.xlu2 %5681, %v5744_v43   ;;  %v2318_v8 = vpop.permute.xlu2 %2317 }
 0x1d1   : > { %v2359_v46 = vmul.f32 %v2318_v8, %v6519_v11 }
 0x1d2   : > { %v1954_v36 = vpop.permute.xlu1 %1953  ;;  %v6902_v10 = vpop.f32.mrf.mxu3 }
 0x1d3   : > { %v1995_v40 = vmul.f32 %v1954_v36, %v7741_v37 }
 0x1d4   : > { %5682 = vset.pattern.permute.xlu1 %v7723_v30 }
 0x1d5   : > { %v2007_v53 = vpack.c.bf16 %v1995_v40, %v1994_v55  ;;  %1985 = vperm.xlu1 %5682, %v5745_v28   ;;  %4692 = vmatmul.msk.bf16.gmra.mxu1 %vm985_vm1, %v1823_v1 }
 0x1d7   : > { %4701 = vmatmul.msk.bf16.gmra.mxu2 %vm985_vm1, %v2007_v53 }
 0x1d8   : > { %v1692_v37 = vpop.f32.mrf.mxu0  ;;  %5683 = vset.pattern.permute.xlu2 %v7729_v51 }
 0x1d9   : > { %v6915_v38 = vadd.f32 %v1692_v37, %v6759_v3  ;;  %2163 = vperm.xlu2 %5683, %v5744_v43   ;;  %v1962_v47 = vpop.permute.xlu2 %1961 }
 0x1da   : > { %v1527_v62 = vpop.f32.mrf.mxu3  ;;  %v1997_v8 = vmul.f32 %v1962_v47, %v6417_v26  ;;  %v5748_v47 = vld [vmem:[%s6139_s2 + $0x48] sm:$0xff] }
 0x1db   : > { %4718 = vmatmul.msk.bf16.gmra.mxu0 %vm985_vm1, %v2370_v35  ;;  %v2136_v34 = vpop.permute.xlu1 %2135 }
 0x1dc   : > { %v2177_v14 = vmul.f32 %v5747_v20, %v2136_v34  ;;  %v1295_v48 = vpop.f32.mrf.mxu2  ;;  %v2178_v34 = vmul.f32 %v5748_v47, %v2140_v23 }
 0x1dd   : > { %v1317_v4 = vadd.f32 %v1295_v48, %v6775_v57  ;;  %5685 = vset.pattern.permute.xlu1 %v7727_v13 }
 0x1de   : > { %v2189_v7 = vpack.c.bf16 %v2177_v14, %v2176_v54  ;;  %1797 = vperm.xlu1 %5685, %v5744_v43   ;;  %v5749_v54 = vld [vmem:[%s6139_s2 + $0x50] sm:$0xff] }
 0x1df   : > { %v6922_v49 = vadd.f32 %v1527_v62, %v1317_v4 }
 0x1e0   : > { %v6924_v3 = vpop.f32.mrf.mxu0  ;;  %4710 = vmatmul.msk.bf16.gmra.mxu3 %vm985_vm1, %v2189_v7 }
 0x1e1   : > { %5686 = vset.pattern.permute.xlu2 %v7727_v13 }
 0x1e2   : > { %v1774_v22 = vpop.permute.xlu2 %1773  ;;  %1801 = vperm.xlu2 %5686, %v5745_v28   ;;  %v6942_v53 = vpop.f32.mrf.mxu3 }
 0x1e3   : > { %v1812_v23 = vmul.f32 %v1774_v22, %v6519_v11 }
 0x1e4   : > { %v2314_v2 = vpop.permute.xlu1 %2313  ;;  %v6930_v6 = vpop.f32.mrf.mxu2 }
 0x1e5   : > { %v2358_v57 = vmul.f32 %v2314_v2, %v6524_v25  ;;  %v1135_v25 = vadd.f32 %v6590_v18, %v6816_v17  ;;  %v7764_v17 = vmov 1  }
 0x1e6   : > { %5687 = vset.pattern.permute.xlu1 %v7728_v39 }
 0x1e7   : > { %v2371_v55 = vpack.c.bf16 %v2359_v46, %v2358_v57  ;;  %2345 = vperm.xlu1 %5687, %v5744_v43  }
 0x1e8   : > { %v1697_v1 = vpop.f32.mrf.mxu0 }
 0x1e9   : > { %v6934_v36 = vadd.f32 %v1697_v1, %v6813_v59 }
 0x1ea   : > { %5688 = vset.pattern.permute.xlu2 %v7728_v39 }
 0x1eb   : > { %4719 = vmatmul.msk.bf16.gmra.mxu0 %vm985_vm1, %v2371_v55  ;;  %2349 = vperm.xlu2 %5688, %v5745_v28   ;;  %v2322_v40 = vpop.permute.xlu2 %2321  ;;  %v2326_v28 = vpop.permute.xlu0 %2325 }
 0x1ec   : > { %v2360_v26 = vmul.f32 %v2322_v40, %v6566_v31  ;;  %v2361_v18 = vmul.f32 %v2326_v28, %v6559_v15  ;;  %v6964_v40 = vpop.f32.mrf.mxu1 }
 0x1ed   : > { %v1958_v27 = vpop.permute.xlu1 %1957 }
 0x1ee   : > { %v1996_v45 = vmul.f32 %v1958_v27, %v6411_v63  ;;  %v1300_v43 = vpop.f32.mrf.mxu2  ;;  %v2372_v14 = vpack.c.bf16 %v2361_v18, %v2360_v26 }
 0x1ef   : > { %v1319_v59 = vadd.f32 %v1300_v43, %v1135_v25  ;;  %5690 = vset.pattern.permute.xlu1 %v7731_v52 }
 0x1f0   : > { %v2008_v37 = vpack.c.bf16 %v1997_v8, %v1996_v45  ;;  %v6945_v35 = vpop.f32.mrf.mxu0 }
 0x1f2   : > { %4702 = vmatmul.msk.bf16.gmra.mxu2 %vm985_vm1, %v2008_v37 }
 0x1f3   : > { %5691 = vset.pattern.permute.xlu2 %v7764_v17  ;;  %v1782_v43 = vpop.permute.xlu0 %1781 }
 0x1f4   : > { %v1970_v63 = vpop.permute.xlu2 %1969 }
 0x1f5   : > { %v1999_v45 = vmul.f32 %v1970_v63, %v6454_v50 }
 0x1f6   : > { %v2144_v60 = vpop.permute.xlu1 %2143  ;;  %v6967_v25 = vpop.f32.mrf.mxu2 }
 0x1f7   : > { %v2179_v20 = vmul.f32 %v5749_v54, %v2144_v60  ;;  %v1532_v48 = vpop.f32.mrf.mxu3  ;;  %v5750_v60 = vld [vmem:[%s6139_s2 + $0x60] sm:$0xff] }
 0x1f8   : > { %v6953_v4 = vadd.f32 %v1532_v48, %v1319_v59  ;;  %v1702_v62 = vpop.f32.mrf.mxu0 }
 0x1f9   : > { %v2190_v7 = vpack.c.bf16 %v2179_v20, %v2178_v34  ;;  %v6956_v46 = vadd.f32 %v1702_v62, %v6857_v56 }
 0x1fb   : > { %4711 = vmatmul.msk.bf16.gmra.mxu3 %vm985_vm1, %v2190_v7  ;;  %4720 = vmatmul.msk.bf16.gmra.mxu0 %vm985_vm1, %v2372_v14  ;;  %v1978_v62 = vpop.permute.xlu0 %1977 }
 0x1fd   : > { %v2152_v2 = vpop.permute.xlu2 %2151 }
 0x1fe   : > { %v2181_v50 = vmul.f32 %v5750_v60, %v2152_v2 }
 0x1ff   : > { %v1778_v57 = vpop.permute.xlu1 %1777  ;;  %v6969_v27 = vpop.f32.mrf.mxu3 }
 0x200   : > { %v1813_v55 = vmul.f32 %v1778_v57, %v6566_v31  ;;  %v6962_v1 = vpop.f32.mrf.mxu0  ;;  %v2050_v18 = vpop.f32.mrf.mxu2 }
 0x202   : > { %v1824_v8 = vpack.c.bf16 %v1813_v55, %v1812_v23  ;;  %v1814_v55 = vmul.f32 %v1782_v43, %v6559_v15 }
 0x204   : > { %4693 = vmatmul.msk.bf16.gmra.mxu1 %vm985_vm1, %v1824_v8 }
 0x206   : > { %v2330_v56 = vpop.permute.xlu2 %2329 }
 0x208   : > { %v1707_v59 = vpop.f32.mrf.mxu0  ;;  %v1966_v11 = vpop.permute.xlu1 %1965 }
 0x209   : > { %v6973_v31 = vadd.f32 %v1707_v59, %v6884_v42  ;;  %v1998_v22 = vmul.f32 %v1966_v11, %v6457_v24  ;;  %v2232_v47 = vpop.f32.mrf.mxu3  ;;  %v5751_v42 = vld [vmem:[%s6139_s2 + $0x58] sm:$0xff] }
 0x20b   : > { %v2009_v37 = vpack.c.bf16 %v1999_v45, %v1998_v22 }
 0x20c   : > { %v1866_v28 = vpop.f32.mrf.mxu1 }
 0x20d   : > { %v1906_v26 = vadd.f32 %v1866_v28, %v6855_v58  ;;  %4703 = vmatmul.msk.bf16.gmra.mxu2 %vm985_vm1, %v2009_v37  ;;  %v2001_v58 = vmul.f32 %v1978_v62, %v6494_v21  ;;  %v2338_v62 = vpop.permute.xlu0 %2337 }
 0x20f   : > { %v2090_v34 = vadd.f32 %v2050_v18, %v1906_v26  ;;  %v1974_v54 = vpop.permute.xlu2 %1973 }
 0x210   : > { %v6979_v63 = vpop.f32.mrf.mxu0  ;;  %v2000_v7 = vmul.f32 %v1974_v54, %v6499_v12  ;;  %v2052_v12 = vpop.f32.mrf.mxu2 }
 0x211   : > { %v2148_v20 = vpop.permute.xlu1 %2147  ;;  %v2272_v14 = vadd.f32 %v2232_v47, %v2090_v34  ;;  %v2234_v28 = vpop.f32.mrf.mxu3 }
 0x212   : > { %v2180_v48 = vmul.f32 %v5751_v42, %v2148_v20  ;;  %v2010_v8 = vpack.c.bf16 %v2001_v58, %v2000_v7  ;;  %v7765_v20 = vld [vmem:[#allocation22_spill] sm:$0xff] }
 0x213   : > { %v1137_v42 = vadd.f32 %v7765_v20, %v6825_v19  ;;  %v7767_v20 = vld [vmem:[#allocation20_spill] sm:$0xff] }
 0x214   : > { %v2191_v24 = vpack.c.bf16 %v2181_v50, %v2180_v48  ;;  %v1868_v22 = vpop.f32.mrf.mxu1 }
 0x216   : > { %4712 = vmatmul.msk.bf16.gmra.mxu3 %vm985_vm1, %v2191_v24 }
 0x218   : > { %v1712_v57 = vpop.f32.mrf.mxu0  ;;  %v2160_v23 = vpop.permute.xlu2 %2159 }
 0x219   : > { %v6987_v2 = vadd.f32 %v1712_v57, %v6922_v49  ;;  %v2362_v49 = vmul.f32 %v2330_v56, %v6601_v5  ;;  %v2055_v60 = vpop.f32.mrf.mxu2  ;;  %v1320_v57 = vadd.f32 %v6967_v25, %v1137_v42  ;;  %v1907_v25 = vadd.f32 %v1868_v22, %v6870_v41  ;;  %v7768_v42 = vld [vmem:[#allocation19_spill] sm:$0xff] }
 0x21a   : > { %v1786_v45 = vpop.permute.xlu1 %1785  ;;  %v2364_v41 = vmul.f32 %v2338_v62, %v6672_v61 }
 0x21b   : > { %v1815_v59 = vmul.f32 %v1786_v45, %v6601_v5  ;;  %v5752_v5 = vld [vmem:[%s6139_s2 + $0x70] sm:$0xff] }
 0x21c   : > { %v2183_v56 = vmul.f32 %v5752_v5, %v2160_v23 }
 0x21d   : > { %v1825_v11 = vpack.c.bf16 %v1815_v59, %v1814_v55  ;;  %4704 = vmatmul.msk.bf16.gmra.mxu2 %vm985_vm1, %v2010_v8  ;;  %v1552_v8 = vadd.f32 %v6969_v27, %v1320_v57  ;;  %v7018_v27 = vld [vmem:[%s741_s16] ss:$0 sm:$0xff] }
 0x21f   : > { %4694 = vmatmul.msk.bf16.gmra.mxu1 %vm985_vm1, %v1825_v11 }
 0x220   : > { %v6992_v21 = vpop.f32.mrf.mxu0 }
 0x221   : > { %v1794_v37 = vpop.permute.xlu2 %1793 }
 0x222   : > { %v1817_v19 = vmul.f32 %v1794_v37, %v6672_v61  ;;  %v7033_v61 = vld [vmem:[%s744_s30] ss:$0 sm:$0xff] }
 0x223   : > { %v2334_v15 = vpop.permute.xlu1 %2333 }
 0x224   : > { %v2363_v43 = vmul.f32 %v2334_v15, %v6598_v32  ;;  %v2237_v48 = vpop.f32.mrf.mxu3 }
 0x226   : > { %v2373_v26 = vpack.c.bf16 %v2363_v43, %v2362_v49  ;;  %v2168_v49 = vpop.permute.xlu0 %2167 }
 0x227   : > { %v1871_v18 = vpop.f32.mrf.mxu1 }
 0x228   : > { %v1717_v47 = vpop.f32.mrf.mxu0  ;;  %v1908_v34 = vadd.f32 %v1871_v18, %v6882_v29  ;;  %4721 = vmatmul.msk.bf16.gmra.mxu0 %vm985_vm1, %v2373_v26  ;;  %v5753_v29 = vld [vmem:[%s6139_s2 + $0x68] sm:$0xff]  ;;  %s7791_s2 = sld [smem:[#allocation36_spill]] }
 0x229   : > { %v6999_v50 = vadd.f32 %v1717_v47, %v6953_v4  ;;  %v7766_v47 = vld [vmem:[#allocation11_spill] sm:$0xff] }
 0x22a   : > { %v2092_v54 = vadd.f32 %v2055_v60, %v1908_v34  ;;  %v1982_v7 = vpop.permute.xlu2 %1981  ;;  %v2185_v60 = vmul.f32 0.0, %v2168_v49 }
 0x22c   : > { %v2156_v24 = vpop.permute.xlu1 %2155  ;;  %v2274_v58 = vadd.f32 %v2237_v48, %v2092_v54  ;;  %v2057_v54 = vpop.f32.mrf.mxu2  ;;  %v1107_v48 = vadd.f32 %v7768_v42, %v7767_v20 }
 0x22d   : > { %v2182_v55 = vmul.f32 %v5753_v29, %v2156_v24  ;;  %v2239_v5 = vpop.f32.mrf.mxu3  ;;  %v7769_v24 = vld [vmem:[#allocation25_spill] sm:$0xff] }
 0x22f   : > { %v2192_v4 = vpack.c.bf16 %v2183_v56, %v2182_v55  ;;  %v1873_v37 = vpop.f32.mrf.mxu1  ;;  %v7770_v55 = vld [vmem:[#allocation8_spill] sm:$0xff] }
 0x230   : > { %v1719_v45 = vpop.f32.mrf.mxu0 }
 0x231   : > { %v7007_v59 = vadd.f32 %v1719_v45, %v1552_v8  ;;  %4713 = vmatmul.msk.bf16.gmra.mxu3 %vm985_vm1, %v2192_v4  ;;  %v1308_v8 = vadd.f32 %v7770_v55, %v1107_v48 }
 0x233   : > { %v2164_v15 = vpop.permute.xlu2 %2163 }
 0x234   : > { %v2184_v34 = vmul.f32 %v7766_v47, %v2164_v15 }
 0x235   : > { %v1790_v23 = vpop.permute.xlu1 %1789 }
 0x236   : > { %v1816_v11 = vmul.f32 %v1790_v23, %v6598_v32  ;;  %v2091_v32 = vadd.f32 %v2052_v12, %v1907_v25 }
 0x238   : > { %v1826_v43 = vpack.c.bf16 %v1817_v19, %v1816_v11  ;;  %v2414_v26 = vpop.f32.mrf.mxu0  ;;  %v2273_v29 = vadd.f32 %v2234_v28, %v2091_v32  ;;  %v7771_v19 = vld [vmem:[#allocation27_spill] sm:$0xff]  ;;  %v2242_v32 = vpop.f32.mrf.mxu3 }
 0x239   : > { %v2454_v18 = vadd.f32 %v2414_v26, %v2272_v14  ;;  %v2193_v14 = vpack.c.bf16 %v2185_v60, %v2184_v34  ;;  %v1540_v23 = vadd.f32 %v7771_v19, %v1308_v8  ;;  %v7772_v34 = vrot.slane %v7766_v47, 7 }
 0x23a   : > { %4695 = vmatmul.msk.bf16.gmra.mxu1 %vm985_vm1, %v1826_v43 }
 0x23b   : > { %v2473_v22 = vadd.f32 %v7018_v27, %v2454_v18  ;;  %v1725_v49 = vadd.f32 %v6892_v33, %v1540_v23  ;;  %v1923_v60 = vsel %vm834_vm2, %v7772_v34, 0.0 }
 0x23d   : > { %v2489_v45 = vmax.f32 %v2473_v22, 0.0 }
 0x23e   : > { %v2342_v56 = vpop.permute.xlu1 %2341 }
 0x23f   : > { %v2365_v57 = vmul.f32 %v2342_v56, %v7769_v24  ;;  %v2060_v25 = vpop.f32.mrf.mxu2  ;;  %v2508_v43 = vadd.f32 %v7033_v61, %v2489_v45  ;;  %v1802_v45 = vpop.permute.xlu2 %1801 }
 0x240   : > { %v2416_v4 = vpop.f32.mrf.mxu0 }
 0x241   : > { %v2374_v12 = vpack.c.bf16 %v2365_v57, %v2364_v41  ;;  %v2455_v62 = vadd.f32 %v2416_v4, %v2273_v29  ;;  %4714 = vmatmul.msk.bf16.gmra.mxu3 %vm985_vm1, %v2193_v14  ;;  %v1909_v41 = vadd.f32 %v1873_v37, %v1725_v49  ;;  %v2544_v33 = vrot.slane %v2508_v43, 1  ;;  %v7774_v37 = vld [vmem:[#allocation10_spill] sm:$0xff] }
 0x242   : > { %v1876_v11 = vpop.f32.mrf.mxu1 }
 0x243   : > { %v2474_v15 = vadd.f32 %v7018_v27, %v2455_v62  ;;  %v1910_v28 = vadd.f32 %v1876_v11, %v6915_v38  ;;  %4722 = vmatmul.msk.bf16.gmra.mxu0 %vm985_vm1, %v2374_v12  ;;  %v7773_v38 = vld [vmem:[#allocation31_spill] sm:$0xff]  ;;  %v2093_v4 = vadd.f32 %v2057_v54, %v1909_v41  ;;  %v7775_v62 = vrot.slane %v7774_v37, 1 }
 0x244   : > { %v2002_v42 = vmul.f32 %v1982_v7, %v7773_v38  ;;  %v7776_v11 = vld [vmem:[#allocation23_spill] sm:$0xff] }
 0x245   : > { %v2490_v26 = vmax.f32 %v2474_v15, 0.0  ;;  %v2094_v18 = vadd.f32 %v2060_v25, %v1910_v28  ;;  %v1739_v19 = vsel %vm1322_vm3, %v7775_v62, 0.0  ;;  %v7777_v15 = vld [vmem:[#allocation21_spill] sm:$0xff]  ;;  %v2275_v49 = vadd.f32 %v2239_v5, %v2093_v4  ;;  %v7778_v25 = vld [vmem:[#allocation28_spill] sm:$0xff] }
 0x246   : > { %v1112_v28 = vadd.f32 %v7777_v15, %v7776_v11  ;;  %v1819_v54 = vmul.f32 %v1802_v45, %v1739_v19 }
 0x247   : > { %v2509_v22 = vadd.f32 %v7033_v61, %v2490_v26  ;;  %v1986_v14 = vpop.permute.xlu1 %1985  ;;  %v2276_v20 = vadd.f32 %v2242_v32, %v2094_v18 }
 0x248   : > { %v2003_v48 = vmul.f32 %v1986_v14, %v1923_v60  ;;  %v2419_v56 = vpop.f32.mrf.mxu0  ;;  %v1310_v26 = vadd.f32 %v7778_v25, %v1112_v28  ;;  %v7779_v14 = vld [vmem:[#allocation29_spill] sm:$0xff] }
 0x249   : > { %v2545_v57 = vrot.slane %v2509_v22, 1  ;;  %v2456_v29 = vadd.f32 %v2419_v56, %v2274_v58 }
 0x24a   : > { %v2011_v55 = vpack.c.bf16 %v2003_v48, %v2002_v42  ;;  %v1878_v8 = vpop.f32.mrf.mxu1  ;;  %v1542_v38 = vadd.f32 %v7779_v14, %v1310_v26  ;;  %v2062_v42 = vpop.f32.mrf.mxu2  ;;  %v7780_v14 = vld [vmem:[#allocation26_spill] sm:$0xff] }
 0x24b   : > { %v2475_v47 = vadd.f32 %v7018_v27, %v2456_v29  ;;  %v2546_v12 = vsel %vm1322_vm3, %v2544_v33, %v2545_v57 }
 0x24c   : > { %4705 = vmatmul.msk.bf16.gmra.mxu2 %vm985_vm1, %v2011_v55  ;;  %v2592_v7 = vmax.f32 %v2508_v43, %v2546_v12  ;;  %v1727_v55 = vadd.f32 %v6924_v3, %v1542_v38  ;;  %v7781_v38 = vld [vmem:[#allocation24_spill] sm:$0xff] }
 0x24d   : > { %v2491_v23 = vmax.f32 %v2475_v47, 0.0  ;;  %v2350_v47 = vpop.permute.xlu2 %2349 }
 0x24e   : > { %v2367_v62 = vmul.f32 0.0, %v2350_v47 }
 0x24f   : > { %v2510_v58 = vadd.f32 %v7033_v61, %v2491_v23 }
 0x250   : > { %v2421_v18 = vpop.f32.mrf.mxu0  ;;  %v1798_v34 = vpop.permute.xlu1 %1797 }
 0x251   : > { %v2547_v60 = vrot.slane %v2510_v58, 1  ;;  %v2457_v32 = vadd.f32 %v2421_v18, %v2275_v49  ;;  %v1818_v41 = vmul.f32 %v1798_v34, %v7769_v24  ;;  %v1911_v24 = vadd.f32 %v1878_v8, %v1727_v55  ;;  %v2244_v49 = vpop.f32.mrf.mxu3 }
 0x252   : > { %v1881_v43 = vpop.f32.mrf.mxu1 }
 0x253   : > { %v2476_v48 = vadd.f32 %v7018_v27, %v2457_v32  ;;  %v1827_v56 = vpack.c.bf16 %v1819_v54, %v1818_v41  ;;  %v1912_v33 = vadd.f32 %v1881_v43, %v6934_v36  ;;  %v2548_v5 = vsel %vm1322_vm3, %v2545_v57, %v2547_v60 }
 0x254   : > { %v2593_v29 = vmax.f32 %v2509_v22, %v2548_v5  ;;  %v2095_v57 = vadd.f32 %v2062_v42, %v1911_v24  ;;  %v1117_v42 = vadd.f32 %v7781_v38, %v7780_v14 }
 0x255   : > { %v2492_v4 = vmax.f32 %v2476_v48, 0.0  ;;  %4696 = vmatmul.msk.bf16.gmra.mxu1 %vm985_vm1, %v1827_v56 }
 0x256   : > { %v2608_v45 = vmax.f32 %v2592_v7, %v2593_v29  ;;  %v2277_v34 = vadd.f32 %v2244_v49, %v2095_v57 }
 0x257   : > { %v2511_v12 = vadd.f32 %v7033_v61, %v2492_v4 }
 0x258   : > { %v2424_v37 = vpop.f32.mrf.mxu0 }
 0x259   : > { %v2549_v23 = vrot.slane %v2511_v12, 1  ;;  %v2458_v11 = vadd.f32 %v2424_v37, %v2276_v20  ;;  %v2346_v15 = vpop.permute.xlu1 %2345 }
 0x25a   : > { %v2366_v28 = vmul.f32 %v2346_v15, %v1739_v19  ;;  %v2065_v36 = vpop.f32.mrf.mxu2 }
 0x25b   : > { %v2477_v22 = vadd.f32 %v7018_v27, %v2458_v11  ;;  %v2096_v3 = vadd.f32 %v2065_v36, %v1912_v33  ;;  %v2550_v54 = vsel %vm1322_vm3, %v2547_v60, %v2549_v23  ;;  %v7782_v33 = vld [vmem:[#allocation17_spill] sm:$0xff] }
 0x25c   : > { %v2375_v25 = vpack.c.bf16 %v2367_v62, %v2366_v28  ;;  %v2594_v26 = vmax.f32 %v2510_v58, %v2550_v54  ;;  %v1312_v5 = vadd.f32 %v7782_v33, %v1117_v42  ;;  %v7784_v33 = vld [vmem:[#allocation16_spill] sm:$0xff] }
 0x25d   : > { %v2493_v7 = vmax.f32 %v2477_v22, 0.0 }
 0x25e   : > { %4723 = vmatmul.msk.bf16.gmra.mxu0 %vm985_vm1, %v2375_v25  ;;  %v2609_v8 = vmax.f32 %v2593_v29, %v2594_v26  ;;  %v1544_v4 = vadd.f32 %v6823_v0, %v1312_v5 }
 0x25f   : > { %v2512_v18 = vadd.f32 %v7033_v61, %v2493_v7 }
 0x260   : > { %v2426_v20 = vpop.f32.mrf.mxu0  ;;  %v7069_v32 = vpack.c.bf16 %v2609_v8, %v2608_v45  ;;  %v1883_v45 = vpop.f32.mrf.mxu1  ;;  %v1729_v37 = vadd.f32 %v6945_v35, %v1544_v4 }
 0x261   : > { %v2551_v19 = vrot.slane %v2512_v18, 1  ;;  %v2459_v41 = vadd.f32 %v2426_v20, %v2277_v34 }
 0x262   : > { %v2067_v15 = vpop.f32.mrf.mxu2  ;;  %v1913_v28 = vadd.f32 %v1883_v45, %v1729_v37 }
 0x263   : > { %v2478_v43 = vadd.f32 %v7018_v27, %v2459_v41  ;;  %v2247_v60 = vpop.f32.mrf.mxu3  ;;  %v2552_v58 = vsel %vm1322_vm3, %v2549_v23, %v2551_v19 }
 0x264   : > { %v2278_v48 = vadd.f32 %v2247_v60, %v2096_v3  ;;  %v2595_v56 = vmax.f32 %v2511_v12, %v2552_v58  ;;  %v2097_v57 = vadd.f32 %v2067_v15, %v1913_v28 }
 0x265   : > { %v2494_v29 = vmax.f32 %v2478_v43, 0.0 }
 0x266   : > { %v2610_v55 = vmax.f32 %v2594_v26, %v2595_v56 }
 0x267   : > { %v2513_v47 = vadd.f32 %v7033_v61, %v2494_v29 }
 0x268   : > { %v2429_v24 = vpop.f32.mrf.mxu0 }
 0x269   : > { %v2553_v62 = vrot.slane %v2513_v47, 1  ;;  %v2460_v11 = vadd.f32 %v2429_v24, %v2278_v48 }
 0x26b   : > { %v2479_v23 = vadd.f32 %v7018_v27, %v2460_v11  ;;  %v2554_v12 = vsel %vm1322_vm3, %v2551_v19, %v2553_v62  ;;  %v2249_v36 = vpop.f32.mrf.mxu3 }
 0x26c   : > { %v2596_v49 = vmax.f32 %v2512_v18, %v2554_v12  ;;  %v2279_v54 = vadd.f32 %v2249_v36, %v2097_v57 }
 0x26d   : > { %v2495_v22 = vmax.f32 %v2479_v23, 0.0 }
 0x26e   : > { %v2611_v3 = vmax.f32 %v2595_v56, %v2596_v49  ;;  %v7783_v56 = vld [vmem:[#allocation9_spill] sm:$0xff] }
 0x26f   : > { %v2514_v0 = vadd.f32 %v7033_v61, %v2495_v22  ;;  %v1122_v5 = vadd.f32 %v7784_v33, %v7783_v56 }
 0x270   : > { %v2431_v25 = vpop.f32.mrf.mxu0  ;;  %v7082_v26 = vpack.c.bf16 %v2611_v3, %v2610_v55 }
 0x271   : > { %v2555_v35 = vrot.slane %v2514_v0, 1  ;;  %v2461_v7 = vadd.f32 %v2431_v25, %v2279_v54  ;;  %v1314_v4 = vadd.f32 %v6840_v44, %v1122_v5 }
 0x273   : > { %v2480_v8 = vadd.f32 %v7018_v27, %v2461_v7  ;;  %v2556_v34 = vsel %vm1322_vm3, %v2553_v62, %v2555_v35  ;;  %v1546_v24 = vadd.f32 %v6873_v9, %v1314_v4 }
 0x274   : > { %v2597_v20 = vmax.f32 %v2513_v47, %v2556_v34 }
 0x275   : > { %v2496_v41 = vmax.f32 %v2480_v8, 0.0  ;;  %v2070_v58 = vpop.f32.mrf.mxu2  ;;  %v1731_v62 = vadd.f32 %v6962_v1, %v1546_v24 }
 0x276   : > { %v2612_v19 = vmax.f32 %v2596_v49, %v2597_v20 }
 0x277   : > { %v2515_v18 = vadd.f32 %v7033_v61, %v2496_v41 }
 0x278   : > { %v2434_v45 = vpop.f32.mrf.mxu0 }
 0x279   : > { %v2557_v14 = vrot.slane %v2515_v18, 1 }
 0x27b   : > { %v2558_v38 = vsel %vm1322_vm3, %v2555_v35, %v2557_v14 }
 0x27c   : > { %v2598_v42 = vmax.f32 %v2514_v0, %v2558_v38  ;;  %v7786_v38 = vld [vmem:[#allocation13_spill] sm:$0xff] }
 0x27d   : > { %v2072_v12 = vpop.f32.mrf.mxu2 }
 0x27e   : > { %v2613_v43 = vmax.f32 %v2597_v20, %v2598_v42  ;;  %v2252_v55 = vpop.f32.mrf.mxu3 }
 0x280   : > { %v7088_v60 = vpack.c.bf16 %v2613_v43, %v2612_v19  ;;  %v2436_v44 = vpop.f32.mrf.mxu0  ;;  %v7785_v19 = vld [vmem:[#allocation15_spill] sm:$0xff] }
 0x281   : > { %v1886_v48 = vpop.f32.mrf.mxu1  ;;  %v1127_v43 = vadd.f32 %v7786_v38, %v7785_v19 }
 0x282   : > { %v1914_v29 = vadd.f32 %v1886_v48, %v6956_v46 }
 0x283   : > { %v1316_v33 = vadd.f32 %v6900_v16, %v1127_v43 }
 0x284   : > { %v2098_v47 = vadd.f32 %v2070_v58, %v1914_v29 }
 0x286   : > { %v2280_v37 = vadd.f32 %v2252_v55, %v2098_v47  ;;  %v2254_v57 = vpop.f32.mrf.mxu3 }
 0x288   : > { %v2462_v11 = vadd.f32 %v2434_v45, %v2280_v37 }
 0x289   : > { %v1888_v15 = vpop.f32.mrf.mxu1 }
 0x28a   : > { %v2481_v28 = vadd.f32 %v7018_v27, %v2462_v11  ;;  %v1915_v23 = vadd.f32 %v1888_v15, %v1731_v62 }
 0x28c   : > { %v2497_v36 = vmax.f32 %v2481_v28, 0.0  ;;  %v2099_v49 = vadd.f32 %v2072_v12, %v1915_v23 }
 0x28e   : > { %v2281_v46 = vadd.f32 %v2254_v57, %v2099_v49  ;;  %v2516_v22 = vadd.f32 %v7033_v61, %v2497_v36 }
 0x290   : > { %v2463_v3 = vadd.f32 %v2436_v44, %v2281_v46  ;;  %v2559_v0 = vrot.slane %v2516_v22, 1  ;;  %v2075_v58 = vpop.f32.mrf.mxu2  ;;  %v7787_v44 = vld [vmem:[#allocation30_spill] sm:$0xff] }
 0x292   : > { %v2482_v9 = vadd.f32 %v7018_v27, %v2463_v3  ;;  %v2560_v54 = vsel %vm1322_vm3, %v2557_v14, %v2559_v0  ;;  %v1132_v3 = vadd.f32 %v6964_v40, %v7787_v44 }
 0x293   : > { %v2599_v1 = vmax.f32 %v2515_v18, %v2560_v54 }
 0x294   : > { %v2498_v25 = vmax.f32 %v2482_v9, 0.0  ;;  %v1318_v54 = vadd.f32 %v6930_v6, %v1132_v3 }
 0x295   : > { %v2614_v35 = vmax.f32 %v2598_v42, %v2599_v1  ;;  %v1548_v42 = vadd.f32 %v6902_v10, %v1316_v33 }
 0x296   : > { %v2517_v7 = vadd.f32 %v7033_v61, %v2498_v25  ;;  %v1550_v40 = vadd.f32 %v6942_v53, %v1318_v54  ;;  %v7790_v54 = vmov 3  }
 0x297   : > { %v1733_v29 = vadd.f32 %v6979_v63, %v1548_v42 }
 0x298   : > { %v2561_v8 = vrot.slane %v2517_v7, 1  ;;  %v2077_v37 = vpop.f32.mrf.mxu2  ;;  %v1735_v6 = vadd.f32 %v6992_v21, %v1550_v40 }
 0x299   : > { %v2257_v5 = vpop.f32.mrf.mxu3 }
 0x29a   : > { %v2562_v34 = vsel %vm1322_vm3, %v2559_v0, %v2561_v8 }
 0x29b   : > { %v2600_v20 = vmax.f32 %v2516_v22, %v2562_v34 }
 0x29c   : > { %v1891_v41 = vpop.f32.mrf.mxu1 }
 0x29d   : > { %v1916_v48 = vadd.f32 %v1891_v41, %v6973_v31  ;;  %v2615_v56 = vmax.f32 %v2599_v1, %v2600_v20 }
 0x29f   : > { %v7106_v14 = vpack.c.bf16 %v2615_v56, %v2614_v35  ;;  %v2100_v18 = vadd.f32 %v2075_v58, %v1916_v48 }
 0x2a0   : > { %v2080_v1 = vpop.f32.mrf.mxu2 }
 0x2a1   : > { %v2282_v4 = vadd.f32 %v2257_v5, %v2100_v18  ;;  %v2259_v15 = vpop.f32.mrf.mxu3 }
 0x2a4   : > { %v1893_v55 = vpop.f32.mrf.mxu1 }
 0x2a5   : > { %v1917_v47 = vadd.f32 %v1893_v55, %v1733_v29  ;;  %v2439_v45 = vpop.f32.mrf.mxu0 }
 0x2a6   : > { %v2464_v24 = vadd.f32 %v2439_v45, %v2282_v4 }
 0x2a7   : > { %v2101_v62 = vadd.f32 %v2077_v37, %v1917_v47  ;;  %v7137_v47 = vld [vmem:[%s7788_s17 + $0x10] sm:$0xff] }
 0x2a8   : > { %v2483_v31 = vadd.f32 %v7018_v27, %v2464_v24  ;;  %v2082_v56 = vpop.f32.mrf.mxu2 }
 0x2a9   : > { %v2283_v28 = vadd.f32 %v2259_v15, %v2101_v62  ;;  %v7146_v15 = vld [vmem:[%s7788_s17] sm:$0xff] }
 0x2aa   : > { %v2499_v11 = vmax.f32 %v2483_v31, 0.0  ;;  %2699 = vperm.xlu0 %5689, %v7146_v15   ;;  %2843 = vperm.xlu2 %5691, %v7146_v15  }
 0x2ac   : > { %v2518_v16 = vadd.f32 %v7033_v61, %v2499_v11 }
 0x2ad   : > { %v2441_v23 = vpop.f32.mrf.mxu0 }
 0x2ae   : > { %v2563_v12 = vrot.slane %v2518_v16, 1  ;;  %v2465_v10 = vadd.f32 %v2441_v23, %v2283_v28  ;;  %v7789_v23 = vmov 2  }
 0x2b0   : > { %v2484_v36 = vadd.f32 %v7018_v27, %v2465_v10  ;;  %v2564_v63 = vsel %vm1322_vm3, %v2561_v8, %v2563_v12 }
 0x2b1   : > { %v2601_v49 = vmax.f32 %v2517_v7, %v2564_v63  ;;  %v7123_v7 = vld [vmem:[%s7788_s17 + $0x8] sm:$0xff] }
 0x2b2   : > { %v2500_v57 = vmax.f32 %v2484_v36, 0.0  ;;  %2704 = vperm.xlu1 %5690, %v7123_v7   ;;  %5693 = vset.pattern.permute.xlu2 %v7731_v52 }
 0x2b3   : > { %v2616_v46 = vmax.f32 %v2600_v20, %v2601_v49  ;;  %2709 = vperm.xlu2 %5693, %v7137_v47  }
 0x2b4   : > { %v2519_v22 = vadd.f32 %v7033_v61, %v2500_v57  ;;  %v2262_v41 = vpop.f32.mrf.mxu3 }
 0x2b6   : > { %v2565_v0 = vrot.slane %v2519_v22, 1 }
 0x2b7   : > { %v1896_v9 = vpop.f32.mrf.mxu1 }
 0x2b8   : > { %v1918_v25 = vadd.f32 %v1896_v9, %v6987_v2  ;;  %v2566_v35 = vsel %vm1322_vm3, %v2563_v12, %v2565_v0 }
 0x2b9   : > { %v2602_v8 = vmax.f32 %v2518_v16, %v2566_v35 }
 0x2ba   : > { %v2102_v34 = vadd.f32 %v2080_v1, %v1918_v25  ;;  %5692 = vset.pattern.permute.xlu1 %v7764_v17 }
 0x2bb   : > { %v2617_v20 = vmax.f32 %v2601_v49, %v2602_v8  ;;  %2847 = vperm.xlu1 %5692, %v7123_v7   ;;  %5694 = vset.pattern.permute.xlu2 %v7764_v17 }
 0x2bc   : > { %v2284_v38 = vadd.f32 %v2262_v41, %v2102_v34  ;;  %v2264_v53 = vpop.f32.mrf.mxu3 }
 0x2bd   : > { %v7127_v19 = vpack.c.bf16 %v2617_v20, %v2616_v46  ;;  %v7163_v20 = vld [vmem:[%s7788_s17 + $0x18] sm:$0xff] }
 0x2be   : > { %2714 = vperm.xlu0 %5689, %v7163_v20   ;;  %2855 = vperm.xlu2 %5694, %v7163_v20  }
 0x2bf   : > { %v1898_v2 = vpop.f32.mrf.mxu1 }
 0x2c0   : > { %v1919_v43 = vadd.f32 %v1898_v2, %v1735_v6  ;;  %v2444_v58 = vpop.f32.mrf.mxu0 }
 0x2c1   : > { %v2466_v48 = vadd.f32 %v2444_v58, %v2284_v38 }
 0x2c2   : > { %v2103_v33 = vadd.f32 %v2082_v56, %v1919_v43 }
 0x2c3   : > { %v2485_v18 = vadd.f32 %v7018_v27, %v2466_v48  ;;  %2851 = vperm.xlu1 %5692, %v7137_v47  }
 0x2c4   : > { %v2285_v29 = vadd.f32 %v2264_v53, %v2103_v33  ;;  %v2267_v46 = vpop.f32.mrf.mxu3 }
 0x2c5   : > { %v2501_v42 = vmax.f32 %v2485_v18, 0.0 }
 0x2c6   : > { %5695 = vset.pattern.permute.xlu0 %v7789_v23  ;;  %5697 = vset.pattern.permute.xlu2 %v7790_v54 }
 0x2c7   : > { %v2520_v5 = vadd.f32 %v7033_v61, %v2501_v42  ;;  %2940 = vperm.xlu0 %5695, %v7146_v15   ;;  %3036 = vperm.xlu2 %5697, %v7146_v15  }
 0x2c8   : > { %v2446_v55 = vpop.f32.mrf.mxu0 }
 0x2c9   : > { %v2567_v21 = vrot.slane %v2520_v5, 1  ;;  %v2467_v4 = vadd.f32 %v2446_v55, %v2285_v29 }
 0x2cb   : > { %v2486_v45 = vadd.f32 %v7018_v27, %v2467_v4  ;;  %v2568_v24 = vsel %vm1322_vm3, %v2565_v0, %v2567_v21  ;;  %5696 = vset.pattern.permute.xlu1 %v7789_v23 }
 0x2cc   : > { %v2603_v37 = vmax.f32 %v2519_v22, %v2568_v24  ;;  %2944 = vperm.xlu1 %5696, %v7123_v7   ;;  %v2269_v34 = vpop.f32.mrf.mxu3  ;;  %v5417_v24 = vld [vmem:[%s7198_s20 + $0x98] sm:$0xff] }
 0x2cd   : > { %v2502_v62 = vmax.f32 %v2486_v45, 0.0  ;;  %v5421_v45 = vld [vmem:[%s7198_s20 + $0x18] sm:$0xff]  ;;  %2815 = vmatpush.bf16.msra.mxu3 %v5417_v24 }
 0x2ce   : > { %v2618_v31 = vmax.f32 %v2602_v8, %v2603_v37  ;;  %2766 = vmatpush.bf16.msrb.mxu2 %v5421_v45 }
 0x2cf   : > { %v2521_v11 = vadd.f32 %v7033_v61, %v2502_v62  ;;  %v2085_v12 = vpop.f32.mrf.mxu2  ;;  %5700 = vset.pattern.permute.xlu0 %v7727_v13  ;;  %5699 = vset.pattern.permute.xlu2 %v7727_v13 }
 0x2d0   : > { %3136 = vperm.xlu0 %5700, %v7123_v7   ;;  %3132 = vperm.xlu2 %5699, %v7146_v15  }
 0x2d1   : > { %v2569_v16 = vrot.slane %v2521_v11, 1 }
 0x2d2   : > { %v1901_v28 = vpop.f32.mrf.mxu1 }
 0x2d3   : > { %v1920_v10 = vadd.f32 %v1901_v28, %v6999_v50  ;;  %v2570_v36 = vsel %vm1322_vm3, %v2567_v21, %v2569_v16  ;;  %v5419_v28 = vld [vmem:[%s7198_s20 + $0x8] sm:$0xff] }
 0x2d4   : > { %v2604_v63 = vmax.f32 %v2520_v5, %v2570_v36  ;;  %5698 = vset.pattern.permute.xlu1 %v7790_v54  ;;  %v5418_v36 = vld [vmem:[%s7198_s20] sm:$0xff] }
 0x2d5   : > { %v2104_v49 = vadd.f32 %v2085_v12, %v1920_v10  ;;  %3040 = vperm.xlu1 %5698, %v7123_v7  }
 0x2d6   : > { %v2619_v57 = vmax.f32 %v2603_v37, %v2604_v63 }
 0x2d7   : > { %v2286_v3 = vadd.f32 %v2267_v46, %v2104_v49  ;;  %v2087_v1 = vpop.f32.mrf.mxu2 }
 0x2d8   : > { %v2629_v22 = vpack.c.bf16 %v2619_v57, %v2618_v31  ;;  %3140 = vperm.xlu0 %5700, %v7137_v47   ;;  %5702 = vset.pattern.permute.xlu2 %v7789_v23  ;;  %v5415_v31 = vld [vmem:[%s7198_s20 + $0x88] sm:$0xff] }
 0x2d9   : > { %2952 = vperm.xlu2 %5702, %v7163_v20  }
 0x2da   : > { %v1903_v44 = vpop.f32.mrf.mxu1 }
 0x2db   : > { %v1921_v0 = vadd.f32 %v1903_v44, %v7007_v59  ;;  %v2449_v9 = vpop.f32.mrf.mxu0  ;;  %v5433_v44 = vld [vmem:[%s7198_s20 + $0x78] sm:$0xff] }
 0x2dc   : > { %v2468_v50 = vadd.f32 %v2449_v9, %v2286_v3  ;;  %v5432_v9 = vld [vmem:[%s7198_s20 + $0x70] sm:$0xff] }
 0x2dd   : > { %v2105_v25 = vadd.f32 %v2087_v1, %v1921_v0  ;;  %5701 = vset.pattern.permute.xlu1 %v7789_v23  ;;  %v5437_v1 = vld [vmem:[%s7198_s20 + $0xb8] sm:$0xff] }
 0x2de   : > { %v2487_v35 = vadd.f32 %v7018_v27, %v2468_v50  ;;  %2948 = vperm.xlu1 %5701, %v7137_v47   ;;  %v5429_v50 = vld [vmem:[%s7198_s20 + $0x58] sm:$0xff] }
 0x2df   : > { %v2287_v40 = vadd.f32 %v2269_v34, %v2105_v25  ;;  %v5436_v34 = vld [vmem:[%s7198_s20 + $0xb0] sm:$0xff] }
 0x2e0   : > { %v2503_v8 = vmax.f32 %v2487_v35, 0.0  ;;  %5707 = vset.pattern.permute.xlu0 %v7723_v30  ;;  %v5431_v35 = vld [vmem:[%s7198_s20 + $0x68] sm:$0xff] }
 0x2e1   : > { %5704 = vset.pattern.permute.xlu2 %v7790_v54  ;;  %3222 = vperm.xlu0 %5707, %v7123_v7  }
 0x2e2   : > { %v2522_v59 = vadd.f32 %v7033_v61, %v2503_v8  ;;  %3048 = vperm.xlu2 %5704, %v7163_v20   ;;  %v5428_v8 = vld [vmem:[%s7198_s20 + $0x50] sm:$0xff] }
 0x2e3   : > { %v2451_v41 = vpop.f32.mrf.mxu0 }
 0x2e4   : > { %v2571_v6 = vrot.slane %v2522_v59, 1  ;;  %v2469_v2 = vadd.f32 %v2451_v41, %v2287_v40  ;;  %v5430_v40 = vld [vmem:[%s7198_s20 + $0x60] sm:$0xff]  ;;  %v5427_v41 = vld [vmem:[%s7198_s20 + $0x48] sm:$0xff] }
 0x2e6   : > { %v2488_v38 = vadd.f32 %v7018_v27, %v2469_v2  ;;  %v2572_v43 = vsel %vm1322_vm3, %v2569_v16, %v2571_v6  ;;  %5703 = vset.pattern.permute.xlu1 %v7790_v54  ;;  %v5414_v16 = vld [vmem:[%s7198_s20 + $0x80] sm:$0xff] }
 0x2e7   : > { %v2605_v58 = vmax.f32 %v2521_v11, %v2572_v43  ;;  %3044 = vperm.xlu1 %5703, %v7137_v47   ;;  %v5420_v11 = vld [vmem:[%s7198_s20 + $0x10] sm:$0xff] }
 0x2e8   : > { %v2504_v48 = vmax.f32 %v2488_v38, 0.0  ;;  %2767 = vmatpush.bf16.msrb.mxu2 %v5420_v11 }
 0x2e9   : > { %v2620_v56 = vmax.f32 %v2604_v63, %v2605_v58  ;;  %3226 = vperm.xlu0 %5707, %v7137_v47   ;;  %v5422_v63 = vld [vmem:[%s7198_s20 + $0x20] sm:$0xff] }
 0x2ea   : > { %v2523_v33 = vadd.f32 %v7033_v61, %v2504_v48  ;;  %5706 = vset.pattern.permute.xlu2 %v7723_v30 }
 0x2eb   : > { %3218 = vperm.xlu2 %5706, %v7146_v15  }
 0x2ec   : > { %v2573_v18 = vrot.slane %v2523_v33, 1  ;;  %2768 = vmatpush.bf16.msrb.mxu2 %v5419_v28 }
 0x2ee   : > { %v2574_v27 = vsel %vm1322_vm3, %v2571_v6, %v2573_v18  ;;  %v2591_v42 = vsel %vm1322_vm3, %v2573_v18, 0.0  ;;  %v5435_v6 = vld [vmem:[%s7198_s20 + $0xa8] sm:$0xff] }
 0x2ef   : > { %v2606_v53 = vmax.f32 %v2522_v59, %v2574_v27  ;;  %v2607_v5 = vmax.f32 %v2523_v33, %v2591_v42  ;;  %5705 = vset.pattern.permute.xlu1 %v7727_v13 }
 0x2f0   : > { %3144 = vperm.xlu1 %5705, %v7163_v20   ;;  %2769 = vmatpush.bf16.msrb.mxu2 %v5418_v36 }
 0x2f1   : > { %v2622_v61 = vmax.f32 %v2606_v53, %v2607_v5  ;;  %v2623_v29 = vmax.f32 %v2607_v5, 0.0  ;;  %v2621_v55 = vmax.f32 %v2605_v58, %v2606_v53  ;;  %5714 = vset.pattern.permute.xlu0 %v7729_v51  ;;  %v5426_v5 = vld [vmem:[%s7198_s20 + $0x40] sm:$0xff] }
 0x2f2   : > { %3316 = vperm.xlu0 %5714, %v7163_v20  }
 0x2f3   : > { %v2631_v21 = vpack.c.bf16 %v2623_v29, %v2622_v61  ;;  %v2630_v4 = vpack.c.bf16 %v2621_v55, %v2620_v56  ;;  %5709 = vset.pattern.permute.xlu2 %v7729_v51  ;;  %v5434_v61 = vld [vmem:[%s7198_s20 + $0xa0] sm:$0xff] }
 0x2f4   : > { %3308 = vperm.xlu2 %5709, %v7123_v7   ;;  %3004 = vmatpush.bf16.msra.mxu2 %v5429_v50 }
 0x2f5   : > { %2644 = vmatpush.bf16.msra.mxu1 %v2631_v21 }
 0x2f8   : > { %5708 = vset.pattern.permute.xlu1 %v7729_v51  ;;  %3005 = vmatpush.bf16.msra.mxu2 %v5428_v8 }
 0x2f9   : > { %2645 = vmatpush.bf16.msra.mxu1 %v2630_v4  ;;  %3304 = vperm.xlu1 %5708, %v7146_v15  }
 0x2fa   : > { %5719 = vset.pattern.permute.xlu0 %v7790_v54 }
 0x2fc   : > { %5711 = vset.pattern.permute.xlu2 %v7728_v39  ;;  %3006 = vmatpush.bf16.msra.mxu2 %v5427_v41  ;;  %v5441_v41 = vld [vmem:[%s7198_s20 + $0xd8] sm:$0xff] }
 0x2fd   : > { %2646 = vmatpush.bf16.msra.mxu1 %v2629_v22  ;;  %3394 = vperm.xlu2 %5711, %v7123_v7  }
 0x300   : > { %3007 = vmatpush.bf16.msra.mxu2 %v5426_v5 }
 0x301   : > { %2647 = vmatpush.bf16.msra.mxu1 %v7127_v19  ;;  %5710 = vset.pattern.permute.xlu1 %v7728_v39  ;;  %v5416_v19 = vld [vmem:[%s7198_s20 + $0x90] sm:$0xff] }
 0x302   : > { %3390 = vperm.xlu1 %5710, %v7146_v15   ;;  %2816 = vmatpush.bf16.msra.mxu3 %v5416_v19  ;;  %v5424_v15 = vld [vmem:[%s7198_s20 + $0x30] sm:$0xff] }
 0x304   : > { %v2844_v12 = vpop.permute.xlu2 %2843 }
 0x305   : > { %2648 = vmatpush.bf16.msra.mxu1 %v7106_v14  ;;  %v5412_v14 = vld [vmem:[%s7634_s4] sm:$0xff]  ;;  %5713 = vset.pattern.permute.xlu2 %v7729_v51 }
 0x306   : > { %3312 = vperm.xlu2 %5713, %v7137_v47   ;;  %2817 = vmatpush.bf16.msra.mxu3 %v5415_v31 }
 0x309   : > { %2649 = vmatpush.bf16.msra.mxu1 %v7088_v60 }
 0x30a   : > { %5712 = vset.pattern.permute.xlu1 %v7723_v30  ;;  %2818 = vmatpush.bf16.msra.mxu3 %v5414_v16 }
 0x30b   : > { %3230 = vperm.xlu1 %5712, %v7163_v20  }
 0x30d   : > { %2650 = vmatpush.bf16.msra.mxu1 %v7082_v26  ;;  %v7264_v57 = vpop.permute.xlu2 %2709 }
 0x30e   : > { %5716 = vset.pattern.permute.xlu2 %v7728_v39  ;;  %3100 = vmatpush.bf16.msrb.mxu3 %v5433_v44  ;;  %v5445_v44 = vld [vmem:[%s7198_s20 + $0xf8] sm:$0xff] }
 0x30f   : > { %3402 = vperm.xlu2 %5716, %v7163_v20  }
 0x311   : > { %2651 = vmatpush.bf16.msra.mxu1 %v7069_v32  ;;  %v5413_v32 = vld [vmem:[%s7634_s4 + $0x8] sm:$0xff] }
 0x312   : > { %3101 = vmatpush.bf16.msrb.mxu3 %v5432_v9 }
 0x313   : > { %5715 = vset.pattern.permute.xlu1 %v7728_v39 }
 0x314   : > { %2652 = vmatmul.bf16.vlgmr.msra.gmra.mxu1 %v5412_v14  ;;  %3398 = vperm.xlu1 %5715, %v7137_v47   ;;  %v5425_v47 = vld [vmem:[%s7198_s20 + $0x38] sm:$0xff] }
 0x315   : > { %2907 = vmatpush.bf16.msrb.mxu1 %v5425_v47 }
 0x316   : > { %3102 = vmatpush.bf16.msrb.mxu3 %v5431_v35 }
 0x317   : > { %5718 = vset.pattern.permute.xlu2 %v7789_v23  ;;  %v5423_v23 = vld [vmem:[%s7198_s20 + $0x28] sm:$0xff] }
 0x318   : > { %v7271_v3 = vpop.permute.xlu2 %2855 }
 0x319   : > { %2908 = vmatpush.bf16.msrb.mxu1 %v5424_v15 }
 0x31a   : > { %3103 = vmatpush.bf16.msrb.mxu3 %v5430_v40 }
 0x31c   : > { %5717 = vset.pattern.permute.xlu1 %v7731_v52  ;;  %v7248_v37 = vpop.permute.xlu0 %2699 }
 0x31d   : > { %2909 = vmatpush.bf16.msrb.mxu1 %v5423_v23 }
 0x321   : > { %2910 = vmatpush.bf16.msrb.mxu1 %v5422_v63  ;;  %v7290_v2 = vpop.permute.xlu2 %3036 }
 0x324   : > { %2657 = vmatmul.bf16.gmra.mxu1 %v5413_v32  ;;  %v7238_v26 = vpop.permute.xlu1 %2704 }
 0x325   : > { %3196 = vmatpush.bf16.msra.mxu1 %v5437_v1 }
 0x329   : > { %3197 = vmatpush.bf16.msra.mxu1 %v5436_v34 }
 0x32a   : > { %v7322_v32 = vpop.permute.xlu2 %3132 }
 0x32d   : > { %v7240_v60 = vpop.permute.xlu1 %2847  ;;  %3198 = vmatpush.bf16.msra.mxu1 %v5435_v6  ;;  %v5449_v6 = vld [vmem:[%s7198_s20 + $0x118] sm:$0xff] }
 0x330   : > { %v7258_v10 = vpop.permute.xlu0 %2714 }
 0x331   : > { %3199 = vmatpush.bf16.msra.mxu1 %v5434_v61  ;;  %v5448_v61 = vld [vmem:[%s7198_s20 + $0x110] sm:$0xff] }
 0x333   : > { %v7351_v63 = vpop.permute.xlu2 %2952 }
 0x335   : > { %v7242_v52 = vpop.permute.xlu1 %2851 }
 0x339   : > { %v7266_v46 = vpop.permute.xlu0 %2940 }
 0x33e   : > { %v7244_v7 = vpop.permute.xlu1 %2944 }
 0x342   : > { %v7273_v0 = vpop.permute.xlu0 %3136 }
 0x347   : > { %v7250_v62 = vpop.permute.xlu1 %3040 }
 0x34a   : > { %v7295_v58 = vpop.permute.xlu0 %3140 }
 0x350   : > { %v7262_v49 = vpop.permute.xlu1 %2948 }
 0x353   : > { %v7324_v19 = vpop.permute.xlu0 %3222 }
 0x359   : > { %v7268_v22 = vpop.permute.xlu1 %3044 }
 0x35b   : > { %v3227_v1 = vpop.permute.xlu0 %3226 }
 0x362   : > { %v7280_v25 = vpop.permute.xlu1 %3144 }
 0x36b   : > { %v7302_v27 = vpop.permute.xlu1 %3304 }
 0x374   : > { %v7327_v47 = vpop.permute.xlu1 %3390 }
 0x391   : > { %v7276_v54 = vpop.f32.mrf.mxu1 }
 0x392   : > { %v2830_v20 = vrot.slane %v7276_v54, 4  ;;  %v2685_v59 = vrot.slane %v7276_v54, 3 }
 0x394   : > { %v2841_v38 = vsel %vm1010_vm0, 0.0, %v2830_v20  ;;  %v2696_v18 = vsel %vm2684_vm4, 0.0, %v2685_v59 }
 0x395   : > { %v2858_v29 = vmul.f32 %v2844_v12, %v2841_v38  ;;  %v2717_v21 = vmul.f32 %v7248_v37, %v2696_v18 }
 0x399   : > { %v7293_v43 = vpop.f32.mrf.mxu1 }
 0x39a   : > { %v2669_v48 = vpack.c.bf16 %v7293_v43, %v7276_v54  ;;  %v2831_v56 = vrot.slane %v7293_v43, 4  ;;  %v2686_v33 = vrot.slane %v7293_v43, 3  ;;  %v2928_v18 = vrot.slane %v7293_v43, 5 }
 0x39c   : > { %v7305_v42 = vsel %vm1010_vm0, %v2830_v20, %v2831_v56  ;;  %v7308_v53 = vsel %vm2684_vm4, %v2685_v59, %v2686_v33  ;;  %4774 = vmatmul.msk.bf16.vlgmr.msra.gmra.mxu3 %vm2755_vm5, %v2669_v48  ;;  %v3024_v59 = vrot.slane %v7293_v43, 7 }
 0x39d   : > { %v2859_v55 = vmul.f32 %v7240_v60, %v7305_v42  ;;  %v2718_v4 = vmul.f32 %v7238_v26, %v7308_v53  ;;  %3368 = vmatpush.bf16.msra.mxu3 %v5445_v44 }
 0x39f   : > { %v2862_v45 = vpack.c.bf16 %v2859_v55, %v2858_v29  ;;  %v2721_v24 = vpack.c.bf16 %v2718_v4, %v2717_v21  ;;  %v2927_v55 = vrot.slane %v7276_v54, 5  ;;  %v3120_v21 = vrot.slane %v7293_v43, 1  ;;  %v5447_v43 = vld [vmem:[%s7198_s20 + $0x108] sm:$0xff] }
 0x3a1   : > { %v7318_v14 = vpop.f32.mrf.mxu1  ;;  %4756 = vmatmul.msk.bf16.vlgmr.msrb.gmra.mxu2 %vm2755_vm5, %v2721_v24  ;;  %4800 = vmatmul.msk.bf16.vlgmr.msrb.gmra.mxu1 %vm2755_vm5, %v2862_v45  ;;  %v3049_v45 = vpop.permute.xlu2 %3048  ;;  %v5442_v24 = vld [vmem:[%s7198_s20 + $0xe0] sm:$0xff]  ;;  %v2938_v44 = vsel %vm2926_vm6, 0.0, %v2927_v55 }
 0x3a2   : > { %v2833_v60 = vrot.slane %v7318_v14, 4  ;;  %v2688_v26 = vrot.slane %v7318_v14, 3  ;;  %3282 = vmatpush.bf16.msrb.mxu2 %v5441_v41  ;;  %v3122_v5 = vrot.slane %v7318_v14, 1  ;;  %3454 = vmatpush.bf16.msrb.mxu1 %v5449_v6 }
 0x3a4   : > { %v7331_v37 = vsel %vm1010_vm0, %v2831_v56, %v2833_v60  ;;  %v7337_v15 = vsel %vm2684_vm4, %v2686_v33, %v2688_v26  ;;  %v5443_v56 = vld [vmem:[%s7198_s20 + $0xe8] sm:$0xff]  ;;  %v5440_v33 = vld [vmem:[%s7198_s20 + $0xd0] sm:$0xff] }
 0x3a5   : > { %v2860_v23 = vmul.f32 %v7242_v52, %v7331_v37  ;;  %v2719_v9 = vmul.f32 %v7264_v57, %v7337_v15  ;;  %v3231_v57 = vpop.permute.xlu1 %3230 }
 0x3a6   : > { %3283 = vmatpush.bf16.msrb.mxu2 %v5440_v33  ;;  %3455 = vmatpush.bf16.msrb.mxu1 %v5448_v61 }
 0x3a9   : > { %v7333_v31 = vpop.f32.mrf.mxu1 }
 0x3aa   : > { %v2835_v11 = vrot.slane %v7333_v31, 4  ;;  %v2690_v16 = vrot.slane %v7333_v31, 3  ;;  %v2670_v28 = vpack.c.bf16 %v7333_v31, %v7318_v14  ;;  %3456 = vmatpush.bf16.msrb.mxu1 %v5447_v43 }
 0x3ac   : > { %v2691_v12 = vsel %vm2684_vm4, %v2688_v26, %v2690_v16  ;;  %4775 = vmatmul.msk.bf16.gmra.mxu3 %vm2755_vm5, %v2670_v28  ;;  %v7349_v36 = vsel %vm1010_vm0, %v2833_v60, %v2835_v11  ;;  %v3216_v35 = vsel %vm2684_vm4, %v2690_v16, 0.0  ;;  %v5439_v60 = vld [vmem:[%s7198_s20 + $0xc8] sm:$0xff]  ;;  %v2929_v16 = vsel %vm2926_vm6, %v2927_v55, %v2928_v18 }
 0x3ad   : > { %v2720_v50 = vmul.f32 %v7258_v10, %v2691_v12  ;;  %v2861_v52 = vmul.f32 %v7271_v3, %v7349_v36  ;;  %v7360_v8 = vmul.f32 %v3227_v1, %v2691_v12  ;;  %v7363_v40 = vmul.f32 %v3231_v57, %v3216_v35  ;;  %v5444_v3 = vld [vmem:[%s7198_s20 + $0xf0] sm:$0xff]  ;;  %3284 = vmatpush.bf16.msrb.mxu2 %v5439_v60  ;;  %v3219_v57 = vpop.permute.xlu2 %3218 }
 0x3ae   : > { %v3023_v10 = vrot.slane %v7276_v54, 7  ;;  %3369 = vmatpush.bf16.msra.mxu3 %v5444_v3  ;;  %v3119_v28 = vrot.slane %v7276_v54, 1  ;;  %v5446_v54 = vld [vmem:[%s7198_s20 + $0x100] sm:$0xff]  ;;  %v2955_v1 = vmul.f32 %v7266_v46, %v2938_v44  ;;  %v2930_v3 = vrot.slane %v7318_v14, 5 }
 0x3af   : > { %v2722_v34 = vpack.c.bf16 %v2720_v50, %v2719_v9  ;;  %v2863_v20 = vpack.c.bf16 %v2861_v52, %v2860_v23  ;;  %v3238_v38 = vpack.c.bf16 %v7363_v40, %v7360_v8  ;;  %v3123_v23 = vsel %vm1322_vm3, %v3120_v21, %v3122_v5  ;;  %3457 = vmatpush.bf16.msrb.mxu1 %v5446_v54 }
 0x3b0   : > { %v3025_v48 = vsel %vm834_vm2, %v3023_v10, %v3024_v59  ;;  %v3034_v29 = vsel %vm834_vm2, 0.0, %v3023_v10  ;;  %v2956_v9 = vmul.f32 %v7244_v7, %v2929_v16  ;;  %v3148_v50 = vmul.f32 %v7273_v0, %v3123_v23 }
 0x3b1   : > { %4757 = vmatmul.msk.bf16.gmra.mxu2 %vm2755_vm5, %v2722_v34  ;;  %4801 = vmatmul.msk.bf16.gmra.mxu1 %vm2755_vm5, %v2863_v20  ;;  %v3052_v4 = vmul.f32 %v7250_v62, %v3025_v48  ;;  %v3051_v26 = vmul.f32 %v7290_v2, %v3034_v29  ;;  %v3121_v62 = vsel %vm1322_vm3, %v3119_v28, %v3120_v21  ;;  %v5438_v2 = vld [vmem:[%s7198_s20 + $0xc0] sm:$0xff]  ;;  %v3028_v20 = vrot.slane %v7333_v31, 7 }
 0x3b2   : > { %3370 = vmatpush.bf16.msra.mxu3 %v5443_v56  ;;  %v3147_v52 = vmul.f32 %v7322_v32, %v3121_v62  ;;  %v2959_v35 = vpack.c.bf16 %v2956_v9, %v2955_v1  ;;  %3285 = vmatpush.bf16.msrb.mxu2 %v5438_v2  ;;  %v3026_v7 = vrot.slane %v7318_v14, 7  ;;  %v2932_v10 = vrot.slane %v7333_v31, 5 }
 0x3b3   : > { %v3055_v12 = vpack.c.bf16 %v3052_v4, %v3051_v26  ;;  %v3124_v32 = vrot.slane %v7333_v31, 1  ;;  %v2931_v61 = vsel %vm2926_vm6, %v2928_v18, %v2930_v3  ;;  %v3405_v60 = vmul.f32 %v7327_v47, %v2929_v16 }
 0x3b4   : > { %v3151_v34 = vpack.c.bf16 %v3148_v50, %v3147_v52  ;;  %v3029_v0 = vsel %vm834_vm2, %v3026_v7, %v3028_v20  ;;  %v3027_v46 = vsel %vm834_vm2, %v3024_v59, %v3026_v7  ;;  %v2933_v6 = vsel %vm2926_vm6, %v2930_v3, %v2932_v10 }
 0x3b5   : > { %v3054_v41 = vmul.f32 %v3049_v45, %v3029_v0  ;;  %v3053_v48 = vmul.f32 %v7268_v22, %v3027_v46  ;;  %v3130_v56 = vsel %vm1322_vm3, %v3124_v32, 0.0  ;;  %v3125_v33 = vsel %vm1322_vm3, %v3122_v5, %v3124_v32  ;;  %v3309_v55 = vpop.permute.xlu2 %3308 }
 0x3b6   : > { %3371 = vmatpush.bf16.msra.mxu3 %v5442_v24  ;;  %v2958_v21 = vmul.f32 %v7351_v63, %v2933_v6  ;;  %v3150_v4 = vmul.f32 %v7280_v25, %v3130_v56  ;;  %v3149_v59 = vmul.f32 %v7295_v58, %v3125_v33  ;;  %v2957_v14 = vmul.f32 %v7262_v49, %v2931_v61 }
 0x3b7   : > { %v3056_v29 = vpack.c.bf16 %v3054_v41, %v3053_v48  ;;  %v3320_v5 = vmul.f32 %v3309_v55, %v7331_v37  ;;  %v3319_v25 = vmul.f32 %v7302_v27, %v7305_v42  ;;  %v3234_v58 = vmul.f32 %v7324_v19, %v7337_v15  ;;  %v3317_v27 = vpop.permute.xlu0 %3316  ;;  %v3399_v15 = vpop.permute.xlu1 %3398 }
 0x3b8   : > { %v2960_v45 = vpack.c.bf16 %v2958_v21, %v2957_v14  ;;  %v3152_v22 = vpack.c.bf16 %v3150_v4, %v3149_v59  ;;  %v3233_v49 = vmul.f32 %v3219_v57, %v7308_v53  ;;  %v3302_v42 = vsel %vm1010_vm0, %v2835_v11, 0.0 }
 0x3b9   : > { %v3323_v63 = vpack.c.bf16 %v3320_v5, %v3319_v25  ;;  %v3322_v19 = vmul.f32 %v3317_v27, %v3302_v42  ;;  %v3388_v37 = vsel %vm2926_vm6, %v2932_v10, 0.0  ;;  %v3407_v62 = vmul.f32 %v3399_v15, %v2933_v6  ;;  %v5729_v15 = vld [vmem:[%s755_s22] ss:$0 sm:$0xff]  ;;  %s761_s22 = scalar_lea.vmem %s7645_s15, %s7801_s0 }
 0x3ba   : > { %v3237_v28 = vpack.c.bf16 %v3234_v58, %v3233_v49  ;;  %v5728_v58 = vld [vmem:[%s752_s21] ss:$0 sm:$0xff]  ;;  %s758_s21 = scalar_lea.vmem %s7644_s14, %s7801_s0 }
 0x3bc   : > { %4852 = vmatmul.msk.bf16.vlgmr.msrb.gmra.mxu3 %vm2755_vm5, %v3055_v12 }
 0x3bd   : > { %v3395_v18 = vpop.permute.xlu2 %3394 }
 0x3be   : > { %v3406_v24 = vmul.f32 %v3395_v18, %v2931_v61 }
 0x3c0   : > { %v3409_v23 = vpack.c.bf16 %v3406_v24, %v3405_v60 }
 0x3c1   : > { %4826 = vmatmul.msk.bf16.vlgmr.msra.gmra.mxu2 %vm2755_vm5, %v2959_v35  ;;  %4878 = vmatmul.msk.bf16.vlgmr.msra.gmra.mxu1 %vm2755_vm5, %v3151_v34 }
 0x3c5   : > { %v3313_v26 = vpop.permute.xlu2 %3312 }
 0x3c6   : > { %v3321_v53 = vmul.f32 %v3313_v26, %v7349_v36 }
 0x3c8   : > { %v3324_v16 = vpack.c.bf16 %v3322_v19, %v3321_v53 }
 0x3cc   : > { %4853 = vmatmul.msk.bf16.gmra.mxu3 %vm2755_vm5, %v3056_v29 }
 0x3cd   : > { %v3403_v47 = vpop.permute.xlu2 %3402 }
 0x3ce   : > { %v3408_v43 = vmul.f32 %v3403_v47, %v3388_v37 }
 0x3d0   : > { %v3410_v12 = vpack.c.bf16 %v3408_v43, %v3407_v62 }
 0x3d1   : > { %4827 = vmatmul.msk.bf16.gmra.mxu2 %vm2755_vm5, %v2960_v45  ;;  %4879 = vmatmul.msk.bf16.gmra.mxu1 %vm2755_vm5, %v3152_v22 }
 0x3dc   : > { %4930 = vmatmul.msk.bf16.vlgmr.msra.gmra.mxu3 %vm2755_vm5, %v3323_v63 }
 0x3e1   : > { %4904 = vmatmul.msk.bf16.vlgmr.msrb.gmra.mxu2 %vm2755_vm5, %v3237_v28  ;;  %4956 = vmatmul.msk.bf16.vlgmr.msrb.gmra.mxu1 %vm2755_vm5, %v3409_v23 }
 0x3ec   : > { %4931 = vmatmul.msk.bf16.gmra.mxu3 %vm2755_vm5, %v3324_v16 }
 0x3f1   : > { %4905 = vmatmul.msk.bf16.gmra.mxu2 %vm2755_vm5, %v3238_v38  ;;  %4957 = vmatmul.msk.bf16.gmra.mxu1 %vm2755_vm5, %v3410_v12 }
 0x41e   : > { %v2912_v31 = vpop.f32.mrf.mxu1 }
 0x41f   : > { %v2820_v11 = vpop.f32.mrf.mxu3 }
 0x424   : > { %v2771_v36 = vpop.f32.mrf.mxu2 }
 0x425   : > { %v2821_v44 = vadd.f32 %v2820_v11, %v2771_v36 }
 0x426   : > { %v2914_v9 = vpop.f32.mrf.mxu1 }
 0x427   : > { %v2822_v50 = vpop.f32.mrf.mxu3  ;;  %v2922_v2 = vadd.f32 %v2912_v31, %v2821_v44 }
 0x42c   : > { %v2773_v54 = vpop.f32.mrf.mxu2 }
 0x42d   : > { %v2823_v52 = vadd.f32 %v2822_v50, %v2773_v54 }
 0x42e   : > { %v2917_v1 = vpop.f32.mrf.mxu1 }
 0x42f   : > { %v2825_v35 = vpop.f32.mrf.mxu3  ;;  %v2923_v34 = vadd.f32 %v2914_v9, %v2823_v52 }
 0x434   : > { %v2776_v20 = vpop.f32.mrf.mxu2 }
 0x435   : > { %v2826_v45 = vadd.f32 %v2825_v35, %v2776_v20 }
 0x436   : > { %v2919_v57 = vpop.f32.mrf.mxu1 }
 0x437   : > { %v2827_v7 = vpop.f32.mrf.mxu3  ;;  %v2924_v25 = vadd.f32 %v2917_v1, %v2826_v45  ;;  %v5455_v45 = vld [vmem:[%s5989_s29 + $0x128] sm:$0xff] }
 0x43c   : > { %v2778_v8 = vpop.f32.mrf.mxu2 }
 0x43d   : > { %v2828_v23 = vadd.f32 %v2827_v7, %v2778_v8 }
 0x43e   : > { %v3201_v40 = vpop.f32.mrf.mxu1 }
 0x43f   : > { %v3105_v38 = vpop.f32.mrf.mxu3  ;;  %v2925_v47 = vadd.f32 %v2919_v57, %v2828_v23 }
 0x444   : > { %v3009_v0 = vpop.f32.mrf.mxu2 }
 0x445   : > { %v3019_v33 = vadd.f32 %v3009_v0, %v2922_v2  ;;  %v5457_v0 = vld [vmem:[%s5989_s29 + $0x138] sm:$0xff] }
 0x446   : > { %v3203_v10 = vpop.f32.mrf.mxu1  ;;  %3708 = vmatpush.bf16.msrb.mxu0 %v5457_v0  ;;  %v5468_v0 = vld [vmem:[%s5989_s29 + $0x50] sm:$0xff] }
 0x447   : > { %v3107_v32 = vpop.f32.mrf.mxu3  ;;  %v3115_v29 = vadd.f32 %v3105_v38, %v3019_v33  ;;  %v7465_v38 = vld [vmem:[%s7633_s3] sm:$0xff] }
 0x448   : > { %3578 = vperm.xlu1 %5717, %v7465_v38   ;;  %3899 = vperm.xlu0 %5719, %v7465_v38  }
 0x449   : > { %v3211_v59 = vadd.f32 %v3201_v40, %v3115_v29  ;;  %3814 = vperm.xlu2 %5718, %v7465_v38  }
 0x44c   : > { %v3011_v46 = vpop.f32.mrf.mxu2 }
 0x44d   : > { %v3020_v4 = vadd.f32 %v3011_v46, %v2923_v34 }
 0x44e   : > { %v3206_v3 = vpop.f32.mrf.mxu1 }
 0x44f   : > { %v3110_v41 = vpop.f32.mrf.mxu3  ;;  %v3116_v18 = vadd.f32 %v3107_v32, %v3020_v4 }
 0x450   : > { %5720 = vset.pattern.permute.xlu1 %v7764_v17  ;;  %5724 = vset.pattern.permute.xlu0 %v7723_v30  ;;  %v5454_v30 = vld [vmem:[%s5989_s29 + $0x120] sm:$0xff] }
 0x451   : > { %v3212_v60 = vadd.f32 %v3203_v10, %v3116_v18  ;;  %v5465_v10 = vld [vmem:[%s5989_s29 + $0x38] sm:$0xff]  ;;  %v5472_v18 = vld [vmem:[%s5989_s29 + $0x70] sm:$0xff]  ;;  %3726 = vperm.xlu1 %5720, %v7465_v38   ;;  %4072 = vperm.xlu0 %5724, %v7465_v38  }
 0x452   : > { %3647 = vmatpush.bf16.msrb.mxu3 %v5465_v10  ;;  %5721 = vset.pattern.permute.xlu2 %v7729_v51  ;;  %v5450_v10 = vld [vmem:[%s5989_s29 + $0x100] sm:$0xff] }
 0x453   : > { %4161 = vperm.xlu2 %5721, %v7465_v38  }
 0x454   : > { %v3014_v6 = vpop.f32.mrf.mxu2 }
 0x455   : > { %v3021_v49 = vadd.f32 %v3014_v6, %v2924_v25 }
 0x456   : > { %v3208_v56 = vpop.f32.mrf.mxu1 }
 0x457   : > { %v3112_v48 = vpop.f32.mrf.mxu3  ;;  %v3117_v53 = vadd.f32 %v3110_v41, %v3021_v49  ;;  %v5456_v41 = vld [vmem:[%s5989_s29 + $0x130] sm:$0xff] }
 0x458   : > { %3709 = vmatpush.bf16.msrb.mxu0 %v5456_v41  ;;  %v5474_v41 = vld [vmem:[%s5989_s29 + $0x80] sm:$0xff] }
 0x459   : > { %v3213_v12 = vadd.f32 %v3206_v3, %v3117_v53  ;;  %v5470_v53 = vld [vmem:[%s5989_s29 + $0x60] sm:$0xff]  ;;  %5722 = vset.pattern.permute.xlu1 %v7727_v13  ;;  %5725 = vset.pattern.permute.xlu0 %v7728_v39 }
 0x45a   : > { %3987 = vperm.xlu1 %5722, %v7465_v38  }
 0x45b   : > { %5723 = vset.pattern.permute.xlu2 %v7728_v39  ;;  %v5481_v39 = vld [vmem:[%s5989_s29 + $0xb8] sm:$0xff] }
 0x45c   : > { %v3016_v61 = vpop.f32.mrf.mxu2  ;;  %3710 = vmatpush.bf16.msrb.mxu0 %v5455_v45  ;;  %4249 = vperm.xlu2 %5723, %v7465_v38   ;;  %v5451_v38 = vld [vmem:[%s5989_s29 + $0x108] sm:$0xff] }
 0x45d   : > { %v3022_v43 = vadd.f32 %v3016_v61, %v2925_v47  ;;  %v5473_v61 = vld [vmem:[%s5989_s29 + $0x78] sm:$0xff]  ;;  %v5483_v45 = vld [vmem:[%s5989_s29 + $0xc8] sm:$0xff] }
 0x45e   : > { %v3459_v21 = vpop.f32.mrf.mxu1  ;;  %3796 = vmatpush.bf16.msra.mxu1 %v5473_v61  ;;  %v5495_v61 = vld [vmem:[%s5989_s29 + $0x168] sm:$0xff] }
 0x45f   : > { %v3373_v55 = vpop.f32.mrf.mxu3  ;;  %v3118_v2 = vadd.f32 %v3112_v48, %v3022_v43 }
 0x460   : > { %3711 = vmatpush.bf16.msrb.mxu0 %v5454_v30  ;;  %v5491_v30 = vld [vmem:[%s5989_s29 + $0x148] sm:$0xff] }
 0x461   : > { %v3214_v57 = vadd.f32 %v3208_v56, %v3118_v2  ;;  %v5464_v56 = vld [vmem:[%s5989_s29 + $0x30] sm:$0xff]  ;;  %v3491_v2 = vld [vmem:[%s7635_s5] sm:$0xf] }
 0x462   : > { %3648 = vmatpush.bf16.msrb.mxu3 %v5464_v56  ;;  %3797 = vmatpush.bf16.msra.mxu1 %v5472_v18  ;;  %v5513_v56 = vld [vmem:[%s5989_s29 + $0x1f8] sm:$0xff]  ;;  %v5482_v18 = vld [vmem:[%s5989_s29 + $0xc0] sm:$0xff] }
 0x464   : > { %v3287_v14 = vpop.f32.mrf.mxu2 }
 0x465   : > { %v3297_v22 = vadd.f32 %v3287_v14, %v3211_v59  ;;  %v5463_v59 = vld [vmem:[%s5989_s29 + $0x28] sm:$0xff] }
 0x466   : > { %v3461_v26 = vpop.f32.mrf.mxu1  ;;  %3649 = vmatpush.bf16.msrb.mxu3 %v5463_v59  ;;  %v5511_v59 = vld [vmem:[%s5989_s29 + $0x1e8] sm:$0xff] }
 0x467   : > { %v3383_v5 = vadd.f32 %v3373_v55, %v3297_v22  ;;  %v3375_v24 = vpop.f32.mrf.mxu3 }
 0x469   : > { %v3469_v63 = vadd.f32 %v3459_v21, %v3383_v5 }
 0x46b   : > { %v3476_v27 = vadd.f32 %v5728_v58, %v3469_v63 }
 0x46c   : > { %v3289_v28 = vpop.f32.mrf.mxu2 }
 0x46d   : > { %v3298_v42 = vadd.f32 %v3289_v28, %v3212_v60  ;;  %v3480_v37 = vmax.f32 %v3476_v27, 0.0  ;;  %v5471_v60 = vld [vmem:[%s5989_s29 + $0x68] sm:$0xff]  ;;  %v5461_v28 = vld [vmem:[%s5989_s29 + $0x18] sm:$0xff] }
 0x46e   : > { %v3464_v50 = vpop.f32.mrf.mxu1  ;;  %3798 = vmatpush.bf16.msra.mxu1 %v5471_v60  ;;  %v5490_v60 = vld [vmem:[%s5989_s29 + $0x140] sm:$0xff] }
 0x46f   : > { %v3384_v19 = vadd.f32 %v3375_v24, %v3298_v42  ;;  %v3378_v31 = vpop.f32.mrf.mxu3  ;;  %v3487_v36 = vadd.f32 %v5729_v15, %v3480_v37  ;;  %v5453_v42 = vld [vmem:[%s5989_s29 + $0x118] sm:$0xff]  ;;  %v5460_v37 = vld [vmem:[%s5989_s29 + $0x10] sm:$0xff] }
 0x470   : > { %3712 = vmatpush.bf16.msrb.mxu0 %v5453_v42 }
 0x471   : > { %v3470_v16 = vadd.f32 %v3461_v26, %v3384_v19  ;;  %v3496_v1 = vrot.slane %v3487_v36, 1 }
 0x472   : > { %3799 = vmatpush.bf16.msra.mxu1 %v5470_v53 }
 0x473   : > { %v3477_v62 = vadd.f32 %v5728_v58, %v3470_v16 }
 0x474   : > { %v3292_v11 = vpop.f32.mrf.mxu2 }
 0x475   : > { %v3481_v44 = vmax.f32 %v3477_v62, 0.0  ;;  %v3299_v9 = vadd.f32 %v3292_v11, %v3213_v12 }
 0x476   : > { %v3466_v33 = vpop.f32.mrf.mxu1 }
 0x477   : > { %v3488_v54 = vadd.f32 %v5729_v15, %v3481_v44  ;;  %v3385_v52 = vadd.f32 %v3378_v31, %v3299_v9  ;;  %v3380_v3 = vpop.f32.mrf.mxu3  ;;  %v5469_v31 = vld [vmem:[%s5989_s29 + $0x58] sm:$0xff]  ;;  %v5459_v44 = vld [vmem:[%s5989_s29 + $0x8] sm:$0xff]  ;;  %v5458_v9 = vld [vmem:[%s5989_s29] sm:$0xff] }
 0x478   : > { %3800 = vmatpush.bf16.msra.mxu1 %v5469_v31 }
 0x479   : > { %v3497_v35 = vrot.slane %v3488_v54, 1  ;;  %v3471_v34 = vadd.f32 %v3464_v50, %v3385_v52  ;;  %v5489_v50 = vld [vmem:[%s5989_s29 + $0xf8] sm:$0xff]  ;;  %v5488_v52 = vld [vmem:[%s5989_s29 + $0xf0] sm:$0xff] }
 0x47b   : > { %v3478_v20 = vadd.f32 %v5728_v58, %v3471_v34  ;;  %v3498_v7 = vsel %vm1322_vm3, %v3496_v1, %v3497_v35  ;;  %v5479_v1 = vld [vmem:[%s5989_s29 + $0xa8] sm:$0xff]  ;;  %v5478_v34 = vld [vmem:[%s5989_s29 + $0xa0] sm:$0xff] }
 0x47c   : > { %v3294_v8 = vpop.f32.mrf.mxu2  ;;  %v7460_v40 = vmax.f32 %v3487_v36, %v3498_v7  ;;  %v5485_v7 = vld [vmem:[%s5989_s29 + $0xd8] sm:$0xff]  ;;  %3801 = vmatpush.bf16.msra.mxu1 %v5468_v0 }
 0x47d   : > { %v3482_v32 = vmax.f32 %v3478_v20, 0.0  ;;  %v3300_v46 = vadd.f32 %v3294_v8, %v3214_v57  ;;  %v5486_v20 = vld [vmem:[%s5989_s29 + $0xe0] sm:$0xff]  ;;  %v5477_v57 = vld [vmem:[%s5989_s29 + $0x98] sm:$0xff]  ;;  %v5476_v8 = vld [vmem:[%s5989_s29 + $0x90] sm:$0xff] }
 0x47e   : > { %v3516_v5 = vrot.slane %v7460_v40, 4 }
 0x47f   : > { %v3489_v6 = vadd.f32 %v5729_v15, %v3482_v32  ;;  %v3386_v48 = vadd.f32 %v3380_v3, %v3300_v46  ;;  %v5475_v32 = vld [vmem:[%s5989_s29 + $0x88] sm:$0xff]  ;;  %v5497_v3 = vld [vmem:[%s5989_s29 + $0x178] sm:$0xff] }
 0x480   : > { %v5467_v46 = vld [vmem:[%s5989_s29 + $0x48] sm:$0xff] }
 0x481   : > { %v3499_v29 = vrot.slane %v3489_v6, 1  ;;  %v3472_v55 = vadd.f32 %v3466_v33, %v3386_v48  ;;  %3802 = vmatpush.bf16.msra.mxu1 %v5467_v46  ;;  %v5496_v48 = vld [vmem:[%s5989_s29 + $0x170] sm:$0xff]  ;;  %v5505_v33 = vld [vmem:[%s5989_s29 + $0x1b8] sm:$0xff] }
 0x483   : > { %v3479_v21 = vadd.f32 %v5728_v58, %v3472_v55  ;;  %v3500_v4 = vsel %vm1322_vm3, %v3497_v35, %v3499_v29  ;;  %v5462_v58 = vld [vmem:[%s5989_s29 + $0x20] sm:$0xff]  ;;  %v5487_v35 = vld [vmem:[%s5989_s29 + $0xe8] sm:$0xff]  ;;  %v5512_v55 = vld [vmem:[%s5989_s29 + $0x1f0] sm:$0xff] }
 0x484   : > { %v3509_v14 = vmax.f32 %v3488_v54, %v3500_v4  ;;  %3650 = vmatpush.bf16.msrb.mxu3 %v5462_v58  ;;  %v5480_v54 = vld [vmem:[%s5989_s29 + $0xb0] sm:$0xff]  ;;  %v5494_v4 = vld [vmem:[%s5989_s29 + $0x160] sm:$0xff]  ;;  %v5509_v58 = vld [vmem:[%s5989_s29 + $0x1d8] sm:$0xff] }
 0x485   : > { %v3483_v22 = vmax.f32 %v3479_v21, 0.0  ;;  %v5504_v21 = vld [vmem:[%s5989_s29 + $0x1b0] sm:$0xff] }
 0x486   : > { %v3517_v25 = vrot.slane %v3509_v14, 4 }
 0x487   : > { %v3490_v63 = vadd.f32 %v5729_v15, %v3483_v22  ;;  %v5493_v22 = vld [vmem:[%s5989_s29 + $0x158] sm:$0xff] }
 0x488   : > { %v3518_v17 = vsel %vm1010_vm0, %v3516_v5, %v3517_v25  ;;  %3651 = vmatpush.bf16.msrb.mxu3 %v5461_v28  ;;  %v5510_v5 = vld [vmem:[%s5989_s29 + $0x1e0] sm:$0xff] }
 0x489   : > { %v3501_v24 = vrot.slane %v3490_v63, 1  ;;  %v3528_v49 = vmax.f32 %v7460_v40, %v3518_v17  ;;  %v5452_v40 = vld [vmem:[%s5989_s29 + $0x110] sm:$0xff]  ;;  %v5501_v17 = vld [vmem:[%s5989_s29 + $0x198] sm:$0xff] }
 0x48a   : > { %3713 = vmatpush.bf16.msrb.mxu0 %v5452_v40  ;;  %v5518_v40 = vld [vmem:[%s5989_s29 + $0x220] sm:$0xff] }
 0x48b   : > { %v3507_v26 = vsel %vm1322_vm3, %v3501_v24, 0.0  ;;  %v3502_v51 = vsel %vm1322_vm3, %v3499_v29, %v3501_v24  ;;  %v5484_v29 = vld [vmem:[%s5989_s29 + $0xd0] sm:$0xff] }
 0x48c   : > { %v3511_v23 = vmax.f32 %v3490_v63, %v3507_v26  ;;  %v3510_v27 = vmax.f32 %v3489_v6, %v3502_v51  ;;  %3652 = vmatpush.bf16.msrb.mxu3 %v5460_v37  ;;  %v5466_v6 = vld [vmem:[%s5989_s29 + $0x40] sm:$0xff]  ;;  %v5492_v63 = vld [vmem:[%s5989_s29 + $0x150] sm:$0xff]  ;;  %v5507_v26 = vld [vmem:[%s5989_s29 + $0x1c8] sm:$0xff] }
 0x48d   : > { %3803 = vmatpush.bf16.msra.mxu1 %v5466_v6  ;;  %v5508_v24 = vld [vmem:[%s5989_s29 + $0x1d0] sm:$0xff]  ;;  %v5499_v51 = vld [vmem:[%s5989_s29 + $0x188] sm:$0xff] }
 0x48e   : > { %v3519_v19 = vrot.slane %v3510_v27, 4  ;;  %v3521_v47 = vrot.slane %v3511_v23, 4  ;;  %3714 = vmatpush.bf16.msrb.mxu0 %v5451_v38 }
 0x490   : > { %v3522_v15 = vsel %vm1010_vm0, %v3519_v19, %v3521_v47  ;;  %v3527_v16 = vsel %vm1010_vm0, %v3521_v47, 0.0  ;;  %v3520_v43 = vsel %vm1010_vm0, %v3517_v25, %v3519_v19  ;;  %3653 = vmatpush.bf16.msrb.mxu3 %v5459_v44  ;;  %v5502_v25 = vld [vmem:[%s5989_s29 + $0x1a0] sm:$0xff] }
 0x491   : > { %v3530_v13 = vmax.f32 %v3510_v27, %v3522_v15  ;;  %v3531_v62 = vmax.f32 %v3511_v23, %v3527_v16  ;;  %v3529_v12 = vmax.f32 %v3509_v14, %v3520_v43  ;;  %4142 = vmatpush.bf16.msrb.mxu1 %v5505_v33  ;;  %v5503_v14 = vld [vmem:[%s5989_s29 + $0x1a8] sm:$0xff]  ;;  %v5506_v23 = vld [vmem:[%s5989_s29 + $0x1c0] sm:$0xff] }
 0x492   : > { %3715 = vmatpush.bf16.msrb.mxu0 %v5450_v10  ;;  %v5498_v27 = vld [vmem:[%s5989_s29 + $0x180] sm:$0xff] }
 0x493   : > { %v3533_v11 = vpack.c.bf16 %v3531_v62, %v3530_v13  ;;  %v3532_v36 = vpack.c.bf16 %v3529_v12, %v3528_v49  ;;  %v5500_v49 = vld [vmem:[%s5989_s29 + $0x190] sm:$0xff] }
 0x494   : > { %3654 = vmatpush.bf16.msrb.mxu3 %v5458_v9 }
 0x495   : > { %3544 = vmatpush.bf16.msra.mxu2 %v3533_v11  ;;  %4143 = vmatpush.bf16.msrb.mxu1 %v5504_v21  ;;  %v5514_v21 = vld [vmem:[%s5989_s29 + $0x200] sm:$0xff] }
 0x496   : > { %4057 = vmatpush.bf16.msra.mxu0 %v5497_v3  ;;  %v5517_v3 = vld [vmem:[%s5989_s29 + $0x218] sm:$0xff] }
 0x498   : > { %3969 = vmatpush.bf16.msra.mxu3 %v5489_v50 }
 0x499   : > { %3545 = vmatpush.bf16.msra.mxu2 %v3532_v36  ;;  %4144 = vmatpush.bf16.msrb.mxu1 %v5503_v14  ;;  %v5521_v36 = vld [vmem:[%s5989_s29 + $0x238] sm:$0xff] }
 0x49a   : > { %4058 = vmatpush.bf16.msra.mxu0 %v5496_v48 }
 0x49c   : > { %4958 = vmatmul.msk.bf16.vlgmr.msra.gmra.mxu2 %vm3534_vm7, %v3491_v2  ;;  %3970 = vmatpush.bf16.msra.mxu3 %v5488_v52  ;;  %v5520_v52 = vld [vmem:[%s5989_s29 + $0x230] sm:$0xff] }
 0x49d   : > { %3884 = vmatpush.bf16.msrb.mxu2 %v5481_v39  ;;  %4145 = vmatpush.bf16.msrb.mxu1 %v5502_v25 }
 0x49e   : > { %4059 = vmatpush.bf16.msra.mxu0 %v5495_v61  ;;  %v5515_v61 = vld [vmem:[%s5989_s29 + $0x208] sm:$0xff] }
 0x4a0   : > { %3971 = vmatpush.bf16.msra.mxu3 %v5487_v35 }
 0x4a1   : > { %3885 = vmatpush.bf16.msrb.mxu2 %v5480_v54  ;;  %4146 = vmatpush.bf16.msrb.mxu1 %v5501_v17 }
 0x4a2   : > { %4060 = vmatpush.bf16.msra.mxu0 %v5494_v4 }
 0x4a3   : > { %v3815_v43 = vpop.permute.xlu2 %3814 }
 0x4a4   : > { %3972 = vmatpush.bf16.msra.mxu3 %v5486_v20  ;;  %v5519_v20 = vld [vmem:[%s5989_s29 + $0x228] sm:$0xff] }
 0x4a5   : > { %3886 = vmatpush.bf16.msrb.mxu2 %v5479_v1  ;;  %4147 = vmatpush.bf16.msrb.mxu1 %v5500_v49 }
 0x4a6   : > { %4061 = vmatpush.bf16.msra.mxu0 %v5493_v22 }
 0x4a8   : > { %3973 = vmatpush.bf16.msra.mxu3 %v5485_v7 }
 0x4a9   : > { %3887 = vmatpush.bf16.msrb.mxu2 %v5478_v34  ;;  %4148 = vmatpush.bf16.msrb.mxu1 %v5499_v51 }
 0x4aa   : > { %4062 = vmatpush.bf16.msra.mxu0 %v5492_v63 }
 0x4ac   : > { %3974 = vmatpush.bf16.msra.mxu3 %v5484_v29 }
 0x4ad   : > { %3888 = vmatpush.bf16.msrb.mxu2 %v5477_v57  ;;  %4149 = vmatpush.bf16.msrb.mxu1 %v5498_v27  ;;  %v4162_v38 = vpop.permute.xlu2 %4161 }
 0x4ae   : > { %4063 = vmatpush.bf16.msra.mxu0 %v5491_v30 }
 0x4b0   : > { %3975 = vmatpush.bf16.msra.mxu3 %v5483_v45 }
 0x4b1   : > { %3889 = vmatpush.bf16.msrb.mxu2 %v5476_v8 }
 0x4b2   : > { %4064 = vmatpush.bf16.msra.mxu0 %v5490_v60 }
 0x4b4   : > { %3976 = vmatpush.bf16.msra.mxu3 %v5482_v18 }
 0x4b5   : > { %3890 = vmatpush.bf16.msrb.mxu2 %v5475_v32 }
 0x4b6   : > { %v4250_v29 = vpop.permute.xlu2 %4249 }
 0x4b9   : > { %3891 = vmatpush.bf16.msrb.mxu2 %v5474_v41 }
 0x4ba   : > { %v3579_v28 = vpop.permute.xlu1 %3578  ;;  %v3900_v50 = vpop.permute.xlu0 %3899 }
 0x4bd   : > { %4231 = vmatpush.bf16.msra.mxu2 %v5513_v56  ;;  %v5516_v56 = vld [vmem:[%s5989_s29 + $0x210] sm:$0xff]  ;;  %s5411_s29 = sshll.u32 %s7801_s0, 6 }
 0x4be   : > { %s7582_s20 = scalar_lea.vmem %s7791_s2, %s5411_s29 }
 0x4c1   : > { %4232 = vmatpush.bf16.msra.mxu2 %v5512_v55 }
 0x4c3   : > { %v3727_v53 = vpop.permute.xlu1 %3726  ;;  %v4073_v8 = vpop.permute.xlu0 %4072 }
 0x4c5   : > { %4233 = vmatpush.bf16.msra.mxu2 %v5511_v59 }
 0x4c9   : > { %4234 = vmatpush.bf16.msra.mxu2 %v5510_v5 }
 0x4cc   : > { %v3988_v1 = vpop.permute.xlu1 %3987 }
 0x4cd   : > { %4235 = vmatpush.bf16.msra.mxu2 %v5509_v58 }
 0x4d1   : > { %4236 = vmatpush.bf16.msra.mxu2 %v5508_v24 }
 0x4d5   : > { %4237 = vmatpush.bf16.msra.mxu2 %v5507_v26 }
 0x4d9   : > { %4238 = vmatpush.bf16.msra.mxu2 %v5506_v23 }
 0x51f   : > { %v3547_v42 = vpop.f32.mrf.mxu2 }
 0x520   : > { %v3573_v19 = vrot.slane %v3547_v42, 5  ;;  %v3810_v47 = vrot.slane %v3547_v42, 7  ;;  %v3721_v37 = vrot.slane %v3547_v42, 6  ;;  %v3554_v15 = vpack.c.bf16 %v3547_v42, %v3547_v42 }
 0x521   : > { %v3983_v2 = vrot.slane %v3547_v42, 1  ;;  %v4156_v34 = vrot.slane %v3547_v42, 2  ;;  %v4245_v33 = vrot.slane %v3547_v42, 3 }
 0x522   : > { %v3575_v16 = vsel %vm2926_vm6, 0.0, %v3573_v19  ;;  %v3812_v13 = vsel %vm834_vm2, 0.0, %v3810_v47  ;;  %v3724_v62 = vsel %vm3723_vm8, 0.0, %v3721_v37  ;;  %3716 = vmatmul.bf16.vlgmr.msrb.gmra.mxu0 %v3554_v15  ;;  %v5529_v47 = vld [vmem:[%s7582_s20 + $0x38] sm:$0xff]  ;;  %v5528_v15 = vld [vmem:[%s7582_s20 + $0x30] sm:$0xff] }
 0x523   : > { %v3581_v12 = vmul.f32 %v3579_v28, %v3575_v16  ;;  %v3817_v31 = vmul.f32 %v3815_v43, %v3812_v13  ;;  %v3729_v11 = vmul.f32 %v3727_v53, %v3724_v62  ;;  %v3985_v35 = vsel %vm1322_vm3, %v3983_v2, 0.0  ;;  %v5730_v43 = vld [vmem:[%s758_s21] ss:$0 sm:$0xff]  ;;  %s7792_s21 = sld [smem:[#allocation35_spill]] }
 0x524   : > { %v3990_v57 = vmul.f32 %v3988_v1, %v3985_v35  ;;  %v4159_v7 = vsel %vm4158_vm9, %v4156_v34, 0.0  ;;  %v3902_v10 = vmul.f32 %v3900_v50, %v3812_v13  ;;  %v4075_v46 = vmul.f32 %v4073_v8, %v3985_v35  ;;  %v5527_v13 = vld [vmem:[%s7582_s20 + $0x28] sm:$0xff] }
 0x525   : > { %v3582_v44 = vpack.c.bf16 %v3581_v12, %v3581_v12  ;;  %v3818_v39 = vpack.c.bf16 %v3817_v31, %v3817_v31  ;;  %v3730_v9 = vpack.c.bf16 %v3729_v11, %v3729_v11  ;;  %v4164_v32 = vmul.f32 %v4162_v38, %v4159_v7  ;;  %v5731_v11 = vld [vmem:[%s761_s22] ss:$0 sm:$0xff]  ;;  %v5523_v34 = vld [vmem:[%s7582_s20 + $0x8] sm:$0xff]  ;;  %s7793_s22 = sld [smem:[#allocation37_spill]] }
 0x526   : > { %v3991_v0 = vpack.c.bf16 %v3990_v57, %v3990_v57  ;;  %v3903_v41 = vpack.c.bf16 %v3902_v10, %v3902_v10  ;;  %v4076_v48 = vpack.c.bf16 %v4075_v46, %v4075_v46  ;;  %v4247_v55 = vsel %vm2684_vm4, %v4245_v33, 0.0  ;;  %v5522_v38 = vld [vmem:[%s7582_s20] sm:$0xff] }
 0x527   : > { %3655 = vmatmul.bf16.vlgmr.msrb.gmra.mxu3 %v3582_v44  ;;  %3892 = vmatmul.bf16.vlgmr.msrb.gmra.mxu2 %v3818_v39  ;;  %v3549_v54 = vpop.f32.mrf.mxu2  ;;  %v4165_v6 = vpack.c.bf16 %v4164_v32, %v4164_v32  ;;  %v4252_v4 = vmul.f32 %v4250_v29, %v4247_v55 }
 0x528   : > { %4319 = vmatpush.bf16.msrb.mxu3 %v5521_v36  ;;  %3804 = vmatmul.bf16.vlgmr.msra.gmra.mxu1 %v3730_v9  ;;  %v5526_v36 = vld [vmem:[%s7582_s20 + $0x20] sm:$0xff]  ;;  %v5525_v9 = vld [vmem:[%s7582_s20 + $0x18] sm:$0xff] }
 0x529   : > { %v4253_v59 = vpack.c.bf16 %v4252_v4, %v4252_v4  ;;  %4442 = vmatpush.bf16.msra.mxu1 %v5529_v47 }
 0x52b   : > { %s769_s29 = scalar_lea.vmem %s7793_s22, %s7801_s0 }
 0x52c   : > { %4320 = vmatpush.bf16.msrb.mxu3 %v5520_v52  ;;  %v5524_v52 = vld [vmem:[%s7582_s20 + $0x10] sm:$0xff]  ;;  %v5732_v46 = vld [vmem:[%s769_s29] ss:$0 sm:$0xff] }
 0x52d   : > { %4443 = vmatpush.bf16.msra.mxu1 %v5528_v15 }
 0x530   : > { %4321 = vmatpush.bf16.msrb.mxu3 %v5519_v20 }
 0x531   : > { %4444 = vmatpush.bf16.msra.mxu1 %v5527_v13 }
 0x532   : > { %4065 = vmatmul.bf16.vlgmr.msra.gmra.mxu0 %v3991_v0 }
 0x534   : > { %4322 = vmatpush.bf16.msrb.mxu3 %v5518_v40  ;;  %v4342_v40 = vld [vmem:[%s7792_s21] sm:$0x1] }
 0x535   : > { %4445 = vmatpush.bf16.msra.mxu1 %v5526_v36 }
 0x537   : > { %3977 = vmatmul.bf16.vlgmr.msra.gmra.mxu3 %v3903_v41  ;;  %4239 = vmatmul.bf16.vlgmr.msra.gmra.mxu2 %v4165_v6 }
 0x538   : > { %4323 = vmatpush.bf16.msrb.mxu3 %v5517_v3  ;;  %4150 = vmatmul.bf16.vlgmr.msrb.gmra.mxu1 %v4076_v48 }
 0x539   : > { %4446 = vmatpush.bf16.msra.mxu1 %v5525_v9 }
 0x53c   : > { %4324 = vmatpush.bf16.msrb.mxu3 %v5516_v56 }
 0x53d   : > { %4447 = vmatpush.bf16.msra.mxu1 %v5524_v52 }
 0x540   : > { %4325 = vmatpush.bf16.msrb.mxu3 %v5515_v61 }
 0x541   : > { %4448 = vmatpush.bf16.msra.mxu1 %v5523_v34 }
 0x544   : > { %4326 = vmatpush.bf16.msrb.mxu3 %v5514_v21 }
 0x545   : > { %4449 = vmatpush.bf16.msra.mxu1 %v5522_v38 }
 0x547   : > { %4327 = vmatmul.bf16.vlgmr.msrb.gmra.mxu3 %v4253_v59 }
 0x59f   : > { %v3717_v14 = vpop.f32.mrf.mxu0 }
 0x5a5   : > { %v3805_v45 = vpop.f32.mrf.mxu1 }
 0x5a7   : > { %v3719_v22 = vpop.f32.mrf.mxu0 }
 0x5aa   : > { %v3656_v18 = vpop.f32.mrf.mxu3  ;;  %v3893_v5 = vpop.f32.mrf.mxu2 }
 0x5ab   : > { %v3718_v30 = vadd.f32 %v3717_v14, %v3656_v18 }
 0x5ad   : > { %v3807_v25 = vpop.f32.mrf.mxu1  ;;  %v3809_v49 = vadd.f32 %v3805_v45, %v3718_v30 }
 0x5af   : > { %v4066_v63 = vpop.f32.mrf.mxu0  ;;  %v3897_v28 = vadd.f32 %v3893_v5, %v3809_v49 }
 0x5b2   : > { %v3658_v58 = vpop.f32.mrf.mxu3  ;;  %v3895_v17 = vpop.f32.mrf.mxu2 }
 0x5b5   : > { %v4151_v24 = vpop.f32.mrf.mxu1 }
 0x5b7   : > { %v4068_v60 = vpop.f32.mrf.mxu0 }
 0x5ba   : > { %v3978_v26 = vpop.f32.mrf.mxu3  ;;  %v4240_v51 = vpop.f32.mrf.mxu2 }
 0x5bb   : > { %v3982_v23 = vadd.f32 %v3978_v26, %v3897_v28 }
 0x5bd   : > { %v4153_v27 = vpop.f32.mrf.mxu1  ;;  %v4070_v42 = vadd.f32 %v4066_v63, %v3982_v23 }
 0x5bf   : > { %v4155_v37 = vadd.f32 %v4151_v24, %v4070_v42 }
 0x5c1   : > { %v4244_v16 = vadd.f32 %v4240_v51, %v4155_v37 }
 0x5c2   : > { %v3980_v53 = vpop.f32.mrf.mxu3  ;;  %v4242_v19 = vpop.f32.mrf.mxu2 }
 0x5ca   : > { %v4328_v62 = vpop.f32.mrf.mxu3 }
 0x5cb   : > { %v4332_v12 = vadd.f32 %v4328_v62, %v4244_v16 }
 0x5cd   : > { %v4336_v31 = vadd.f32 %v5730_v43, %v4332_v12 }
 0x5cf   : > { %v4337_v44 = vmax.f32 %v4336_v31, 0.0 }
 0x5d1   : > { %v4341_v39 = vadd.f32 %v5731_v11, %v4337_v44 }
 0x5d2   : > { %v4330_v50 = vpop.f32.mrf.mxu3 }
 0x5d3   : > { %v4344_v2 = vrot.slane %v4341_v39, 1 }
 0x5d5   : > { %v4346_v54 = vsel %vm1322_vm3, %v4344_v2, 0.0 }
 0x5d6   : > { %v4347_v1 = vmax.f32 %v4341_v39, %v4346_v54 }
 0x5d8   : > { %v4349_v35 = vrot.slane %v4347_v1, 2 }
 0x5da   : > { %v4351_v20 = vsel %vm4158_vm9, %v4349_v35, 0.0 }
 0x5db   : > { %v4352_v57 = vmax.f32 %v4347_v1, %v4351_v20 }
 0x5dd   : > { %v4353_v7 = vpack.c.bf16 %v4352_v57, %v4352_v57 }
 0x5df   : > { %v4358_v8 = vsel %vm1010_vm0, %v4353_v7, 0 }
 0x5e0   : > { %4367 = vmatpush.bf16.msrb.mxu0 %v4358_v8 }
 0x5e3   : > { %5375 = vmatmul.msk.bf16.vlgmr.msrb.gmra.mxu0 %vm985_vm1, %v4342_v40 }
 0x660   : > { %v4369_v0 = vpop.f32.mrf.mxu0 }
 0x661   : > { %v4373_v10 = vpack.c.bf16 %v4369_v0, %v4369_v0 }
 0x663   : > { %4450 = vmatmul.bf16.vlgmr.msra.gmra.mxu1 %v4373_v10 }
 0x668   : > { %v4371_v32 = vpop.f32.mrf.mxu0 }
 0x6e0   : > { %v4451_v3 = vpop.f32.mrf.mxu1 }
 0x6e1   : > { %v4452_v41 = vadd.f32 %v5732_v46, %v4451_v3 }
 0x6e3   : > { %4455 = vst [vmem:[%s773_s1] sm:$0x3] %v4452_v41 }
 0x6e8   : > { %v4453_v6 = vpop.f32.mrf.mxu1 }
 0x6e9 PF: > { %s7795_s30 = sld [smem:[#allocation6_spill]]  ;;  %s7798_s27 = smov %s5810_s28 }
 0x6ea   : > { %s7796_s6 = sld [smem:[#allocation5_spill]] }
 0x6eb   : > { %s7797_s29 = sld [smem:[#allocation7_spill]] }
 0x6ef   : > { %p28_p7 = scmp.ge.s32.totalorder %s7795_s30, 4  }
 0x6f0   : > { %s7799_s28 = smov %s7796_s6 }
 0x6f1   :  { %30 = sbr.rel (!%p28_p7) target bundleno = 11 (0xb), region = 189 }
 0x6f6   :  { %4475 = vsyncpa [#allocation3], 1 }
 0x6f7   :  { %4477 = vsyncpa [#allocation3 + $0x1], 1 }

</bundles_post_ra>
